<compile_context>
chip_gen: v7x
topology: tpu7x:2x2x1
jax: 0.10.0
libtpu: 0.0.40
codegen_flags: <defaults>
</compile_context>

<pallas_src>
import jax
import jax.numpy as jnp
from jax import lax
from jax.experimental import pallas as pl
from jax.experimental.pallas import tpu as pltpu
import numpy as np


def _make_kernel(H, W, Cin, Cout):
    """Build a kernel processing one batch element (full image in VMEM)."""
    Hh, Wh = H // 2, W // 2
    f32 = jnp.float32

    def conv3x3_relu(src_ref, w_ref, b_ref, C):
        # src_ref: (H+2, W+2, C) zero-padded input.
        # The 3 dw-shifted slabs are read once each (the only sublane-shifted
        # reads) and flattened so each dh tap is a tile-aligned 2-D slice
        # feeding one whole-image (H*W, C) @ (C, Cout) MXU matmul.
        slabs = [src_ref[:, dw:dw + W, :].reshape((H + 2) * W, C)
                 for dw in range(3)]
        acc = None
        for dh in range(3):
            lo = dh * W                                   # multiple of 8
            for dw in range(3):
                a = slabs[dw][lo:lo + H * W]              # (H*W, C)
                t = jnp.dot(a, w_ref[dh * 3 + dw],
                            preferred_element_type=f32)   # (H*W, Cout)
                acc = t if acc is None else acc + t
        # Bias broadcast hoisted: added once to the accumulated full image.
        return jnp.maximum(acc + b_ref[...], 0.0)         # ReLU, (H*W, Cout)

    def kernel(xp_ref, w1_ref, b1_ref, w2_ref, b2_ref,
               pool_ref, skip_ref, pad2_ref, rm_ref):
        # Zero only the 1-pixel halo of the conv1-output buffer; the interior
        # is fully overwritten below. Done every step (scratch is per-core
        # and uninitialized, and the batch axis may be sharded across cores).
        pad2_ref[0, :, :] = jnp.zeros((W + 2, Cout), f32)
        pad2_ref[H + 1, :, :] = jnp.zeros((W + 2, Cout), f32)
        pad2_ref[:, 0:1, :] = jnp.zeros((H + 2, 1, Cout), f32)
        pad2_ref[:, W + 1:W + 2, :] = jnp.zeros((H + 2, 1, Cout), f32)

        # ---- conv1 + ReLU: 9 whole-image matmuls, one interior store ----
        y1 = conv3x3_relu(xp_ref, w1_ref, b1_ref, Cin)
        pad2_ref[1:H + 1, 1:W + 1, :] = y1.reshape(H, W, Cout)

        # ---- conv2 + ReLU -> skip output (Dropout(p=0) == Identity) ----
        # TODO(synk): dropout p>0 would need pltpu.prng_seed/prng_random_bits.
        y2 = conv3x3_relu(pad2_ref, w2_ref, b2_ref, Cout)
        skip_ref[...] = y2.reshape(H, W, Cout).astype(skip_ref.dtype)

        # ---- 2x2 / stride-2 max pool, fully vectorized ----
        # H direction: split the leading dim (layout no-op) + one VPU max.
        y2r = y2.reshape(Hh, 2, W, Cout)
        rm_ref[...] = jnp.maximum(y2r[:, 0], y2r[:, 1])    # (Hh, W, Cout)
        # W direction: two strided sublane loads + one dense store.
        pool_ref[...] = jnp.maximum(
            rm_ref[:, pl.ds(0, Wh, stride=2), :],          # even columns
            rm_ref[:, pl.ds(1, Wh, stride=2), :],          # odd columns
        ).astype(pool_ref.dtype)

    return kernel


def conv_block_forward(x_nchw, w1, b1, w2, b2):
    """ConvBlock forward (dropouts=0, max_pooling=True).

    x_nchw: (N, Cin, H, W) float32; weights in PyTorch OIHW layout.
    Returns (pooled, skip) in NCHW, matching the torch module.
    """
    N, Cin, H, W = x_nchw.shape
    Cout = w1.shape[0]
    Hh, Wh = H // 2, W // 2

    x_nhwc = jnp.transpose(x_nchw, (0, 2, 3, 1)).astype(jnp.float32)
    # Zero-pad the input once in the wrapper: removes a whole padded VMEM
    # scratch + interior copy from the kernel.
    xp = jnp.pad(x_nhwc, ((0, 0), (1, 1), (1, 1), (0, 0)))

    # (O, I, kh, kw) -> (kh*kw, I, O): each tap is a (Cin, Cout) matmul operand.
    w1k = jnp.transpose(w1, (2, 3, 1, 0)).reshape(9, Cin, Cout).astype(jnp.float32)
    w2k = jnp.transpose(w2, (2, 3, 1, 0)).reshape(9, Cout, Cout).astype(jnp.float32)
    b1k = b1.reshape(1, Cout).astype(jnp.float32)
    b2k = b2.reshape(1, Cout).astype(jnp.float32)

    kernel = _make_kernel(H, W, Cin, Cout)

    pooled, skip = pl.pallas_call(
        kernel,
        out_shape=(
            jax.ShapeDtypeStruct((N, Hh, Wh, Cout), jnp.float32),
            jax.ShapeDtypeStruct((N, H, W, Cout), jnp.float32),
        ),
        grid_spec=pltpu.PrefetchScalarGridSpec(
            num_scalar_prefetch=0,
            grid=(N,),                                   # one step per batch element
            in_specs=[
                pl.BlockSpec((None, H + 2, W + 2, Cin), lambda n: (n, 0, 0, 0)),
                pl.BlockSpec((9, Cin, Cout), lambda n: (0, 0, 0)),
                pl.BlockSpec((1, Cout), lambda n: (0, 0)),
                pl.BlockSpec((9, Cout, Cout), lambda n: (0, 0, 0)),
                pl.BlockSpec((1, Cout), lambda n: (0, 0)),
            ],
            out_specs=[
                pl.BlockSpec((None, Hh, Wh, Cout), lambda n: (n, 0, 0, 0)),
                pl.BlockSpec((None, H, W, Cout), lambda n: (n, 0, 0, 0)),
            ],
            scratch_shapes=[
                pltpu.VMEM((H + 2, W + 2, Cout), jnp.float32),  # padded conv1 output
                pltpu.VMEM((Hh, W, Cout), jnp.float32),         # pool row-max
            ],
        ),
        compiler_params=pltpu.CompilerParams(
            dimension_semantics=("parallel",)),
    )(xp, w1k, b1k, w2k, b2k)

    return jnp.transpose(pooled, (0, 3, 1, 2)), jnp.transpose(skip, (0, 3, 1, 2))


def conv_block_reference(x, w1, b1, w2, b2):
    """Pure-JAX reference matching torch ConvBlock (NCHW)."""
    def conv_relu(x, w, b):
        y = lax.conv_general_dilated(
            x, w, window_strides=(1, 1), padding=((1, 1), (1, 1)),
            dimension_numbers=('NCHW', 'OIHW', 'NCHW'))
        return jnp.maximum(y + b[None, :, None, None], 0.0)

    x = conv_relu(x, w1, b1)
    x = conv_relu(x, w2, b2)
    skip = x
    N, C, H, W = x.shape
    pooled = x.reshape(N, C, H // 2, 2, W // 2, 2).max(axis=(3, 5))
    return pooled, skip


if __name__ == "__main__":
    N, Cin, Cout, H, W = 2, 4, 16, 16, 16

    key = jax.random.PRNGKey(0)
    k1, k2, k3, k4, k5 = jax.random.split(key, 5)
    # Deterministic synthetic parameters (shapes from nn.Conv2d(in, out, 3, padding=1)).
    x = jax.random.normal(k1, (N, Cin, H, W), jnp.float32)
    w1 = jax.random.normal(k2, (Cout, Cin, 3, 3), jnp.float32) * 0.2
    b1 = jax.random.normal(k3, (Cout,), jnp.float32) * 0.1
    w2 = jax.random.normal(k4, (Cout, Cout, 3, 3), jnp.float32) * 0.2
    b2 = jax.random.normal(k5, (Cout,), jnp.float32) * 0.1

    pooled, skip = jax.block_until_ready(conv_block_forward(x, w1, b1, w2, b2))

    assert pooled.shape == (N, Cout, H // 2, W // 2)
    assert skip.shape == (N, Cout, H, W)

    ref_pooled, ref_skip = conv_block_reference(x, w1, b1, w2, b2)
    np.testing.assert_allclose(np.asarray(skip), np.asarray(ref_skip),
                               rtol=1e-4, atol=1e-4)
    np.testing.assert_allclose(np.asarray(pooled), np.asarray(ref_pooled),
                               rtol=1e-4, atol=1e-4)

    print("KERNEL_OK")
</pallas_src>

<mosaic_0001>
module attributes {stable_mosaic.version = 11 : i64} {
  func.func @kernel(%arg0: i32, %arg1: memref<1x18x18x4xf32, #tpu.memory_space<vmem>>, %arg2: memref<9x4x16xf32, #tpu.memory_space<vmem>>, %arg3: memref<1x16xf32, #tpu.memory_space<vmem>>, %arg4: memref<9x16x16xf32, #tpu.memory_space<vmem>>, %arg5: memref<1x16xf32, #tpu.memory_space<vmem>>, %arg6: memref<1x8x8x16xf32, #tpu.memory_space<vmem>>, %arg7: memref<1x16x16x16xf32, #tpu.memory_space<vmem>>, %arg8: memref<18x18x16xf32, #tpu.memory_space<vmem>>, %arg9: memref<8x16x16xf32, #tpu.memory_space<vmem>>) attributes {dimension_semantics = [#tpu.dimension_semantics<parallel>], iteration_bounds = array<i64: 2>, scalar_prefetch = 0 : i64, scratch_operands = 2 : i64, tpu.core_type = #tpu.core_type<tc>, window_params = [{transform_indices = @transform_0, window_bounds = array<i64: 1, 18, 18, 4>}, {pipeline_mode = #tpu.pipeline_mode<synchronous>, transform_indices = @transform_1, window_bounds = array<i64: 9, 4, 16>}, {pipeline_mode = #tpu.pipeline_mode<synchronous>, transform_indices = @transform_2, window_bounds = array<i64: 1, 16>}, {pipeline_mode = #tpu.pipeline_mode<synchronous>, transform_indices = @transform_3, window_bounds = array<i64: 9, 16, 16>}, {pipeline_mode = #tpu.pipeline_mode<synchronous>, transform_indices = @transform_4, window_bounds = array<i64: 1, 16>}, {transform_indices = @transform_5, window_bounds = array<i64: 1, 8, 8, 16>}, {transform_indices = @transform_6, window_bounds = array<i64: 1, 16, 16, 16>}]} {
    %cst = arith.constant 0.000000e+00 : f32
    %0 = vector.broadcast %cst : f32 to vector<18x16xf32>
    %c0 = arith.constant 0 : index
    %c0_0 = arith.constant 0 : index
    %c0_1 = arith.constant 0 : index
    %1 = vector.load %arg8[%c0, %c0_0, %c0_1] : memref<18x18x16xf32, #tpu.memory_space<vmem>>, vector<1x18x16xf32>
    %2 = vector.shape_cast %1 : vector<1x18x16xf32> to vector<18x16xf32>
    %3 = vector.shape_cast %0 : vector<18x16xf32> to vector<1x18x16xf32>
    tpu.vector_store %arg8[%c0, %c0_0, %c0_1], %3 {strides = array<i32>} : memref<18x18x16xf32, #tpu.memory_space<vmem>>, vector<1x18x16xf32>,
    %cst_2 = arith.constant 0.000000e+00 : f32
    %4 = vector.broadcast %cst_2 : f32 to vector<18x16xf32>
    %c17 = arith.constant 17 : index
    %c0_3 = arith.constant 0 : index
    %c0_4 = arith.constant 0 : index
    %5 = vector.load %arg8[%c17, %c0_3, %c0_4] : memref<18x18x16xf32, #tpu.memory_space<vmem>>, vector<1x18x16xf32>
    %6 = vector.shape_cast %5 : vector<1x18x16xf32> to vector<18x16xf32>
    %7 = vector.shape_cast %4 : vector<18x16xf32> to vector<1x18x16xf32>
    tpu.vector_store %arg8[%c17, %c0_3, %c0_4], %7 {strides = array<i32>} : memref<18x18x16xf32, #tpu.memory_space<vmem>>, vector<1x18x16xf32>,
    %cst_5 = arith.constant 0.000000e+00 : f32
    %8 = vector.broadcast %cst_5 : f32 to vector<18x1x16xf32>
    %c0_6 = arith.constant 0 : index
    %c0_7 = arith.constant 0 : index
    %c0_8 = arith.constant 0 : index
    %9 = vector.load %arg8[%c0_6, %c0_7, %c0_8] : memref<18x18x16xf32, #tpu.memory_space<vmem>>, vector<18x1x16xf32>
    tpu.vector_store %arg8[%c0_6, %c0_7, %c0_8], %8 {strides = array<i32>} : memref<18x18x16xf32, #tpu.memory_space<vmem>>, vector<18x1x16xf32>,
    %cst_9 = arith.constant 0.000000e+00 : f32
    %10 = vector.broadcast %cst_9 : f32 to vector<18x1x16xf32>
    %c0_10 = arith.constant 0 : index
    %c17_11 = arith.constant 17 : index
    %c0_12 = arith.constant 0 : index
    %11 = vector.load %arg8[%c0_10, %c17_11, %c0_12] : memref<18x18x16xf32, #tpu.memory_space<vmem>>, vector<18x1x16xf32>
    tpu.vector_store %arg8[%c0_10, %c17_11, %c0_12], %10 {strides = array<i32>} : memref<18x18x16xf32, #tpu.memory_space<vmem>>, vector<18x1x16xf32>,
    %c0_13 = arith.constant 0 : index
    %c0_14 = arith.constant 0 : index
    %c0_15 = arith.constant 0 : index
    %c0_16 = arith.constant 0 : index
    %12 = vector.load %arg1[%c0_13, %c0_14, %c0_15, %c0_16] : memref<1x18x18x4xf32, #tpu.memory_space<vmem>>, vector<1x18x16x4xf32>
    %13 = vector.shape_cast %12 : vector<1x18x16x4xf32> to vector<18x16x4xf32>
    %14 = vector.shape_cast %13 : vector<18x16x4xf32> to vector<288x4xf32>
    %c0_17 = arith.constant 0 : index
    %c0_18 = arith.constant 0 : index
    %c1 = arith.constant 1 : index
    %c0_19 = arith.constant 0 : index
    %15 = vector.load %arg1[%c0_17, %c0_18, %c1, %c0_19] : memref<1x18x18x4xf32, #tpu.memory_space<vmem>>, vector<1x18x16x4xf32>
    %16 = vector.shape_cast %15 : vector<1x18x16x4xf32> to vector<18x16x4xf32>
    %17 = vector.shape_cast %16 : vector<18x16x4xf32> to vector<288x4xf32>
    %c0_20 = arith.constant 0 : index
    %c0_21 = arith.constant 0 : index
    %c2 = arith.constant 2 : index
    %c0_22 = arith.constant 0 : index
    %18 = vector.load %arg1[%c0_20, %c0_21, %c2, %c0_22] : memref<1x18x18x4xf32, #tpu.memory_space<vmem>>, vector<1x18x16x4xf32>
    %19 = vector.shape_cast %18 : vector<1x18x16x4xf32> to vector<18x16x4xf32>
    %20 = vector.shape_cast %19 : vector<18x16x4xf32> to vector<288x4xf32>
    %21 = vector.extract_strided_slice %14 {offsets = [0, 0], sizes = [256, 4], strides = [1, 1]} : vector<288x4xf32> to vector<256x4xf32>
    %c0_23 = arith.constant 0 : index
    %c0_24 = arith.constant 0 : index
    %c0_25 = arith.constant 0 : index
    %22 = vector.load %arg2[%c0_23, %c0_24, %c0_25] : memref<9x4x16xf32, #tpu.memory_space<vmem>>, vector<1x4x16xf32>
    %23 = vector.shape_cast %22 : vector<1x4x16xf32> to vector<4x16xf32>
    %cst_26 = arith.constant dense<0.000000e+00> : vector<256x16xf32>
    %24 = tpu.matmul %21, %23, %cst_26 {dimension_numbers = #tpu.dot_dimension_numbers<[1], [0], [0], [1], [0, 0, 1, 1], [], []>} : vector<256x4xf32>, vector<4x16xf32>, vector<256x16xf32> -> vector<256x16xf32>
    %25 = vector.extract_strided_slice %17 {offsets = [0, 0], sizes = [256, 4], strides = [1, 1]} : vector<288x4xf32> to vector<256x4xf32>
    %c1_27 = arith.constant 1 : index
    %c0_28 = arith.constant 0 : index
    %c0_29 = arith.constant 0 : index
    %26 = vector.load %arg2[%c1_27, %c0_28, %c0_29] : memref<9x4x16xf32, #tpu.memory_space<vmem>>, vector<1x4x16xf32>
    %27 = vector.shape_cast %26 : vector<1x4x16xf32> to vector<4x16xf32>
    %cst_30 = arith.constant dense<0.000000e+00> : vector<256x16xf32>
    %28 = tpu.matmul %25, %27, %cst_30 {dimension_numbers = #tpu.dot_dimension_numbers<[1], [0], [0], [1], [0, 0, 1, 1], [], []>} : vector<256x4xf32>, vector<4x16xf32>, vector<256x16xf32> -> vector<256x16xf32>
    %29 = arith.addf %24, %28 : vector<256x16xf32>
    %30 = vector.extract_strided_slice %20 {offsets = [0, 0], sizes = [256, 4], strides = [1, 1]} : vector<288x4xf32> to vector<256x4xf32>
    %c2_31 = arith.constant 2 : index
    %c0_32 = arith.constant 0 : index
    %c0_33 = arith.constant 0 : index
    %31 = vector.load %arg2[%c2_31, %c0_32, %c0_33] : memref<9x4x16xf32, #tpu.memory_space<vmem>>, vector<1x4x16xf32>
    %32 = vector.shape_cast %31 : vector<1x4x16xf32> to vector<4x16xf32>
    %cst_34 = arith.constant dense<0.000000e+00> : vector<256x16xf32>
    %33 = tpu.matmul %30, %32, %cst_34 {dimension_numbers = #tpu.dot_dimension_numbers<[1], [0], [0], [1], [0, 0, 1, 1], [], []>} : vector<256x4xf32>, vector<4x16xf32>, vector<256x16xf32> -> vector<256x16xf32>
    %34 = arith.addf %29, %33 : vector<256x16xf32>
    %35 = vector.extract_strided_slice %14 {offsets = [16, 0], sizes = [256, 4], strides = [1, 1]} : vector<288x4xf32> to vector<256x4xf32>
    %c3 = arith.constant 3 : index
    %c0_35 = arith.constant 0 : index
    %c0_36 = arith.constant 0 : index
    %36 = vector.load %arg2[%c3, %c0_35, %c0_36] : memref<9x4x16xf32, #tpu.memory_space<vmem>>, vector<1x4x16xf32>
    %37 = vector.shape_cast %36 : vector<1x4x16xf32> to vector<4x16xf32>
    %cst_37 = arith.constant dense<0.000000e+00> : vector<256x16xf32>
    %38 = tpu.matmul %35, %37, %cst_37 {dimension_numbers = #tpu.dot_dimension_numbers<[1], [0], [0], [1], [0, 0, 1, 1], [], []>} : vector<256x4xf32>, vector<4x16xf32>, vector<256x16xf32> -> vector<256x16xf32>
    %39 = arith.addf %34, %38 : vector<256x16xf32>
    %40 = vector.extract_strided_slice %17 {offsets = [16, 0], sizes = [256, 4], strides = [1, 1]} : vector<288x4xf32> to vector<256x4xf32>
    %c4 = arith.constant 4 : index
    %c0_38 = arith.constant 0 : index
    %c0_39 = arith.constant 0 : index
    %41 = vector.load %arg2[%c4, %c0_38, %c0_39] : memref<9x4x16xf32, #tpu.memory_space<vmem>>, vector<1x4x16xf32>
    %42 = vector.shape_cast %41 : vector<1x4x16xf32> to vector<4x16xf32>
    %cst_40 = arith.constant dense<0.000000e+00> : vector<256x16xf32>
    %43 = tpu.matmul %40, %42, %cst_40 {dimension_numbers = #tpu.dot_dimension_numbers<[1], [0], [0], [1], [0, 0, 1, 1], [], []>} : vector<256x4xf32>, vector<4x16xf32>, vector<256x16xf32> -> vector<256x16xf32>
    %44 = arith.addf %39, %43 : vector<256x16xf32>
    %45 = vector.extract_strided_slice %20 {offsets = [16, 0], sizes = [256, 4], strides = [1, 1]} : vector<288x4xf32> to vector<256x4xf32>
    %c5 = arith.constant 5 : index
    %c0_41 = arith.constant 0 : index
    %c0_42 = arith.constant 0 : index
    %46 = vector.load %arg2[%c5, %c0_41, %c0_42] : memref<9x4x16xf32, #tpu.memory_space<vmem>>, vector<1x4x16xf32>
    %47 = vector.shape_cast %46 : vector<1x4x16xf32> to vector<4x16xf32>
    %cst_43 = arith.constant dense<0.000000e+00> : vector<256x16xf32>
    %48 = tpu.matmul %45, %47, %cst_43 {dimension_numbers = #tpu.dot_dimension_numbers<[1], [0], [0], [1], [0, 0, 1, 1], [], []>} : vector<256x4xf32>, vector<4x16xf32>, vector<256x16xf32> -> vector<256x16xf32>
    %49 = arith.addf %44, %48 : vector<256x16xf32>
    %50 = vector.extract_strided_slice %14 {offsets = [32, 0], sizes = [256, 4], strides = [1, 1]} : vector<288x4xf32> to vector<256x4xf32>
    %c6 = arith.constant 6 : index
    %c0_44 = arith.constant 0 : index
    %c0_45 = arith.constant 0 : index
    %51 = vector.load %arg2[%c6, %c0_44, %c0_45] : memref<9x4x16xf32, #tpu.memory_space<vmem>>, vector<1x4x16xf32>
    %52 = vector.shape_cast %51 : vector<1x4x16xf32> to vector<4x16xf32>
    %cst_46 = arith.constant dense<0.000000e+00> : vector<256x16xf32>
    %53 = tpu.matmul %50, %52, %cst_46 {dimension_numbers = #tpu.dot_dimension_numbers<[1], [0], [0], [1], [0, 0, 1, 1], [], []>} : vector<256x4xf32>, vector<4x16xf32>, vector<256x16xf32> -> vector<256x16xf32>
    %54 = arith.addf %49, %53 : vector<256x16xf32>
    %55 = vector.extract_strided_slice %17 {offsets = [32, 0], sizes = [256, 4], strides = [1, 1]} : vector<288x4xf32> to vector<256x4xf32>
    %c7 = arith.constant 7 : index
    %c0_47 = arith.constant 0 : index
    %c0_48 = arith.constant 0 : index
    %56 = vector.load %arg2[%c7, %c0_47, %c0_48] : memref<9x4x16xf32, #tpu.memory_space<vmem>>, vector<1x4x16xf32>
    %57 = vector.shape_cast %56 : vector<1x4x16xf32> to vector<4x16xf32>
    %cst_49 = arith.constant dense<0.000000e+00> : vector<256x16xf32>
    %58 = tpu.matmul %55, %57, %cst_49 {dimension_numbers = #tpu.dot_dimension_numbers<[1], [0], [0], [1], [0, 0, 1, 1], [], []>} : vector<256x4xf32>, vector<4x16xf32>, vector<256x16xf32> -> vector<256x16xf32>
    %59 = arith.addf %54, %58 : vector<256x16xf32>
    %60 = vector.extract_strided_slice %20 {offsets = [32, 0], sizes = [256, 4], strides = [1, 1]} : vector<288x4xf32> to vector<256x4xf32>
    %c8 = arith.constant 8 : index
    %c0_50 = arith.constant 0 : index
    %c0_51 = arith.constant 0 : index
    %61 = vector.load %arg2[%c8, %c0_50, %c0_51] : memref<9x4x16xf32, #tpu.memory_space<vmem>>, vector<1x4x16xf32>
    %62 = vector.shape_cast %61 : vector<1x4x16xf32> to vector<4x16xf32>
    %cst_52 = arith.constant dense<0.000000e+00> : vector<256x16xf32>
    %63 = tpu.matmul %60, %62, %cst_52 {dimension_numbers = #tpu.dot_dimension_numbers<[1], [0], [0], [1], [0, 0, 1, 1], [], []>} : vector<256x4xf32>, vector<4x16xf32>, vector<256x16xf32> -> vector<256x16xf32>
    %64 = arith.addf %59, %63 : vector<256x16xf32>
    %c0_53 = arith.constant 0 : index
    %c0_54 = arith.constant 0 : index
    %65 = vector.load %arg3[%c0_53, %c0_54] : memref<1x16xf32, #tpu.memory_space<vmem>>, vector<1x16xf32>
    %66 = vector.broadcast %65 : vector<1x16xf32> to vector<256x16xf32>
    %67 = arith.addf %64, %66 : vector<256x16xf32>
    %cst_55 = arith.constant 0.000000e+00 : f32
    %68 = vector.broadcast %cst_55 : f32 to vector<256x16xf32>
    %69 = arith.maximumf %67, %68 : vector<256x16xf32>
    %70 = vector.shape_cast %69 : vector<256x16xf32> to vector<16x16x16xf32>
    %c1_56 = arith.constant 1 : index
    %c1_57 = arith.constant 1 : index
    %c0_58 = arith.constant 0 : index
    %71 = vector.load %arg8[%c1_56, %c1_57, %c0_58] : memref<18x18x16xf32, #tpu.memory_space<vmem>>, vector<16x16x16xf32>
    tpu.vector_store %arg8[%c1_56, %c1_57, %c0_58], %70 {strides = array<i32>} : memref<18x18x16xf32, #tpu.memory_space<vmem>>, vector<16x16x16xf32>,
    %c0_59 = arith.constant 0 : index
    %c0_60 = arith.constant 0 : index
    %c0_61 = arith.constant 0 : index
    %72 = vector.load %arg8[%c0_59, %c0_60, %c0_61] : memref<18x18x16xf32, #tpu.memory_space<vmem>>, vector<18x16x16xf32>
    %73 = vector.shape_cast %72 : vector<18x16x16xf32> to vector<288x16xf32>
    %c0_62 = arith.constant 0 : index
    %c1_63 = arith.constant 1 : index
    %c0_64 = arith.constant 0 : index
    %74 = vector.load %arg8[%c0_62, %c1_63, %c0_64] : memref<18x18x16xf32, #tpu.memory_space<vmem>>, vector<18x16x16xf32>
    %75 = vector.shape_cast %74 : vector<18x16x16xf32> to vector<288x16xf32>
    %c0_65 = arith.constant 0 : index
    %c2_66 = arith.constant 2 : index
    %c0_67 = arith.constant 0 : index
    %76 = vector.load %arg8[%c0_65, %c2_66, %c0_67] : memref<18x18x16xf32, #tpu.memory_space<vmem>>, vector<18x16x16xf32>
    %77 = vector.shape_cast %76 : vector<18x16x16xf32> to vector<288x16xf32>
    %78 = vector.extract_strided_slice %73 {offsets = [0, 0], sizes = [256, 16], strides = [1, 1]} : vector<288x16xf32> to vector<256x16xf32>
    %c0_68 = arith.constant 0 : index
    %c0_69 = arith.constant 0 : index
    %c0_70 = arith.constant 0 : index
    %79 = vector.load %arg4[%c0_68, %c0_69, %c0_70] : memref<9x16x16xf32, #tpu.memory_space<vmem>>, vector<1x16x16xf32>
    %80 = vector.shape_cast %79 : vector<1x16x16xf32> to vector<16x16xf32>
    %cst_71 = arith.constant dense<0.000000e+00> : vector<256x16xf32>
    %81 = tpu.matmul %78, %80, %cst_71 {dimension_numbers = #tpu.dot_dimension_numbers<[1], [0], [0], [1], [0, 0, 1, 1], [], []>} : vector<256x16xf32>, vector<16x16xf32>, vector<256x16xf32> -> vector<256x16xf32>
    %82 = vector.extract_strided_slice %75 {offsets = [0, 0], sizes = [256, 16], strides = [1, 1]} : vector<288x16xf32> to vector<256x16xf32>
    %c1_72 = arith.constant 1 : index
    %c0_73 = arith.constant 0 : index
    %c0_74 = arith.constant 0 : index
    %83 = vector.load %arg4[%c1_72, %c0_73, %c0_74] : memref<9x16x16xf32, #tpu.memory_space<vmem>>, vector<1x16x16xf32>
    %84 = vector.shape_cast %83 : vector<1x16x16xf32> to vector<16x16xf32>
    %cst_75 = arith.constant dense<0.000000e+00> : vector<256x16xf32>
    %85 = tpu.matmul %82, %84, %cst_75 {dimension_numbers = #tpu.dot_dimension_numbers<[1], [0], [0], [1], [0, 0, 1, 1], [], []>} : vector<256x16xf32>, vector<16x16xf32>, vector<256x16xf32> -> vector<256x16xf32>
    %86 = arith.addf %81, %85 : vector<256x16xf32>
    %87 = vector.extract_strided_slice %77 {offsets = [0, 0], sizes = [256, 16], strides = [1, 1]} : vector<288x16xf32> to vector<256x16xf32>
    %c2_76 = arith.constant 2 : index
    %c0_77 = arith.constant 0 : index
    %c0_78 = arith.constant 0 : index
    %88 = vector.load %arg4[%c2_76, %c0_77, %c0_78] : memref<9x16x16xf32, #tpu.memory_space<vmem>>, vector<1x16x16xf32>
    %89 = vector.shape_cast %88 : vector<1x16x16xf32> to vector<16x16xf32>
    %cst_79 = arith.constant dense<0.000000e+00> : vector<256x16xf32>
    %90 = tpu.matmul %87, %89, %cst_79 {dimension_numbers = #tpu.dot_dimension_numbers<[1], [0], [0], [1], [0, 0, 1, 1], [], []>} : vector<256x16xf32>, vector<16x16xf32>, vector<256x16xf32> -> vector<256x16xf32>
    %91 = arith.addf %86, %90 : vector<256x16xf32>
    %92 = vector.extract_strided_slice %73 {offsets = [16, 0], sizes = [256, 16], strides = [1, 1]} : vector<288x16xf32> to vector<256x16xf32>
    %c3_80 = arith.constant 3 : index
    %c0_81 = arith.constant 0 : index
    %c0_82 = arith.constant 0 : index
    %93 = vector.load %arg4[%c3_80, %c0_81, %c0_82] : memref<9x16x16xf32, #tpu.memory_space<vmem>>, vector<1x16x16xf32>
    %94 = vector.shape_cast %93 : vector<1x16x16xf32> to vector<16x16xf32>
    %cst_83 = arith.constant dense<0.000000e+00> : vector<256x16xf32>
    %95 = tpu.matmul %92, %94, %cst_83 {dimension_numbers = #tpu.dot_dimension_numbers<[1], [0], [0], [1], [0, 0, 1, 1], [], []>} : vector<256x16xf32>, vector<16x16xf32>, vector<256x16xf32> -> vector<256x16xf32>
    %96 = arith.addf %91, %95 : vector<256x16xf32>
    %97 = vector.extract_strided_slice %75 {offsets = [16, 0], sizes = [256, 16], strides = [1, 1]} : vector<288x16xf32> to vector<256x16xf32>
    %c4_84 = arith.constant 4 : index
    %c0_85 = arith.constant 0 : index
    %c0_86 = arith.constant 0 : index
    %98 = vector.load %arg4[%c4_84, %c0_85, %c0_86] : memref<9x16x16xf32, #tpu.memory_space<vmem>>, vector<1x16x16xf32>
    %99 = vector.shape_cast %98 : vector<1x16x16xf32> to vector<16x16xf32>
    %cst_87 = arith.constant dense<0.000000e+00> : vector<256x16xf32>
    %100 = tpu.matmul %97, %99, %cst_87 {dimension_numbers = #tpu.dot_dimension_numbers<[1], [0], [0], [1], [0, 0, 1, 1], [], []>} : vector<256x16xf32>, vector<16x16xf32>, vector<256x16xf32> -> vector<256x16xf32>
    %101 = arith.addf %96, %100 : vector<256x16xf32>
    %102 = vector.extract_strided_slice %77 {offsets = [16, 0], sizes = [256, 16], strides = [1, 1]} : vector<288x16xf32> to vector<256x16xf32>
    %c5_88 = arith.constant 5 : index
    %c0_89 = arith.constant 0 : index
    %c0_90 = arith.constant 0 : index
    %103 = vector.load %arg4[%c5_88, %c0_89, %c0_90] : memref<9x16x16xf32, #tpu.memory_space<vmem>>, vector<1x16x16xf32>
    %104 = vector.shape_cast %103 : vector<1x16x16xf32> to vector<16x16xf32>
    %cst_91 = arith.constant dense<0.000000e+00> : vector<256x16xf32>
    %105 = tpu.matmul %102, %104, %cst_91 {dimension_numbers = #tpu.dot_dimension_numbers<[1], [0], [0], [1], [0, 0, 1, 1], [], []>} : vector<256x16xf32>, vector<16x16xf32>, vector<256x16xf32> -> vector<256x16xf32>
    %106 = arith.addf %101, %105 : vector<256x16xf32>
    %107 = vector.extract_strided_slice %73 {offsets = [32, 0], sizes = [256, 16], strides = [1, 1]} : vector<288x16xf32> to vector<256x16xf32>
    %c6_92 = arith.constant 6 : index
    %c0_93 = arith.constant 0 : index
    %c0_94 = arith.constant 0 : index
    %108 = vector.load %arg4[%c6_92, %c0_93, %c0_94] : memref<9x16x16xf32, #tpu.memory_space<vmem>>, vector<1x16x16xf32>
    %109 = vector.shape_cast %108 : vector<1x16x16xf32> to vector<16x16xf32>
    %cst_95 = arith.constant dense<0.000000e+00> : vector<256x16xf32>
    %110 = tpu.matmul %107, %109, %cst_95 {dimension_numbers = #tpu.dot_dimension_numbers<[1], [0], [0], [1], [0, 0, 1, 1], [], []>} : vector<256x16xf32>, vector<16x16xf32>, vector<256x16xf32> -> vector<256x16xf32>
    %111 = arith.addf %106, %110 : vector<256x16xf32>
    %112 = vector.extract_strided_slice %75 {offsets = [32, 0], sizes = [256, 16], strides = [1, 1]} : vector<288x16xf32> to vector<256x16xf32>
    %c7_96 = arith.constant 7 : index
    %c0_97 = arith.constant 0 : index
    %c0_98 = arith.constant 0 : index
    %113 = vector.load %arg4[%c7_96, %c0_97, %c0_98] : memref<9x16x16xf32, #tpu.memory_space<vmem>>, vector<1x16x16xf32>
    %114 = vector.shape_cast %113 : vector<1x16x16xf32> to vector<16x16xf32>
    %cst_99 = arith.constant dense<0.000000e+00> : vector<256x16xf32>
    %115 = tpu.matmul %112, %114, %cst_99 {dimension_numbers = #tpu.dot_dimension_numbers<[1], [0], [0], [1], [0, 0, 1, 1], [], []>} : vector<256x16xf32>, vector<16x16xf32>, vector<256x16xf32> -> vector<256x16xf32>
    %116 = arith.addf %111, %115 : vector<256x16xf32>
    %117 = vector.extract_strided_slice %77 {offsets = [32, 0], sizes = [256, 16], strides = [1, 1]} : vector<288x16xf32> to vector<256x16xf32>
    %c8_100 = arith.constant 8 : index
    %c0_101 = arith.constant 0 : index
    %c0_102 = arith.constant 0 : index
    %118 = vector.load %arg4[%c8_100, %c0_101, %c0_102] : memref<9x16x16xf32, #tpu.memory_space<vmem>>, vector<1x16x16xf32>
    %119 = vector.shape_cast %118 : vector<1x16x16xf32> to vector<16x16xf32>
    %cst_103 = arith.constant dense<0.000000e+00> : vector<256x16xf32>
    %120 = tpu.matmul %117, %119, %cst_103 {dimension_numbers = #tpu.dot_dimension_numbers<[1], [0], [0], [1], [0, 0, 1, 1], [], []>} : vector<256x16xf32>, vector<16x16xf32>, vector<256x16xf32> -> vector<256x16xf32>
    %121 = arith.addf %116, %120 : vector<256x16xf32>
    %c0_104 = arith.constant 0 : index
    %c0_105 = arith.constant 0 : index
    %122 = vector.load %arg5[%c0_104, %c0_105] : memref<1x16xf32, #tpu.memory_space<vmem>>, vector<1x16xf32>
    %123 = vector.broadcast %122 : vector<1x16xf32> to vector<256x16xf32>
    %124 = arith.addf %121, %123 : vector<256x16xf32>
    %cst_106 = arith.constant 0.000000e+00 : f32
    %125 = vector.broadcast %cst_106 : f32 to vector<256x16xf32>
    %126 = arith.maximumf %124, %125 : vector<256x16xf32>
    %127 = vector.shape_cast %126 : vector<256x16xf32> to vector<16x16x16xf32>
    %c0_107 = arith.constant 0 : index
    %c0_108 = arith.constant 0 : index
    %c0_109 = arith.constant 0 : index
    %c0_110 = arith.constant 0 : index
    %128 = vector.load %arg7[%c0_107, %c0_108, %c0_109, %c0_110] : memref<1x16x16x16xf32, #tpu.memory_space<vmem>>, vector<1x16x16x16xf32>
    %129 = vector.shape_cast %128 : vector<1x16x16x16xf32> to vector<16x16x16xf32>
    %130 = vector.shape_cast %127 : vector<16x16x16xf32> to vector<1x16x16x16xf32>
    tpu.vector_store %arg7[%c0_107, %c0_108, %c0_109, %c0_110], %130 {strides = array<i32>} : memref<1x16x16x16xf32, #tpu.memory_space<vmem>>, vector<1x16x16x16xf32>,
    %131 = vector.shape_cast %126 : vector<256x16xf32> to vector<8x2x16x16xf32>
    %132 = vector.extract_strided_slice %131 {offsets = [0, 0, 0, 0], sizes = [8, 1, 16, 16], strides = [1, 1, 1, 1]} : vector<8x2x16x16xf32> to vector<8x1x16x16xf32>
    %133 = vector.shape_cast %132 : vector<8x1x16x16xf32> to vector<8x16x16xf32>
    %134 = vector.extract_strided_slice %131 {offsets = [0, 1, 0, 0], sizes = [8, 1, 16, 16], strides = [1, 1, 1, 1]} : vector<8x2x16x16xf32> to vector<8x1x16x16xf32>
    %135 = vector.shape_cast %134 : vector<8x1x16x16xf32> to vector<8x16x16xf32>
    %136 = arith.maximumf %133, %135 : vector<8x16x16xf32>
    %c0_111 = arith.constant 0 : index
    %c0_112 = arith.constant 0 : index
    %c0_113 = arith.constant 0 : index
    %137 = vector.load %arg9[%c0_111, %c0_112, %c0_113] : memref<8x16x16xf32, #tpu.memory_space<vmem>>, vector<8x16x16xf32>
    tpu.vector_store %arg9[%c0_111, %c0_112, %c0_113], %136 {strides = array<i32>} : memref<8x16x16xf32, #tpu.memory_space<vmem>>, vector<8x16x16xf32>,
    %c0_114 = arith.constant 0 : index
    %c0_115 = arith.constant 0 : index
    %c0_116 = arith.constant 0 : index
    %138 = tpu.strided_load %arg9[%c0_114, %c0_115, %c0_116] {strides = array<i32: 1, 2, 1>} : memref<8x16x16xf32, #tpu.memory_space<vmem>>, vector<8x8x16xf32>
    %c0_117 = arith.constant 0 : index
    %c1_118 = arith.constant 1 : index
    %c0_119 = arith.constant 0 : index
    %139 = tpu.strided_load %arg9[%c0_117, %c1_118, %c0_119] {strides = array<i32: 1, 2, 1>} : memref<8x16x16xf32, #tpu.memory_space<vmem>>, vector<8x8x16xf32>
    %140 = arith.maximumf %138, %139 : vector<8x8x16xf32>
    %c0_120 = arith.constant 0 : index
    %c0_121 = arith.constant 0 : index
    %c0_122 = arith.constant 0 : index
    %c0_123 = arith.constant 0 : index
    %141 = vector.load %arg6[%c0_120, %c0_121, %c0_122, %c0_123] : memref<1x8x8x16xf32, #tpu.memory_space<vmem>>, vector<1x8x8x16xf32>
    %142 = vector.shape_cast %141 : vector<1x8x8x16xf32> to vector<8x8x16xf32>
    %143 = vector.shape_cast %140 : vector<8x8x16xf32> to vector<1x8x8x16xf32>
    tpu.vector_store %arg6[%c0_120, %c0_121, %c0_122, %c0_123], %143 {strides = array<i32>} : memref<1x8x8x16xf32, #tpu.memory_space<vmem>>, vector<1x8x8x16xf32>,
    return
  }
  func.func @transform_0(%arg0: i32) -> (i32, i32, i32, i32) {
    %c0_i32 = arith.constant 0 : i32
    %c0_i32_0 = arith.constant 0 : i32
    %c0_i32_1 = arith.constant 0 : i32
    %c0_i32_2 = arith.constant 0 : i32
    return %arg0, %c0_i32, %c0_i32_0, %c0_i32_1 : i32, i32, i32, i32
  }
  func.func @transform_1(%arg0: i32) -> (i32, i32, i32) {
    %c0_i32 = arith.constant 0 : i32
    %c0_i32_0 = arith.constant 0 : i32
    %c0_i32_1 = arith.constant 0 : i32
    %c0_i32_2 = arith.constant 0 : i32
    return %c0_i32, %c0_i32_0, %c0_i32_1 : i32, i32, i32
  }
  func.func @transform_2(%arg0: i32) -> (i32, i32) {
    %c0_i32 = arith.constant 0 : i32
    %c0_i32_0 = arith.constant 0 : i32
    %c0_i32_1 = arith.constant 0 : i32
    return %c0_i32, %c0_i32_0 : i32, i32
  }
  func.func @transform_3(%arg0: i32) -> (i32, i32, i32) {
    %c0_i32 = arith.constant 0 : i32
    %c0_i32_0 = arith.constant 0 : i32
    %c0_i32_1 = arith.constant 0 : i32
    %c0_i32_2 = arith.constant 0 : i32
    return %c0_i32, %c0_i32_0, %c0_i32_1 : i32, i32, i32
  }
  func.func @transform_4(%arg0: i32) -> (i32, i32) {
    %c0_i32 = arith.constant 0 : i32
    %c0_i32_0 = arith.constant 0 : i32
    %c0_i32_1 = arith.constant 0 : i32
    return %c0_i32, %c0_i32_0 : i32, i32
  }
  func.func @transform_5(%arg0: i32) -> (i32, i32, i32, i32) {
    %c0_i32 = arith.constant 0 : i32
    %c0_i32_0 = arith.constant 0 : i32
    %c0_i32_1 = arith.constant 0 : i32
    %c0_i32_2 = arith.constant 0 : i32
    return %arg0, %c0_i32, %c0_i32_0, %c0_i32_1 : i32, i32, i32, i32
  }
  func.func @transform_6(%arg0: i32) -> (i32, i32, i32, i32) {
    %c0_i32 = arith.constant 0 : i32
    %c0_i32_0 = arith.constant 0 : i32
    %c0_i32_1 = arith.constant 0 : i32
    %c0_i32_2 = arith.constant 0 : i32
    return %arg0, %c0_i32, %c0_i32_0, %c0_i32_1 : i32, i32, i32, i32
  }
}

</mosaic_0001>

<bundles_post_ra>
// kernel: tpu_custom_call.1
= control target key start
LH: loop header
LB: loop body
LE: loop exit
PB: predicated region body
PF: predicated region fallthrough
CT: control target
= control target key end

     0   :  { %12 = vsyncpa [#allocation5], 0  ;;  %s11175_s0 = inlined_call_operand.vmem [shape: f32[2,18,18,4], index: 0, kind: input, shape index: {}]   ;;  %s11176_s1 = inlined_call_operand.vmem [shape: f32[9,4,16], index: 1, kind: input, shape index: {}]   ;;  %s11177_s2 = inlined_call_operand.vmem [shape: f32[1,16], index: 2, kind: input, shape index: {}]   ;;  %s11178_s3 = inlined_call_operand.vmem [shape: f32[9,16,16], index: 3, kind: input, shape index: {}]   ;;  %s11179_s4 = inlined_call_operand.vmem [shape: f32[1,16], index: 4, kind: input, shape index: {}]   ;;  %s11180_s5 = inlined_call_operand.hbm [shape: f32[2,8,8,16], index: 5, kind: output, shape index: {0}]   ;;  %s11181_s6 = inlined_call_operand.hbm [shape: f32[2,16,16,16], index: 6, kind: output, shape index: {1}]  }
   0x1   :  { %14 = vsyncpa [#allocation5 + $0x1], 0 }
   0x2   :  { %15 = vsyncpa [#allocation7], 0 }
   0x3   :  { %17 = vsyncpa [#allocation7 + $0x1], 0  ;;  %s9037_s21 = smov 0   ;;  %s9039_s22 = smov 0  }
   0x4   :  { %s9041_s23 = smov 0   ;;  %s9043_s24 = smov 0  }
   0x5 LB: > { %s9058_s25 = sadd.s32 4294967295, %s8995_s24   ;;  %s6156_s26 = sadd.s32 4294967294, %s8995_s24   ;;  %s8995_s24 = sphi %s9043_s24, %s11503_s24   ;;  %s8991_s23 = sphi %s9041_s23, %s11502_s23   ;;  %s8987_s22 = sphi %s9039_s22, %s11501_s22   ;;  %s8983_s21 = sphi %s9037_s21, %s11500_s21  }
   0x6   : > { %s9062_s27 = sadd.s32 1, %s8995_s24   ;;  %s140_s28 = sadd.s32 1, %s8991_s23 }
   0x7   : > { %s137_s29 = ssub.s32 %s8995_s24, %s9062_s27  ;;  %p150_p0 = scmp.ne.s32.totalorder %s8991_s23, %s8987_s22 }
   0x8   : > { %p138_p1 = scmp.eq.s32.totalorder %s137_s29, 0  ;;  %p151_p2 = scmp.eq.s32.totalorder %s9058_s25, 1 }
   0x9   : > { %p156_p3 = scmp.ne.s32.totalorder %s8987_s22, %s8983_s21  ;;  %p157_p4 = scmp.eq.s32.totalorder %s6156_s26, 1 }
   0xa   : > { %s9073_s30 = scalar_select %p138_p1, %s8991_s23, %s140_s28  }
   0xb   : > { %p9075_p5 = por %p151_p2, %p150_p0  ;;  %p9079_p6 = por %p157_p4, %p156_p3 }
   0xc   : > { %p6159_p7 = scmp.ge.s32.totalorder %s8995_s24, 1  ;;  %p221_p8 = scmp.lt.s32.totalorder %s8995_s24, 3 }
   0xe   : > { %p222_p9 = pnand %p6159_p7, %p221_p8 }
  0x10   : > { %225 = sbr.rel (%p222_p9) target bundleno = 1595 (0x63b), region = 40 }
  0x17   : > { %v6163_v0 = vld [vmem:[%s11176_s1 + $0x4] sm:$0xf]  ;;  %vm515_vm0 = vcmask 1043456   ;;  %p256_p10 = scmp.lt.s32.totalorder %s9058_s25, 1  ;;  %v415_v1 = vld [vmem:[%s11176_s1] sm:$0xf] }
  0x18   : > { %7387 = vmatprep.subr.msk.mxu0 %vm515_vm0, %v6163_v0  ;;  %vm418_vm1 = vcmask 31744   ;;  %v9110_v5 = vld [vmem:[%s11176_s1 + $0x8] sm:$0xf]  ;;  %v9272_v38 = vld [vmem:[%s11176_s1 + $0xc] sm:$0xf]  ;;  %vm261_vm2 = vcmask 130048  }
  0x19   : > { %7388 = vmatpush3.msk.msra.mxu0 %vm515_vm0, %v6163_v0  ;;  %s257_s13 = scalar_select %p256_p10, %s9058_s25, 1  ;;  %vm264_vm3 = vcmask 123904   ;;  %vm270_vm4 = vcmask 122880  }
  0x1a   : > { %7437 = vmatprep.subr.msk.mxu0 %vm515_vm0, %v415_v1  ;;  %s10945_s10 = sand.u32 1, %s8987_s22   ;;  %s6783_s18 = sshll.u32 %s9058_s25, 12 }
  0x1b   : > { %s8853_s14 = smul.u32 432, %s257_s13  ;;  %s6161_s13 = sshll.u32 %s10945_s10, 8 }
  0x1c   : > { %s6160_s15 = sshll.u32 %s10945_s10, 6  ;;  %s11081_s26 = scalar_lea.hbm %s11181_s6, %s6783_s18 }
  0x1d   : > { %s9099_s17 = scalar_lea.vmem %s11175_s0, %s8853_s14  ;;  %s10955_s14 = scalar_lea.vmem [#allocation6], %s6161_s13 }
  0x1e   : > { %v343_v2 = vld [vmem:[%s9099_s17 + $0x1] sm:$0xff]  ;;  %v344_v3 = vld [vmem:[%s9099_s17 + $0x9] sm:$0xff]  ;;  %v9104_v4 = vld [vmem:[%s9099_s17 + $0x19] sm:$0xff]  ;;  %s10992_s16 = scalar_lea.vmem [#allocation4], %s6160_s15  ;;  %s6062_s19 = sshll.u32 %s10955_s14, 4  ;;  %s11083_s19 = int_to_ptr.vmem [resolvable:$true] %s6062_s19 }
  0x1f   : > { %7389 = vmatprep.mubr.msk.f32.mxu0 %vm418_vm1, %v343_v2  ;;  %v9117_v6 = vld [vmem:[%s9099_s17 + $0x21] sm:$0xff]  ;;  %v9120_v7 = vld [vmem:[%s9099_s17 + $0x31] sm:$0xff]  ;;  %v9129_v8 = vld [vmem:[%s9099_s17 + $0x39] sm:$0xff]  ;;  %s6033_s28 = scalar_lea.sflag [#allocation7], %s10945_s10  ;;  %s8901_s29 = scalar_lea.vmem %s11083_s19, 4096 }
  0x20   : > { %7390 = vmatmul.mubr.msk.f32.vlgmr.msra.gmra.mrb[0].mxu0 %vm418_vm1, %v344_v3  ;;  %v9132_v9 = vld [vmem:[%s9099_s17 + $0x49] sm:$0xff]  ;;  %v9139_v10 = vld [vmem:[%s9099_s17 + $0x51] sm:$0xff]  ;;  %v9142_v11 = vld [vmem:[%s9099_s17 + $0x61] sm:$0xff]  ;;  %p8902_p11 = scmp.ne.s32.totalorder %s11083_s19, %s8901_s29  ;;  %s8998_s9 = smov [#allocation6]  }
  0x21   : > { %7438 = vmatpush3.msk.msra.mxu0 %vm515_vm0, %v415_v1  ;;  %7392 = vmatprep.mubr.msk.f32.mxu0 %vm418_vm1, %v9104_v4  ;;  %v9149_v12 = vld [vmem:[%s9099_s17 + $0x69] sm:$0xff]  ;;  %v9152_v13 = vld [vmem:[%s9099_s17 + $0x79] sm:$0xff]  ;;  %v9159_v14 = vld [vmem:[%s9099_s17 + $0x81] sm:$0xff]  ;;  %s8905_s11 = sshll.u32 %s8998_s9, 4  ;;  %s8906_s11 = int_to_ptr.vmem [resolvable:$false] %s8905_s11 }
  0x22   : > { %7487 = vmatprep.subr.msk.mxu0 %vm515_vm0, %v9110_v5  ;;  %v9162_v15 = vld [vmem:[%s9099_s17 + $0x91] sm:$0xff]  ;;  %v9169_v16 = vld [vmem:[%s9099_s17 + $0x99] sm:$0xff]  ;;  %v9172_v17 = vld [vmem:[%s9099_s17 + $0xa9] sm:$0xff]  ;;  %p8903_p12 = pnand %p8902_p11, %p9075_p5  ;;  %s8907_s12 = scalar_lea.vmem %s8906_s11, 8192 }
  0x23   : > { %v9179_v18 = vld [vmem:[%s9099_s17 + $0xb1] sm:$0xff]  ;;  %v9182_v19 = vld [vmem:[%s9099_s17 + $0xc1] sm:$0xff]  ;;  %v9189_v20 = vld [vmem:[%s9099_s17 + $0xc9] sm:$0xff]  ;;  %p8908_p0 = scmp.lt.s32.totalorder %s11083_s19, %s8906_s11  ;;  %p8909_p1 = scmp.lt.s32.totalorder %s8907_s12, %s8901_s29 }
  0x24   : > { %7393 = vmatmul.mubr.msk.f32.gmra.mrb[2].mxu0 %vm418_vm1, %v9117_v6  ;;  %v9192_v21 = vld [vmem:[%s9099_s17 + $0xd9] sm:$0xff]  ;;  %v9199_v22 = vld [vmem:[%s9099_s17 + $0xe1] sm:$0xff]  ;;  %v9202_v23 = vld [vmem:[%s9099_s17 + $0xf1] sm:$0xff]  ;;  %p8904_p13 = pneg %p8903_p12 }
  0x25   : > { %7395 = vmatprep.mubr.msk.f32.mxu0 %vm418_vm1, %v9120_v7  ;;  %v9209_v24 = vld [vmem:[%s9099_s17 + $0xf9] sm:$0xff]  ;;  %v9212_v25 = vld [vmem:[%s9099_s17 + $0x109] sm:$0xff]  ;;  %v9219_v26 = vld [vmem:[%s9099_s17 + $0x111] sm:$0xff]  ;;  %p8910_p2 = por %p8909_p1, %p8908_p0 }
  0x26   : > { %v9222_v27 = vld [vmem:[%s9099_s17 + $0x121] sm:$0xff]  ;;  %v9229_v28 = vld [vmem:[%s9099_s17 + $0x129] sm:$0xff]  ;;  %v9232_v29 = vld [vmem:[%s9099_s17 + $0x139] sm:$0xff] }
  0x27   : > { %11312 = vst [vmem:[#allocation10_spill] sm:$0xff] %v9222_v27  ;;  %11313 = vst [vmem:[#allocation11_spill] sm:$0xff] %v9229_v28  ;;  %v9239_v30 = vld [vmem:[%s9099_s17 + $0x141] sm:$0xff]  ;;  %v9242_v31 = vld [vmem:[%s9099_s17 + $0x151] sm:$0xff]  ;;  %p8911_p3 = pnand %p8910_p2, %p8904_p13 }
  0x28   : > { %7396 = vmatmul.mubr.msk.f32.gmra.mrb[4].mxu0 %vm418_vm1, %v9129_v8  ;;  %11314 = vst [vmem:[#allocation12_spill] sm:$0xff] %v9232_v29  ;;  %11315 = vst [vmem:[#allocation13_spill] sm:$0xff] %v9239_v30  ;;  %v9249_v32 = vld [vmem:[%s9099_s17 + $0x159] sm:$0xff]  ;;  %v9252_v33 = vld [vmem:[%s9099_s17 + $0x169] sm:$0xff] }
  0x29   : > { %7398 = vmatprep.mubr.msk.f32.mxu0 %vm418_vm1, %v9132_v9  ;;  %11316 = vst [vmem:[#allocation14_spill] sm:$0xff] %v9242_v31  ;;  %11317 = vst [vmem:[#allocation15_spill] sm:$0xff] %v9249_v32  ;;  %v9259_v34 = vld [vmem:[%s9099_s17 + $0x171] sm:$0xff]  ;;  %v307_v35 = vld [vmem:[%s9099_s17] sm:$0xff] }
  0x2a   : > { %11318 = vst [vmem:[#allocation16_spill] sm:$0xff] %v9252_v33  ;;  %11319 = vst [vmem:[#allocation17_spill] sm:$0xff] %v9259_v34  ;;  %v308_v36 = vld [vmem:[%s9099_s17 + $0x8] sm:$0xff]  ;;  %v9267_v37 = vld [vmem:[%s9099_s17 + $0x18] sm:$0xff] }
  0x2b   : > { %v9280_v39 = vld [vmem:[%s9099_s17 + $0x20] sm:$0xff]  ;;  %v9283_v40 = vld [vmem:[%s9099_s17 + $0x30] sm:$0xff]  ;;  %v9292_v41 = vld [vmem:[%s9099_s17 + $0x38] sm:$0xff] }
  0x2c   : > { %7399 = vmatmul.mubr.msk.f32.gmra.mrb[6].mxu0 %vm418_vm1, %v9139_v10  ;;  %v9295_v42 = vld [vmem:[%s9099_s17 + $0x48] sm:$0xff]  ;;  %v9302_v43 = vld [vmem:[%s9099_s17 + $0x50] sm:$0xff]  ;;  %v9305_v44 = vld [vmem:[%s9099_s17 + $0x60] sm:$0xff] }
  0x2d   : > { %7401 = vmatprep.mubr.msk.f32.mxu0 %vm418_vm1, %v9142_v11  ;;  %v9312_v45 = vld [vmem:[%s9099_s17 + $0x68] sm:$0xff]  ;;  %v9315_v46 = vld [vmem:[%s9099_s17 + $0x78] sm:$0xff]  ;;  %v9322_v47 = vld [vmem:[%s9099_s17 + $0x80] sm:$0xff] }
  0x2e   : > { %v9325_v48 = vld [vmem:[%s9099_s17 + $0x90] sm:$0xff]  ;;  %v9332_v49 = vld [vmem:[%s9099_s17 + $0x98] sm:$0xff]  ;;  %v9335_v50 = vld [vmem:[%s9099_s17 + $0xa8] sm:$0xff] }
  0x2f   : > { %v9342_v51 = vld [vmem:[%s9099_s17 + $0xb0] sm:$0xff]  ;;  %v9345_v52 = vld [vmem:[%s9099_s17 + $0xc0] sm:$0xff]  ;;  %v9352_v53 = vld [vmem:[%s9099_s17 + $0xc8] sm:$0xff] }
  0x30   : > { %7402 = vmatmul.mubr.msk.f32.gmra.mrb[8].mxu0 %vm418_vm1, %v9149_v12  ;;  %v9355_v54 = vld [vmem:[%s9099_s17 + $0xd8] sm:$0xff]  ;;  %v9362_v55 = vld [vmem:[%s9099_s17 + $0xe0] sm:$0xff]  ;;  %v9365_v56 = vld [vmem:[%s9099_s17 + $0xf0] sm:$0xff] }
  0x31   : > { %7404 = vmatprep.mubr.msk.f32.mxu0 %vm418_vm1, %v9152_v13  ;;  %v9372_v57 = vld [vmem:[%s9099_s17 + $0xf8] sm:$0xff]  ;;  %v9375_v58 = vld [vmem:[%s9099_s17 + $0x108] sm:$0xff]  ;;  %v9382_v59 = vld [vmem:[%s9099_s17 + $0x110] sm:$0xff] }
  0x32   : > { %v9385_v60 = vld [vmem:[%s9099_s17 + $0x120] sm:$0xff]  ;;  %v9392_v61 = vld [vmem:[%s9099_s17 + $0x128] sm:$0xff]  ;;  %v9395_v62 = vld [vmem:[%s9099_s17 + $0x138] sm:$0xff] }
  0x33   : > { %v9402_v63 = vld [vmem:[%s9099_s17 + $0x140] sm:$0xff]  ;;  %v9405_v0 = vld [vmem:[%s9099_s17 + $0x150] sm:$0xff]  ;;  %v9412_v1 = vld [vmem:[%s9099_s17 + $0x158] sm:$0xff] }
  0x34   : > { %7405 = vmatmul.mubr.msk.f32.gmra.mrb[10].mxu0 %vm418_vm1, %v9159_v14  ;;  %v9415_v2 = vld [vmem:[%s9099_s17 + $0x168] sm:$0xff]  ;;  %v9422_v3 = vld [vmem:[%s9099_s17 + $0x170] sm:$0xff] }
  0x35   : > { %7407 = vmatprep.mubr.msk.f32.mxu0 %vm418_vm1, %v9162_v15 }
  0x38   : > { %7408 = vmatmul.mubr.msk.f32.gmra.mrb[12].mxu0 %vm418_vm1, %v9169_v16 }
  0x39   : > { %7410 = vmatprep.mubr.msk.f32.mxu0 %vm418_vm1, %v9172_v17 }
  0x3c   : > { %7411 = vmatmul.mubr.msk.f32.gmra.mrb[14].mxu0 %vm418_vm1, %v9179_v18 }
  0x3d   : > { %7413 = vmatprep.mubr.msk.f32.mxu0 %vm418_vm1, %v9182_v19 }
  0x40   : > { %7414 = vmatmul.mubr.msk.f32.gmra.mrb[16].mxu0 %vm418_vm1, %v9189_v20 }
  0x41   : > { %7416 = vmatprep.mubr.msk.f32.mxu0 %vm418_vm1, %v9192_v21 }
  0x44   : > { %7417 = vmatmul.mubr.msk.f32.gmra.mrb[18].mxu0 %vm418_vm1, %v9199_v22 }
  0x45   : > { %7419 = vmatprep.mubr.msk.f32.mxu0 %vm418_vm1, %v9202_v23 }
  0x48   : > { %7420 = vmatmul.mubr.msk.f32.gmra.mrb[20].mxu0 %vm418_vm1, %v9209_v24 }
  0x49   : > { %7422 = vmatprep.mubr.msk.f32.mxu0 %vm418_vm1, %v9212_v25 }
  0x4c   : > { %7423 = vmatmul.mubr.msk.f32.gmra.mrb[22].mxu0 %vm418_vm1, %v9219_v26 }
  0x4d   : > { %7425 = vmatprep.mubr.msk.f32.mxu0 %vm418_vm1, %v9222_v27 }
  0x50   : > { %7426 = vmatmul.mubr.msk.f32.gmra.mrb[24].mxu0 %vm418_vm1, %v9229_v28 }
  0x51   : > { %7428 = vmatprep.mubr.msk.f32.mxu0 %vm418_vm1, %v9232_v29 }
  0x54   : > { %7429 = vmatmul.mubr.msk.f32.gmra.mrb[26].mxu0 %vm418_vm1, %v9239_v30 }
  0x55   : > { %7431 = vmatprep.mubr.msk.f32.mxu0 %vm418_vm1, %v9242_v31 }
  0x58   : > { %7432 = vmatmul.mubr.msk.f32.gmra.mrb[28].mxu0 %vm418_vm1, %v9249_v32  ;;  %v9468_v32 = vld [vmem:[%s9099_s17 + $0x62] sm:$0xff] }
  0x59   : > { %7434 = vmatprep.mubr.msk.f32.mxu0 %vm418_vm1, %v9252_v33  ;;  %v9446_v33 = vld [vmem:[%s9099_s17 + $0x32] sm:$0xff]  ;;  %11326 = vst [vmem:[#allocation24_spill] sm:$0xff] %v9468_v32 }
  0x5a   : > { %11322 = vst [vmem:[#allocation20_spill] sm:$0xff] %v9446_v33 }
  0x5c   : > { %7435 = vmatmul.mubr.msk.f32.gmra.mrb[30].mxu0 %vm418_vm1, %v9259_v34  ;;  %v9435_v34 = vld [vmem:[%s11176_s1 + $0x10] sm:$0xf] }
  0x5d   : > { %7439 = vmatprep.mubr.msk.f32.mxu0 %vm418_vm1, %v307_v35  ;;  %v380_v35 = vld [vmem:[%s9099_s17 + $0xa] sm:$0xff] }
  0x60   : > { %7440 = vmatmul.mubr.msk.f32.vlgmr.msra.gmra.mrb[0].mxu0 %vm418_vm1, %v308_v36  ;;  %v9430_v36 = vld [vmem:[%s9099_s17 + $0x1a] sm:$0xff] }
  0x61   : > { %7488 = vmatpush3.msk.msra.mxu0 %vm515_vm0, %v9110_v5  ;;  %7442 = vmatprep.mubr.msk.f32.mxu0 %vm418_vm1, %v9267_v37  ;;  %v379_v5 = vld [vmem:[%s9099_s17 + $0x2] sm:$0xff]  ;;  %11320 = vst [vmem:[#allocation18_spill] sm:$0xff] %v9430_v36 }
  0x62   : > { %7537 = vmatprep.subr.msk.mxu0 %vm515_vm0, %v9272_v38 }
  0x64   : > { %7443 = vmatmul.mubr.msk.f32.gmra.mrb[2].mxu0 %vm418_vm1, %v9280_v39 }
  0x65   : > { %7445 = vmatprep.mubr.msk.f32.mxu0 %vm418_vm1, %v9283_v40 }
  0x68   : > { %7446 = vmatmul.mubr.msk.f32.gmra.mrb[4].mxu0 %vm418_vm1, %v9292_v41 }
  0x69   : > { %7448 = vmatprep.mubr.msk.f32.mxu0 %vm418_vm1, %v9295_v42 }
  0x6c   : > { %7449 = vmatmul.mubr.msk.f32.gmra.mrb[6].mxu0 %vm418_vm1, %v9302_v43 }
  0x6d   : > { %7451 = vmatprep.mubr.msk.f32.mxu0 %vm418_vm1, %v9305_v44 }
  0x70   : > { %7452 = vmatmul.mubr.msk.f32.gmra.mrb[8].mxu0 %vm418_vm1, %v9312_v45 }
  0x71   : > { %7454 = vmatprep.mubr.msk.f32.mxu0 %vm418_vm1, %v9315_v46 }
  0x74   : > { %7455 = vmatmul.mubr.msk.f32.gmra.mrb[10].mxu0 %vm418_vm1, %v9322_v47 }
  0x75   : > { %7457 = vmatprep.mubr.msk.f32.mxu0 %vm418_vm1, %v9325_v48 }
  0x78   : > { %7458 = vmatmul.mubr.msk.f32.gmra.mrb[12].mxu0 %vm418_vm1, %v9332_v49 }
  0x79   : > { %7460 = vmatprep.mubr.msk.f32.mxu0 %vm418_vm1, %v9335_v50 }
  0x7c   : > { %7461 = vmatmul.mubr.msk.f32.gmra.mrb[14].mxu0 %vm418_vm1, %v9342_v51 }
  0x7d   : > { %7463 = vmatprep.mubr.msk.f32.mxu0 %vm418_vm1, %v9345_v52 }
  0x80   : > { %7464 = vmatmul.mubr.msk.f32.gmra.mrb[16].mxu0 %vm418_vm1, %v9352_v53 }
  0x81   : > { %7466 = vmatprep.mubr.msk.f32.mxu0 %vm418_vm1, %v9355_v54 }
  0x84   : > { %7467 = vmatmul.mubr.msk.f32.gmra.mrb[18].mxu0 %vm418_vm1, %v9362_v55 }
  0x85   : > { %7469 = vmatprep.mubr.msk.f32.mxu0 %vm418_vm1, %v9365_v56 }
  0x88   : > { %7470 = vmatmul.mubr.msk.f32.gmra.mrb[20].mxu0 %vm418_vm1, %v9372_v57 }
  0x89   : > { %7472 = vmatprep.mubr.msk.f32.mxu0 %vm418_vm1, %v9375_v58 }
  0x8c   : > { %7473 = vmatmul.mubr.msk.f32.gmra.mrb[22].mxu0 %vm418_vm1, %v9382_v59 }
  0x8d   : > { %7475 = vmatprep.mubr.msk.f32.mxu0 %vm418_vm1, %v9385_v60 }
  0x90   : > { %7476 = vmatmul.mubr.msk.f32.gmra.mrb[24].mxu0 %vm418_vm1, %v9392_v61 }
  0x91   : > { %7478 = vmatprep.mubr.msk.f32.mxu0 %vm418_vm1, %v9395_v62 }
  0x94   : > { %7479 = vmatmul.mubr.msk.f32.gmra.mrb[26].mxu0 %vm418_vm1, %v9402_v63 }
  0x95   : > { %7481 = vmatprep.mubr.msk.f32.mxu0 %vm418_vm1, %v9405_v0 }
  0x98   : > { %7482 = vmatmul.mubr.msk.f32.gmra.mrb[28].mxu0 %vm418_vm1, %v9412_v1 }
  0x99   : > { %7484 = vmatprep.mubr.msk.f32.mxu0 %vm418_vm1, %v9415_v2 }
  0x9c   : > { %7485 = vmatmul.mubr.msk.f32.gmra.mrb[30].mxu0 %vm418_vm1, %v9422_v3 }
  0x9d   : > { %7489 = vmatprep.mubr.msk.f32.mxu0 %vm418_vm1, %v379_v5  ;;  %v9443_v5 = vld [vmem:[%s9099_s17 + $0x22] sm:$0xff] }
  0x9e   : > { %11321 = vst [vmem:[#allocation19_spill] sm:$0xff] %v9443_v5 }
  0xa0   : > { %7490 = vmatmul.mubr.msk.f32.vlgmr.msra.gmra.mrb[0].mxu0 %vm418_vm1, %v380_v35  ;;  %v9458_v35 = vld [vmem:[%s9099_s17 + $0x4a] sm:$0xff] }
  0xa1   : > { %7538 = vmatpush3.msk.msra.mxu0 %vm515_vm0, %v9272_v38  ;;  %7492 = vmatprep.mubr.msk.f32.mxu0 %vm418_vm1, %v9430_v36  ;;  %v9455_v38 = vld [vmem:[%s9099_s17 + $0x3a] sm:$0xff]  ;;  %11324 = vst [vmem:[#allocation22_spill] sm:$0xff] %v9458_v35  ;;  %v9465_v36 = vld [vmem:[%s9099_s17 + $0x52] sm:$0xff] }
  0xa2   : > { %7587 = vmatprep.subr.msk.mxu0 %vm515_vm0, %v9435_v34  ;;  %11323 = vst [vmem:[#allocation21_spill] sm:$0xff] %v9455_v38  ;;  %11325 = vst [vmem:[#allocation23_spill] sm:$0xff] %v9465_v36 }
  0xa4   : > { %7493 = vmatmul.mubr.msk.f32.gmra.mrb[2].mxu0 %vm418_vm1, %v9443_v5  ;;  %v9478_v5 = vld [vmem:[%s9099_s17 + $0x7a] sm:$0xff] }
  0xa5   : > { %7495 = vmatprep.mubr.msk.f32.mxu0 %vm418_vm1, %v9446_v33  ;;  %v9475_v33 = vld [vmem:[%s9099_s17 + $0x6a] sm:$0xff]  ;;  %11328 = vst [vmem:[#allocation26_spill] sm:$0xff] %v9478_v5 }
  0xa6   : > { %11327 = vst [vmem:[#allocation25_spill] sm:$0xff] %v9475_v33 }
  0xa8   : > { %7496 = vmatmul.mubr.msk.f32.gmra.mrb[4].mxu0 %vm418_vm1, %v9455_v38  ;;  %v9488_v38 = vld [vmem:[%s9099_s17 + $0x92] sm:$0xff] }
  0xa9   : > { %7498 = vmatprep.mubr.msk.f32.mxu0 %vm418_vm1, %v9458_v35  ;;  %v9485_v35 = vld [vmem:[%s9099_s17 + $0x82] sm:$0xff]  ;;  %11330 = vst [vmem:[#allocation28_spill] sm:$0xff] %v9488_v38 }
  0xaa   : > { %11329 = vst [vmem:[#allocation27_spill] sm:$0xff] %v9485_v35 }
  0xac   : > { %7499 = vmatmul.mubr.msk.f32.gmra.mrb[6].mxu0 %vm418_vm1, %v9465_v36  ;;  %v9498_v36 = vld [vmem:[%s9099_s17 + $0xaa] sm:$0xff] }
  0xad   : > { %7501 = vmatprep.mubr.msk.f32.mxu0 %vm418_vm1, %v9468_v32  ;;  %v9495_v32 = vld [vmem:[%s9099_s17 + $0x9a] sm:$0xff]  ;;  %11332 = vst [vmem:[#allocation30_spill] sm:$0xff] %v9498_v36 }
  0xae   : > { %11331 = vst [vmem:[#allocation29_spill] sm:$0xff] %v9495_v32 }
  0xb0   : > { %7502 = vmatmul.mubr.msk.f32.gmra.mrb[8].mxu0 %vm418_vm1, %v9475_v33  ;;  %v9508_v33 = vld [vmem:[%s9099_s17 + $0xc2] sm:$0xff] }
  0xb1   : > { %7504 = vmatprep.mubr.msk.f32.mxu0 %vm418_vm1, %v9478_v5  ;;  %v9505_v5 = vld [vmem:[%s9099_s17 + $0xb2] sm:$0xff]  ;;  %11334 = vst [vmem:[#allocation32_spill] sm:$0xff] %v9508_v33 }
  0xb2   : > { %11333 = vst [vmem:[#allocation31_spill] sm:$0xff] %v9505_v5 }
  0xb4   : > { %7505 = vmatmul.mubr.msk.f32.gmra.mrb[10].mxu0 %vm418_vm1, %v9485_v35  ;;  %v9518_v35 = vld [vmem:[%s9099_s17 + $0xda] sm:$0xff] }
  0xb5   : > { %7507 = vmatprep.mubr.msk.f32.mxu0 %vm418_vm1, %v9488_v38  ;;  %v9515_v38 = vld [vmem:[%s9099_s17 + $0xca] sm:$0xff]  ;;  %11336 = vst [vmem:[#allocation34_spill] sm:$0xff] %v9518_v35 }
  0xb6   : > { %11335 = vst [vmem:[#allocation33_spill] sm:$0xff] %v9515_v38 }
  0xb8   : > { %7508 = vmatmul.mubr.msk.f32.gmra.mrb[12].mxu0 %vm418_vm1, %v9495_v32  ;;  %v9528_v32 = vld [vmem:[%s9099_s17 + $0xf2] sm:$0xff] }
  0xb9   : > { %7510 = vmatprep.mubr.msk.f32.mxu0 %vm418_vm1, %v9498_v36  ;;  %v9525_v36 = vld [vmem:[%s9099_s17 + $0xe2] sm:$0xff]  ;;  %11338 = vst [vmem:[#allocation36_spill] sm:$0xff] %v9528_v32 }
  0xba   : > { %11337 = vst [vmem:[#allocation35_spill] sm:$0xff] %v9525_v36 }
  0xbc   : > { %7511 = vmatmul.mubr.msk.f32.gmra.mrb[14].mxu0 %vm418_vm1, %v9505_v5  ;;  %v9538_v5 = vld [vmem:[%s9099_s17 + $0x10a] sm:$0xff] }
  0xbd   : > { %7513 = vmatprep.mubr.msk.f32.mxu0 %vm418_vm1, %v9508_v33  ;;  %v9535_v33 = vld [vmem:[%s9099_s17 + $0xfa] sm:$0xff]  ;;  %11340 = vst [vmem:[#allocation38_spill] sm:$0xff] %v9538_v5 }
  0xbe   : > { %11339 = vst [vmem:[#allocation37_spill] sm:$0xff] %v9535_v33 }
  0xc0   : > { %7514 = vmatmul.mubr.msk.f32.gmra.mrb[16].mxu0 %vm418_vm1, %v9515_v38  ;;  %v9548_v38 = vld [vmem:[%s9099_s17 + $0x122] sm:$0xff] }
  0xc1   : > { %7516 = vmatprep.mubr.msk.f32.mxu0 %vm418_vm1, %v9518_v35  ;;  %v9545_v35 = vld [vmem:[%s9099_s17 + $0x112] sm:$0xff]  ;;  %11342 = vst [vmem:[#allocation40_spill] sm:$0xff] %v9548_v38 }
  0xc2   : > { %11341 = vst [vmem:[#allocation39_spill] sm:$0xff] %v9545_v35 }
  0xc4   : > { %7517 = vmatmul.mubr.msk.f32.gmra.mrb[18].mxu0 %vm418_vm1, %v9525_v36  ;;  %v9558_v36 = vld [vmem:[%s9099_s17 + $0x13a] sm:$0xff] }
  0xc5   : > { %7519 = vmatprep.mubr.msk.f32.mxu0 %vm418_vm1, %v9528_v32  ;;  %v9555_v32 = vld [vmem:[%s9099_s17 + $0x12a] sm:$0xff]  ;;  %11343 = vst [vmem:[#allocation41_spill] sm:$0xff] %v9558_v36 }
  0xc8   : > { %7520 = vmatmul.mubr.msk.f32.gmra.mrb[20].mxu0 %vm418_vm1, %v9535_v33  ;;  %v9568_v33 = vld [vmem:[%s9099_s17 + $0x152] sm:$0xff] }
  0xc9   : > { %7522 = vmatprep.mubr.msk.f32.mxu0 %vm418_vm1, %v9538_v5  ;;  %v9565_v5 = vld [vmem:[%s9099_s17 + $0x142] sm:$0xff]  ;;  %11344 = vst [vmem:[#allocation42_spill] sm:$0xff] %v9568_v33 }
  0xcc   : > { %7523 = vmatmul.mubr.msk.f32.gmra.mrb[22].mxu0 %vm418_vm1, %v9545_v35  ;;  %v9578_v35 = vld [vmem:[%s9099_s17 + $0x16a] sm:$0xff] }
  0xcd   : > { %7525 = vmatprep.mubr.msk.f32.mxu0 %vm418_vm1, %v9548_v38  ;;  %v9575_v38 = vld [vmem:[%s9099_s17 + $0x15a] sm:$0xff]  ;;  %11345 = vst [vmem:[#allocation43_spill] sm:$0xff] %v9578_v35 }
  0xd0   : > { %7526 = vmatmul.mubr.msk.f32.gmra.mrb[24].mxu0 %vm418_vm1, %v9555_v32 }
  0xd1   : > { %7528 = vmatprep.mubr.msk.f32.mxu0 %vm418_vm1, %v9558_v36  ;;  %v9585_v36 = vld [vmem:[%s9099_s17 + $0x172] sm:$0xff] }
  0xd4   : > { %7529 = vmatmul.mubr.msk.f32.gmra.mrb[26].mxu0 %vm418_vm1, %v9565_v5 }
  0xd5   : > { %7531 = vmatprep.mubr.msk.f32.mxu0 %vm418_vm1, %v9568_v33  ;;  %v6332_v33 = vld [vmem:[%s11176_s1 + $0x14] sm:$0xf] }
  0xd8   : > { %7532 = vmatmul.mubr.msk.f32.gmra.mrb[28].mxu0 %vm418_vm1, %v9575_v38 }
  0xd9   : > { %7534 = vmatprep.mubr.msk.f32.mxu0 %vm418_vm1, %v9578_v35 }
  0xdc   : > { %7535 = vmatmul.mubr.msk.f32.gmra.mrb[30].mxu0 %vm418_vm1, %v9585_v36 }
  0xdd   : > { %7539 = vmatprep.mubr.msk.f32.mxu0 %vm418_vm1, %v9267_v37  ;;  %v9661_v37 = vld [vmem:[%s9099_s17 + $0x188] sm:$0xff] }
  0xe0   : > { %7540 = vmatmul.mubr.msk.f32.vlgmr.msra.gmra.mrb[0].mxu0 %vm418_vm1, %v9280_v39  ;;  %v6366_v39 = vld [vmem:[%s11176_s1 + $0x18] sm:$0xf] }
  0xe1   : > { %7588 = vmatpush3.msk.msra.mxu0 %vm515_vm0, %v9435_v34  ;;  %7542 = vmatprep.mubr.msk.f32.mxu0 %vm418_vm1, %v9283_v40  ;;  %v9654_v34 = vld [vmem:[%s9099_s17 + $0x180] sm:$0xff] }
  0xe2   : > { %7637 = vmatprep.subr.msk.mxu0 %vm515_vm0, %v6332_v33 }
  0xe4   : > { %7543 = vmatmul.mubr.msk.f32.gmra.mrb[2].mxu0 %vm418_vm1, %v9292_v41 }
  0xe5   : > { %7545 = vmatprep.mubr.msk.f32.mxu0 %vm418_vm1, %v9295_v42 }
  0xe8   : > { %7546 = vmatmul.mubr.msk.f32.gmra.mrb[4].mxu0 %vm418_vm1, %v9302_v43 }
  0xe9   : > { %7548 = vmatprep.mubr.msk.f32.mxu0 %vm418_vm1, %v9305_v44 }
  0xec   : > { %7549 = vmatmul.mubr.msk.f32.gmra.mrb[6].mxu0 %vm418_vm1, %v9312_v45 }
  0xed   : > { %7551 = vmatprep.mubr.msk.f32.mxu0 %vm418_vm1, %v9315_v46 }
  0xf0   : > { %7552 = vmatmul.mubr.msk.f32.gmra.mrb[8].mxu0 %vm418_vm1, %v9322_v47 }
  0xf1   : > { %7554 = vmatprep.mubr.msk.f32.mxu0 %vm418_vm1, %v9325_v48 }
  0xf4   : > { %7555 = vmatmul.mubr.msk.f32.gmra.mrb[10].mxu0 %vm418_vm1, %v9332_v49 }
  0xf5   : > { %7557 = vmatprep.mubr.msk.f32.mxu0 %vm418_vm1, %v9335_v50 }
  0xf8   : > { %7558 = vmatmul.mubr.msk.f32.gmra.mrb[12].mxu0 %vm418_vm1, %v9342_v51 }
  0xf9   : > { %7560 = vmatprep.mubr.msk.f32.mxu0 %vm418_vm1, %v9345_v52 }
  0xfc   : > { %7561 = vmatmul.mubr.msk.f32.gmra.mrb[14].mxu0 %vm418_vm1, %v9352_v53 }
  0xfd   : > { %7563 = vmatprep.mubr.msk.f32.mxu0 %vm418_vm1, %v9355_v54 }
 0x100   : > { %7564 = vmatmul.mubr.msk.f32.gmra.mrb[16].mxu0 %vm418_vm1, %v9362_v55 }
 0x101   : > { %7566 = vmatprep.mubr.msk.f32.mxu0 %vm418_vm1, %v9365_v56 }
 0x104   : > { %7567 = vmatmul.mubr.msk.f32.gmra.mrb[18].mxu0 %vm418_vm1, %v9372_v57 }
 0x105   : > { %7569 = vmatprep.mubr.msk.f32.mxu0 %vm418_vm1, %v9375_v58 }
 0x108   : > { %7570 = vmatmul.mubr.msk.f32.gmra.mrb[20].mxu0 %vm418_vm1, %v9382_v59 }
 0x109   : > { %7572 = vmatprep.mubr.msk.f32.mxu0 %vm418_vm1, %v9385_v60 }
 0x10c   : > { %7573 = vmatmul.mubr.msk.f32.gmra.mrb[22].mxu0 %vm418_vm1, %v9392_v61 }
 0x10d   : > { %7575 = vmatprep.mubr.msk.f32.mxu0 %vm418_vm1, %v9395_v62 }
 0x110   : > { %7576 = vmatmul.mubr.msk.f32.gmra.mrb[24].mxu0 %vm418_vm1, %v9402_v63 }
 0x111   : > { %7578 = vmatprep.mubr.msk.f32.mxu0 %vm418_vm1, %v9405_v0 }
 0x114   : > { %7579 = vmatmul.mubr.msk.f32.gmra.mrb[26].mxu0 %vm418_vm1, %v9412_v1 }
 0x115   : > { %7581 = vmatprep.mubr.msk.f32.mxu0 %vm418_vm1, %v9415_v2 }
 0x118   : > { %7582 = vmatmul.mubr.msk.f32.gmra.mrb[28].mxu0 %vm418_vm1, %v9422_v3 }
 0x119   : > { %7584 = vmatprep.mubr.msk.f32.mxu0 %vm418_vm1, %v9654_v34 }
 0x11c   : > { %7585 = vmatmul.mubr.msk.f32.gmra.mrb[30].mxu0 %vm418_vm1, %v9661_v37 }
 0x11d   : > { %7589 = vmatprep.mubr.msk.f32.mxu0 %vm418_vm1, %v9104_v4  ;;  %v11346_v4 = vld [vmem:[#allocation15_spill] sm:$0xff] }
 0x120   : > { %7590 = vmatmul.mubr.msk.f32.vlgmr.msra.gmra.mrb[0].mxu0 %vm418_vm1, %v9117_v6  ;;  %v11347_v6 = vld [vmem:[#allocation16_spill] sm:$0xff] }
 0x121   : > { %7638 = vmatpush3.msk.msra.mxu0 %vm515_vm0, %v6332_v33  ;;  %7592 = vmatprep.mubr.msk.f32.mxu0 %vm418_vm1, %v9120_v7  ;;  %v9729_v33 = vld [vmem:[%s9099_s17 + $0x181] sm:$0xff] }
 0x122   : > { %7687 = vmatprep.subr.msk.mxu0 %vm515_vm0, %v6366_v39  ;;  %11348 = vst [vmem:[#allocation44_spill] sm:$0xff] %v9729_v33 }
 0x124   : > { %7593 = vmatmul.mubr.msk.f32.gmra.mrb[2].mxu0 %vm418_vm1, %v9129_v8 }
 0x125   : > { %7595 = vmatprep.mubr.msk.f32.mxu0 %vm418_vm1, %v9132_v9 }
 0x128   : > { %7596 = vmatmul.mubr.msk.f32.gmra.mrb[4].mxu0 %vm418_vm1, %v9139_v10 }
 0x129   : > { %7598 = vmatprep.mubr.msk.f32.mxu0 %vm418_vm1, %v9142_v11 }
 0x12c   : > { %7599 = vmatmul.mubr.msk.f32.gmra.mrb[6].mxu0 %vm418_vm1, %v9149_v12 }
 0x12d   : > { %7601 = vmatprep.mubr.msk.f32.mxu0 %vm418_vm1, %v9152_v13 }
 0x130   : > { %7602 = vmatmul.mubr.msk.f32.gmra.mrb[8].mxu0 %vm418_vm1, %v9159_v14 }
 0x131   : > { %7604 = vmatprep.mubr.msk.f32.mxu0 %vm418_vm1, %v9162_v15 }
 0x134   : > { %7605 = vmatmul.mubr.msk.f32.gmra.mrb[10].mxu0 %vm418_vm1, %v9169_v16 }
 0x135   : > { %7607 = vmatprep.mubr.msk.f32.mxu0 %vm418_vm1, %v9172_v17 }
 0x138   : > { %7608 = vmatmul.mubr.msk.f32.gmra.mrb[12].mxu0 %vm418_vm1, %v9179_v18 }
 0x139   : > { %7610 = vmatprep.mubr.msk.f32.mxu0 %vm418_vm1, %v9182_v19 }
 0x13c   : > { %7611 = vmatmul.mubr.msk.f32.gmra.mrb[14].mxu0 %vm418_vm1, %v9189_v20 }
 0x13d   : > { %7613 = vmatprep.mubr.msk.f32.mxu0 %vm418_vm1, %v9192_v21 }
 0x140   : > { %7614 = vmatmul.mubr.msk.f32.gmra.mrb[16].mxu0 %vm418_vm1, %v9199_v22 }
 0x141   : > { %7616 = vmatprep.mubr.msk.f32.mxu0 %vm418_vm1, %v9202_v23 }
 0x144   : > { %7617 = vmatmul.mubr.msk.f32.gmra.mrb[18].mxu0 %vm418_vm1, %v9209_v24 }
 0x145   : > { %7619 = vmatprep.mubr.msk.f32.mxu0 %vm418_vm1, %v9212_v25 }
 0x148   : > { %7620 = vmatmul.mubr.msk.f32.gmra.mrb[20].mxu0 %vm418_vm1, %v9219_v26 }
 0x149   : > { %7622 = vmatprep.mubr.msk.f32.mxu0 %vm418_vm1, %v9222_v27  ;;  %v11349_v27 = vld [vmem:[#allocation17_spill] sm:$0xff] }
 0x14c   : > { %7623 = vmatmul.mubr.msk.f32.gmra.mrb[22].mxu0 %vm418_vm1, %v9229_v28  ;;  %v11361_v28 = vld [vmem:[#allocation28_spill] sm:$0xff] }
 0x14d   : > { %7625 = vmatprep.mubr.msk.f32.mxu0 %vm418_vm1, %v9232_v29  ;;  %v9736_v29 = vld [vmem:[%s9099_s17 + $0x189] sm:$0xff] }
 0x14e   : > { %11350 = vst [vmem:[#allocation45_spill] sm:$0xff] %v9736_v29 }
 0x150   : > { %7626 = vmatmul.mubr.msk.f32.gmra.mrb[24].mxu0 %vm418_vm1, %v9239_v30  ;;  %v11357_v30 = vld [vmem:[#allocation24_spill] sm:$0xff] }
 0x151   : > { %7628 = vmatprep.mubr.msk.f32.mxu0 %vm418_vm1, %v9242_v31  ;;  %v11351_v31 = vld [vmem:[#allocation18_spill] sm:$0xff] }
 0x154   : > { %7629 = vmatmul.mubr.msk.f32.gmra.mrb[26].mxu0 %vm418_vm1, %v11346_v4  ;;  %v11352_v4 = vld [vmem:[#allocation19_spill] sm:$0xff] }
 0x155   : > { %7631 = vmatprep.mubr.msk.f32.mxu0 %vm418_vm1, %v11347_v6  ;;  %v6400_v6 = vld [vmem:[%s11176_s1 + $0x1c] sm:$0xf] }
 0x158   : > { %7632 = vmatmul.mubr.msk.f32.gmra.mrb[28].mxu0 %vm418_vm1, %v11349_v27  ;;  %v11353_v27 = vld [vmem:[#allocation20_spill] sm:$0xff] }
 0x159   : > { %7634 = vmatprep.mubr.msk.f32.mxu0 %vm418_vm1, %v9729_v33  ;;  %v11354_v33 = vld [vmem:[#allocation21_spill] sm:$0xff] }
 0x15c   : > { %7635 = vmatmul.mubr.msk.f32.gmra.mrb[30].mxu0 %vm418_vm1, %v9736_v29  ;;  %v11355_v29 = vld [vmem:[#allocation22_spill] sm:$0xff] }
 0x15d   : > { %7639 = vmatprep.mubr.msk.f32.mxu0 %vm418_vm1, %v11351_v31  ;;  %v11356_v31 = vld [vmem:[#allocation23_spill] sm:$0xff] }
 0x160   : > { %7640 = vmatmul.mubr.msk.f32.vlgmr.msra.gmra.mrb[0].mxu0 %vm418_vm1, %v11352_v4  ;;  %v11358_v4 = vld [vmem:[#allocation25_spill] sm:$0xff] }
 0x161   : > { %7688 = vmatpush3.msk.msra.mxu0 %vm515_vm0, %v6366_v39  ;;  %7642 = vmatprep.mubr.msk.f32.mxu0 %vm418_vm1, %v11353_v27  ;;  %v11359_v39 = vld [vmem:[#allocation26_spill] sm:$0xff]  ;;  %v11360_v27 = vld [vmem:[#allocation27_spill] sm:$0xff] }
 0x162   : > { %7737 = vmatprep.subr.msk.mxu0 %vm515_vm0, %v6400_v6 }
 0x164   : > { %7643 = vmatmul.mubr.msk.f32.gmra.mrb[2].mxu0 %vm418_vm1, %v11354_v33  ;;  %v11362_v33 = vld [vmem:[#allocation29_spill] sm:$0xff] }
 0x165   : > { %7645 = vmatprep.mubr.msk.f32.mxu0 %vm418_vm1, %v11355_v29  ;;  %v11363_v29 = vld [vmem:[#allocation30_spill] sm:$0xff] }
 0x168   : > { %7646 = vmatmul.mubr.msk.f32.gmra.mrb[4].mxu0 %vm418_vm1, %v11356_v31  ;;  %v11364_v31 = vld [vmem:[#allocation31_spill] sm:$0xff] }
 0x169   : > { %7648 = vmatprep.mubr.msk.f32.mxu0 %vm418_vm1, %v11357_v30  ;;  %v11365_v30 = vld [vmem:[#allocation32_spill] sm:$0xff] }
 0x16c   : > { %7649 = vmatmul.mubr.msk.f32.gmra.mrb[6].mxu0 %vm418_vm1, %v11358_v4 }
 0x16d   : > { %7651 = vmatprep.mubr.msk.f32.mxu0 %vm418_vm1, %v11359_v39  ;;  %v11366_v39 = vld [vmem:[#allocation33_spill] sm:$0xff] }
 0x170   : > { %7652 = vmatmul.mubr.msk.f32.gmra.mrb[8].mxu0 %vm418_vm1, %v11360_v27  ;;  %v11367_v27 = vld [vmem:[#allocation34_spill] sm:$0xff] }
 0x171   : > { %7654 = vmatprep.mubr.msk.f32.mxu0 %vm418_vm1, %v11361_v28  ;;  %v11368_v28 = vld [vmem:[#allocation35_spill] sm:$0xff] }
 0x174   : > { %7655 = vmatmul.mubr.msk.f32.gmra.mrb[10].mxu0 %vm418_vm1, %v11362_v33  ;;  %v11369_v33 = vld [vmem:[#allocation36_spill] sm:$0xff] }
 0x175   : > { %7657 = vmatprep.mubr.msk.f32.mxu0 %vm418_vm1, %v11363_v29  ;;  %v11370_v29 = vld [vmem:[#allocation37_spill] sm:$0xff] }
 0x178   : > { %7658 = vmatmul.mubr.msk.f32.gmra.mrb[12].mxu0 %vm418_vm1, %v11364_v31  ;;  %v11371_v31 = vld [vmem:[#allocation38_spill] sm:$0xff] }
 0x179   : > { %7660 = vmatprep.mubr.msk.f32.mxu0 %vm418_vm1, %v11365_v30  ;;  %v11372_v30 = vld [vmem:[#allocation39_spill] sm:$0xff] }
 0x17c   : > { %7661 = vmatmul.mubr.msk.f32.gmra.mrb[14].mxu0 %vm418_vm1, %v11366_v39  ;;  %v11373_v39 = vld [vmem:[#allocation40_spill] sm:$0xff] }
 0x17d   : > { %7663 = vmatprep.mubr.msk.f32.mxu0 %vm418_vm1, %v11367_v27  ;;  %v11374_v27 = vld [vmem:[#allocation41_spill] sm:$0xff] }
 0x180   : > { %7664 = vmatmul.mubr.msk.f32.gmra.mrb[16].mxu0 %vm418_vm1, %v11368_v28 }
 0x181   : > { %7666 = vmatprep.mubr.msk.f32.mxu0 %vm418_vm1, %v11369_v33  ;;  %v11375_v33 = vld [vmem:[#allocation42_spill] sm:$0xff] }
 0x184   : > { %7667 = vmatmul.mubr.msk.f32.gmra.mrb[18].mxu0 %vm418_vm1, %v11370_v29 }
 0x185   : > { %7669 = vmatprep.mubr.msk.f32.mxu0 %vm418_vm1, %v11371_v31 }
 0x188   : > { %7670 = vmatmul.mubr.msk.f32.gmra.mrb[20].mxu0 %vm418_vm1, %v11372_v30  ;;  %v9804_v30 = vld [vmem:[%s9099_s17 + $0x182] sm:$0xff] }
 0x189   : > { %7672 = vmatprep.mubr.msk.f32.mxu0 %vm418_vm1, %v11373_v39 }
 0x18c   : > { %7673 = vmatmul.mubr.msk.f32.gmra.mrb[22].mxu0 %vm418_vm1, %v9555_v32 }
 0x18d   : > { %7675 = vmatprep.mubr.msk.f32.mxu0 %vm418_vm1, %v11374_v27  ;;  %v9811_v27 = vld [vmem:[%s9099_s17 + $0x18a] sm:$0xff] }
 0x190   : > { %7676 = vmatmul.mubr.msk.f32.gmra.mrb[24].mxu0 %vm418_vm1, %v9565_v5 }
 0x191   : > { %7678 = vmatprep.mubr.msk.f32.mxu0 %vm418_vm1, %v11375_v33 }
 0x194   : > { %7679 = vmatmul.mubr.msk.f32.gmra.mrb[26].mxu0 %vm418_vm1, %v9575_v38 }
 0x195   : > { %7681 = vmatprep.mubr.msk.f32.mxu0 %vm418_vm1, %v9578_v35  ;;  %v6434_v35 = vld [vmem:[%s11176_s1 + $0x20] sm:$0xf] }
 0x198   : > { %7682 = vmatmul.mubr.msk.f32.gmra.mrb[28].mxu0 %vm418_vm1, %v9585_v36 }
 0x199   : > { %7684 = vmatprep.mubr.msk.f32.mxu0 %vm418_vm1, %v9804_v30 }
 0x19c   : > { %7685 = vmatmul.mubr.msk.f32.gmra.mrb[30].mxu0 %vm418_vm1, %v9811_v27 }
 0x19d   : > { %7689 = vmatprep.mubr.msk.f32.mxu0 %vm418_vm1, %v9283_v40  ;;  %v341_v40 = vld [vmem:[%s9099_s17 + $0x198] sm:$0xff] }
 0x1a0   : > { %7690 = vmatmul.mubr.msk.f32.vlgmr.msra.gmra.mrb[0].mxu0 %vm418_vm1, %v9292_v41  ;;  %v342_v41 = vld [vmem:[%s9099_s17 + $0x1a0] sm:$0xff] }
 0x1a1   : > { %7738 = vmatpush3.msk.msra.mxu0 %vm515_vm0, %v6400_v6  ;;  %7692 = vmatprep.mubr.msk.f32.mxu0 %vm418_vm1, %v9295_v42  ;;  %v11394_v42 = vld [vmem:[#allocation29_spill] sm:$0xff] }
 0x1a2   : > { %7787 = vmatprep.subr.msk.mxu0 %vm515_vm0, %v6434_v35 }
 0x1a4   : > { %7693 = vmatmul.mubr.msk.f32.gmra.mrb[2].mxu0 %vm418_vm1, %v9302_v43  ;;  %v11395_v43 = vld [vmem:[#allocation30_spill] sm:$0xff] }
 0x1a5   : > { %7695 = vmatprep.mubr.msk.f32.mxu0 %vm418_vm1, %v9305_v44  ;;  %v11396_v44 = vld [vmem:[#allocation31_spill] sm:$0xff] }
 0x1a8   : > { %7696 = vmatmul.mubr.msk.f32.gmra.mrb[4].mxu0 %vm418_vm1, %v9312_v45  ;;  %v11397_v45 = vld [vmem:[#allocation32_spill] sm:$0xff] }
 0x1a9   : > { %7698 = vmatprep.mubr.msk.f32.mxu0 %vm418_vm1, %v9315_v46  ;;  %v11398_v46 = vld [vmem:[#allocation33_spill] sm:$0xff] }
 0x1ac   : > { %7699 = vmatmul.mubr.msk.f32.gmra.mrb[6].mxu0 %vm418_vm1, %v9322_v47  ;;  %v11399_v47 = vld [vmem:[#allocation34_spill] sm:$0xff] }
 0x1ad   : > { %7701 = vmatprep.mubr.msk.f32.mxu0 %vm418_vm1, %v9325_v48  ;;  %v11400_v48 = vld [vmem:[#allocation36_spill] sm:$0xff] }
 0x1b0   : > { %7702 = vmatmul.mubr.msk.f32.gmra.mrb[8].mxu0 %vm418_vm1, %v9332_v49  ;;  %v11401_v49 = vld [vmem:[#allocation39_spill] sm:$0xff] }
 0x1b1   : > { %7704 = vmatprep.mubr.msk.f32.mxu0 %vm418_vm1, %v9335_v50  ;;  %v414_v50 = vld [vmem:[%s9099_s17 + $0x1a2] sm:$0xff] }
 0x1b4   : > { %7705 = vmatmul.mubr.msk.f32.gmra.mrb[10].mxu0 %vm418_vm1, %v9342_v51  ;;  %v8997_v51 = vmov 0.0  }
 0x1b5   : > { %7707 = vmatprep.mubr.msk.f32.mxu0 %vm418_vm1, %v9345_v52  ;;  %262 = vst.msk [vmem:[#allocation2] sm:$0xff] %vm261_vm2, %v8997_v51  ;;  %263 = vst.msk [vmem:[#allocation2 + $0x8] sm:$0xff] %vm261_vm2, %v8997_v51 }
 0x1b6   : > { %267 = vst.msk [vmem:[#allocation2 + $0x198] sm:$0xff] %vm261_vm2, %v8997_v51  ;;  %268 = vst.msk [vmem:[#allocation2 + $0x1a0] sm:$0xff] %vm261_vm2, %v8997_v51 }
 0x1b7   : > { %265 = vst.msk [vmem:[#allocation2 + $0x10] sm:$0x3] %vm264_vm3, %v8997_v51  ;;  %269 = vst.msk [vmem:[#allocation2 + $0x1a8] sm:$0x3] %vm264_vm3, %v8997_v51 }
 0x1b8   : > { %7708 = vmatmul.mubr.msk.f32.gmra.mrb[12].mxu0 %vm418_vm1, %v9352_v53  ;;  %289 = vst.msk [vmem:[#allocation2 + $0x11] sm:$0x1] %vm270_vm4, %v8997_v51  ;;  %271 = vst.msk [vmem:[#allocation2] sm:$0x1] %vm270_vm4, %v8997_v51 }
 0x1b9   : > { %7710 = vmatprep.mubr.msk.f32.mxu0 %vm418_vm1, %v9355_v54  ;;  %272 = vst.msk [vmem:[#allocation2 + $0x18] sm:$0x1] %vm270_vm4, %v8997_v51  ;;  %273 = vst.msk [vmem:[#allocation2 + $0x30] sm:$0x1] %vm270_vm4, %v8997_v51 }
 0x1ba   : > { %274 = vst.msk [vmem:[#allocation2 + $0x48] sm:$0x1] %vm270_vm4, %v8997_v51  ;;  %275 = vst.msk [vmem:[#allocation2 + $0x60] sm:$0x1] %vm270_vm4, %v8997_v51 }
 0x1bb   : > { %276 = vst.msk [vmem:[#allocation2 + $0x78] sm:$0x1] %vm270_vm4, %v8997_v51  ;;  %277 = vst.msk [vmem:[#allocation2 + $0x90] sm:$0x1] %vm270_vm4, %v8997_v51 }
 0x1bc   : > { %7711 = vmatmul.mubr.msk.f32.gmra.mrb[14].mxu0 %vm418_vm1, %v9362_v55  ;;  %278 = vst.msk [vmem:[#allocation2 + $0xa8] sm:$0x1] %vm270_vm4, %v8997_v51  ;;  %279 = vst.msk [vmem:[#allocation2 + $0xc0] sm:$0x1] %vm270_vm4, %v8997_v51  ;;  %v3174_v53 = vld [vmem:[#allocation2 + $0x1] sm:$0xff] }
 0x1bd   : > { %7713 = vmatprep.mubr.msk.f32.mxu0 %vm418_vm1, %v9365_v56  ;;  %280 = vst.msk [vmem:[#allocation2 + $0xd8] sm:$0x1] %vm270_vm4, %v8997_v51  ;;  %281 = vst.msk [vmem:[#allocation2 + $0xf0] sm:$0x1] %vm270_vm4, %v8997_v51  ;;  %7841 = vmatprep.mubr.msk.f32.mxu1 %vm261_vm2, %v3174_v53  ;;  %v3246_v55 = vld [vmem:[%s11178_s3] sm:$0xff]  ;;  %v3247_v56 = vld [vmem:[%s11178_s3 + $0x8] sm:$0xff] }
 0x1be   : > { %282 = vst.msk [vmem:[#allocation2 + $0x108] sm:$0x1] %vm270_vm4, %v8997_v51  ;;  %283 = vst.msk [vmem:[#allocation2 + $0x120] sm:$0x1] %vm270_vm4, %v8997_v51  ;;  %v3175_v54 = vld [vmem:[#allocation2 + $0x9] sm:$0xff] }
 0x1bf   : > { %284 = vst.msk [vmem:[#allocation2 + $0x138] sm:$0x1] %vm270_vm4, %v8997_v51  ;;  %285 = vst.msk [vmem:[#allocation2 + $0x150] sm:$0x1] %vm270_vm4, %v8997_v51 }
 0x1c0   : > { %7714 = vmatmul.mubr.msk.f32.gmra.mrb[16].mxu0 %vm418_vm1, %v9372_v57  ;;  %286 = vst.msk [vmem:[#allocation2 + $0x168] sm:$0x1] %vm270_vm4, %v8997_v51  ;;  %287 = vst.msk [vmem:[#allocation2 + $0x180] sm:$0x1] %vm270_vm4, %v8997_v51  ;;  %v8309_v57 = vpack.c.bf16 %v3247_v56, %v3246_v55 }
 0x1c1   : > { %7716 = vmatprep.mubr.msk.f32.mxu0 %vm418_vm1, %v9375_v58  ;;  %288 = vst.msk [vmem:[#allocation2 + $0x198] sm:$0x1] %vm270_vm4, %v8997_v51  ;;  %290 = vst.msk [vmem:[#allocation2 + $0x29] sm:$0x1] %vm270_vm4, %v8997_v51  ;;  %v6535_v58 = vld [vmem:[%s11178_s3 + $0x20] sm:$0xff] }
 0x1c2   : > { %291 = vst.msk [vmem:[#allocation2 + $0x41] sm:$0x1] %vm270_vm4, %v8997_v51  ;;  %292 = vst.msk [vmem:[#allocation2 + $0x59] sm:$0x1] %vm270_vm4, %v8997_v51 }
 0x1c3   : > { %293 = vst.msk [vmem:[#allocation2 + $0x71] sm:$0x1] %vm270_vm4, %v8997_v51  ;;  %294 = vst.msk [vmem:[#allocation2 + $0x89] sm:$0x1] %vm270_vm4, %v8997_v51 }
 0x1c4   : > { %7717 = vmatmul.mubr.msk.f32.gmra.mrb[18].mxu0 %vm418_vm1, %v9382_v59  ;;  %295 = vst.msk [vmem:[#allocation2 + $0xa1] sm:$0x1] %vm270_vm4, %v8997_v51  ;;  %296 = vst.msk [vmem:[#allocation2 + $0xb9] sm:$0x1] %vm270_vm4, %v8997_v51  ;;  %v6536_v59 = vld [vmem:[%s11178_s3 + $0x28] sm:$0xff] }
 0x1c5   : > { %7719 = vmatprep.mubr.msk.f32.mxu0 %vm418_vm1, %v9385_v60  ;;  %297 = vst.msk [vmem:[#allocation2 + $0xd1] sm:$0x1] %vm270_vm4, %v8997_v51  ;;  %298 = vst.msk [vmem:[#allocation2 + $0xe9] sm:$0x1] %vm270_vm4, %v8997_v51  ;;  %v10073_v60 = vpack.c.bf16 %v6536_v59, %v6535_v58 }
 0x1c6   : > { %299 = vst.msk [vmem:[#allocation2 + $0x101] sm:$0x1] %vm270_vm4, %v8997_v51  ;;  %300 = vst.msk [vmem:[#allocation2 + $0x119] sm:$0x1] %vm270_vm4, %v8997_v51 }
 0x1c7   : > { %301 = vst.msk [vmem:[#allocation2 + $0x131] sm:$0x1] %vm270_vm4, %v8997_v51  ;;  %302 = vst.msk [vmem:[#allocation2 + $0x149] sm:$0x1] %vm270_vm4, %v8997_v51 }
 0x1c8   : > { %7720 = vmatmul.mubr.msk.f32.gmra.mrb[20].mxu0 %vm418_vm1, %v9392_v61  ;;  %303 = vst.msk [vmem:[#allocation2 + $0x161] sm:$0x1] %vm270_vm4, %v8997_v51  ;;  %304 = vst.msk [vmem:[#allocation2 + $0x179] sm:$0x1] %vm270_vm4, %v8997_v51  ;;  %v10079_v61 = vld [vmem:[%s11177_s2] ss:$0 sm:$0xff] }
 0x1c9   : > { %7722 = vmatprep.mubr.msk.f32.mxu0 %vm418_vm1, %v9395_v62  ;;  %305 = vst.msk [vmem:[#allocation2 + $0x191] sm:$0x1] %vm270_vm4, %v8997_v51  ;;  %306 = vst.msk [vmem:[#allocation2 + $0x1a9] sm:$0x1] %vm270_vm4, %v8997_v51 }
 0x1cc   : > { %7723 = vmatmul.mubr.msk.f32.gmra.mrb[22].mxu0 %vm418_vm1, %v9402_v63 }
 0x1cd   : > { %7725 = vmatprep.mubr.msk.f32.mxu0 %vm418_vm1, %v9405_v0 }
 0x1d0   : > { %7726 = vmatmul.mubr.msk.f32.gmra.mrb[24].mxu0 %vm418_vm1, %v9412_v1 }
 0x1d1   : > { %7728 = vmatprep.mubr.msk.f32.mxu0 %vm418_vm1, %v9415_v2 }
 0x1d4   : > { %7729 = vmatmul.mubr.msk.f32.gmra.mrb[26].mxu0 %vm418_vm1, %v9422_v3 }
 0x1d5   : > { %7731 = vmatprep.mubr.msk.f32.mxu0 %vm418_vm1, %v9654_v34 }
 0x1d8   : > { %7732 = vmatmul.mubr.msk.f32.gmra.mrb[28].mxu0 %vm418_vm1, %v9661_v37 }
 0x1d9   : > { %7734 = vmatprep.mubr.msk.f32.mxu0 %vm418_vm1, %v341_v40 }
 0x1dc   : > { %7735 = vmatmul.mubr.msk.f32.gmra.mrb[30].mxu0 %vm418_vm1, %v342_v41 }
 0x1dd   : > { %7739 = vmatprep.mubr.msk.f32.mxu0 %vm418_vm1, %v9120_v7  ;;  %v11376_v7 = vld [vmem:[#allocation10_spill] sm:$0xff] }
 0x1e0   : > { %7740 = vmatmul.mubr.msk.f32.vlgmr.msra.gmra.mrb[0].mxu0 %vm418_vm1, %v9129_v8  ;;  %v11377_v8 = vld [vmem:[#allocation11_spill] sm:$0xff] }
 0x1e1   : > { %7788 = vmatpush3.msk.msra.mxu0 %vm515_vm0, %v6434_v35  ;;  %7742 = vmatprep.mubr.msk.f32.mxu0 %vm418_vm1, %v9132_v9  ;;  %v11378_v9 = vld [vmem:[#allocation12_spill] sm:$0xff] }
 0x1e4   : > { %7743 = vmatmul.mubr.msk.f32.gmra.mrb[2].mxu0 %vm418_vm1, %v9139_v10  ;;  %v11379_v10 = vld [vmem:[#allocation13_spill] sm:$0xff] }
 0x1e5   : > { %7745 = vmatprep.mubr.msk.f32.mxu0 %vm418_vm1, %v9142_v11  ;;  %v11380_v11 = vld [vmem:[#allocation14_spill] sm:$0xff] }
 0x1e8   : > { %7746 = vmatmul.mubr.msk.f32.gmra.mrb[4].mxu0 %vm418_vm1, %v9149_v12  ;;  %v11381_v12 = vld [vmem:[#allocation15_spill] sm:$0xff] }
 0x1e9   : > { %7748 = vmatprep.mubr.msk.f32.mxu0 %vm418_vm1, %v9152_v13  ;;  %v11382_v13 = vld [vmem:[#allocation16_spill] sm:$0xff] }
 0x1ec   : > { %7749 = vmatmul.mubr.msk.f32.gmra.mrb[6].mxu0 %vm418_vm1, %v9159_v14  ;;  %v11383_v14 = vld [vmem:[#allocation17_spill] sm:$0xff] }
 0x1ed   : > { %7751 = vmatprep.mubr.msk.f32.mxu0 %vm418_vm1, %v9162_v15  ;;  %v11384_v15 = vld [vmem:[#allocation44_spill] sm:$0xff] }
 0x1f0   : > { %7752 = vmatmul.mubr.msk.f32.gmra.mrb[8].mxu0 %vm418_vm1, %v9169_v16  ;;  %v377_v16 = vld [vmem:[%s9099_s17 + $0x199] sm:$0xff] }
 0x1f1   : > { %7754 = vmatprep.mubr.msk.f32.mxu0 %vm418_vm1, %v9172_v17  ;;  %v11385_v17 = vld [vmem:[#allocation45_spill] sm:$0xff] }
 0x1f4   : > { %7755 = vmatmul.mubr.msk.f32.gmra.mrb[10].mxu0 %vm418_vm1, %v9179_v18  ;;  %v378_v18 = vld [vmem:[%s9099_s17 + $0x1a1] sm:$0xff] }
 0x1f5   : > { %7757 = vmatprep.mubr.msk.f32.mxu0 %vm418_vm1, %v9182_v19  ;;  %v11386_v19 = vld [vmem:[#allocation20_spill] sm:$0xff] }
 0x1f8   : > { %7758 = vmatmul.mubr.msk.f32.gmra.mrb[12].mxu0 %vm418_vm1, %v9189_v20  ;;  %v11387_v20 = vld [vmem:[#allocation21_spill] sm:$0xff] }
 0x1f9   : > { %7760 = vmatprep.mubr.msk.f32.mxu0 %vm418_vm1, %v9192_v21  ;;  %v11388_v21 = vld [vmem:[#allocation22_spill] sm:$0xff] }
 0x1fc   : > { %7761 = vmatmul.mubr.msk.f32.gmra.mrb[14].mxu0 %vm418_vm1, %v9199_v22  ;;  %v11389_v22 = vld [vmem:[#allocation23_spill] sm:$0xff] }
 0x1fd   : > { %7763 = vmatprep.mubr.msk.f32.mxu0 %vm418_vm1, %v9202_v23  ;;  %v11390_v23 = vld [vmem:[#allocation24_spill] sm:$0xff] }
 0x200   : > { %7764 = vmatmul.mubr.msk.f32.gmra.mrb[16].mxu0 %vm418_vm1, %v9209_v24  ;;  %v11391_v24 = vld [vmem:[#allocation26_spill] sm:$0xff] }
 0x201   : > { %7766 = vmatprep.mubr.msk.f32.mxu0 %vm418_vm1, %v9212_v25  ;;  %v11392_v25 = vld [vmem:[#allocation27_spill] sm:$0xff] }
 0x204   : > { %7767 = vmatmul.mubr.msk.f32.gmra.mrb[18].mxu0 %vm418_vm1, %v9219_v26  ;;  %v11393_v26 = vld [vmem:[#allocation28_spill] sm:$0xff] }
 0x205   : > { %7769 = vmatprep.mubr.msk.f32.mxu0 %vm418_vm1, %v11376_v7 }
 0x208   : > { %7770 = vmatmul.mubr.msk.f32.gmra.mrb[20].mxu0 %vm418_vm1, %v11377_v8 }
 0x209   : > { %7772 = vmatprep.mubr.msk.f32.mxu0 %vm418_vm1, %v11378_v9 }
 0x20c   : > { %7773 = vmatmul.mubr.msk.f32.gmra.mrb[22].mxu0 %vm418_vm1, %v11379_v10 }
 0x20d   : > { %7775 = vmatprep.mubr.msk.f32.mxu0 %vm418_vm1, %v11380_v11 }
 0x210   : > { %7776 = vmatmul.mubr.msk.f32.gmra.mrb[24].mxu0 %vm418_vm1, %v11381_v12 }
 0x211   : > { %7778 = vmatprep.mubr.msk.f32.mxu0 %vm418_vm1, %v11382_v13 }
 0x214   : > { %7779 = vmatmul.mubr.msk.f32.gmra.mrb[26].mxu0 %vm418_vm1, %v11383_v14 }
 0x215   : > { %7781 = vmatprep.mubr.msk.f32.mxu0 %vm418_vm1, %v11384_v15 }
 0x218   : > { %7782 = vmatmul.mubr.msk.f32.gmra.mrb[28].mxu0 %vm418_vm1, %v11385_v17 }
 0x219   : > { %7784 = vmatprep.mubr.msk.f32.mxu0 %vm418_vm1, %v377_v16 }
 0x21c   : > { %7785 = vmatmul.mubr.msk.f32.gmra.mrb[30].mxu0 %vm418_vm1, %v378_v18 }
 0x21d   : > { %7789 = vmatprep.mubr.msk.f32.mxu0 %vm418_vm1, %v11386_v19 }
 0x220   : > { %7790 = vmatmul.mubr.msk.f32.vlgmr.msra.gmra.mrb[0].mxu0 %vm418_vm1, %v11387_v20 }
 0x221   : > { %7792 = vmatprep.mubr.msk.f32.mxu0 %vm418_vm1, %v11388_v21 }
 0x224   : > { %7793 = vmatmul.mubr.msk.f32.gmra.mrb[2].mxu0 %vm418_vm1, %v11389_v22 }
 0x225   : > { %7795 = vmatprep.mubr.msk.f32.mxu0 %vm418_vm1, %v11390_v23 }
 0x228   : > { %7796 = vmatmul.mubr.msk.f32.gmra.mrb[4].mxu0 %vm418_vm1, %v11358_v4 }
 0x229   : > { %7798 = vmatprep.mubr.msk.f32.mxu0 %vm418_vm1, %v11391_v24 }
 0x22c   : > { %7799 = vmatmul.mubr.msk.f32.gmra.mrb[6].mxu0 %vm418_vm1, %v11392_v25 }
 0x22d   : > { %7801 = vmatprep.mubr.msk.f32.mxu0 %vm418_vm1, %v11393_v26 }
 0x230   : > { %7802 = vmatmul.mubr.msk.f32.gmra.mrb[8].mxu0 %vm418_vm1, %v11394_v42 }
 0x231   : > { %7804 = vmatprep.mubr.msk.f32.mxu0 %vm418_vm1, %v11395_v43 }
 0x234   : > { %7805 = vmatmul.mubr.msk.f32.gmra.mrb[10].mxu0 %vm418_vm1, %v11396_v44 }
 0x235   : > { %7807 = vmatprep.mubr.msk.f32.mxu0 %vm418_vm1, %v11397_v45 }
 0x238   : > { %7808 = vmatmul.mubr.msk.f32.gmra.mrb[12].mxu0 %vm418_vm1, %v11398_v46 }
 0x239   : > { %7810 = vmatprep.mubr.msk.f32.mxu0 %vm418_vm1, %v11399_v47 }
 0x23c   : > { %7811 = vmatmul.mubr.msk.f32.gmra.mrb[14].mxu0 %vm418_vm1, %v11368_v28  ;;  %v11402_v28 = vld [vmem:[#allocation41_spill] sm:$0xff] }
 0x23d   : > { %7813 = vmatprep.mubr.msk.f32.mxu0 %vm418_vm1, %v11400_v48 }
 0x240   : > { %7814 = vmatmul.mubr.msk.f32.gmra.mrb[16].mxu0 %vm418_vm1, %v11370_v29  ;;  %v11403_v29 = vld [vmem:[#allocation43_spill] sm:$0xff] }
 0x241   : > { %7816 = vmatprep.mubr.msk.f32.mxu0 %vm418_vm1, %v11371_v31 }
 0x244   : > { %7817 = vmatmul.mubr.msk.f32.gmra.mrb[18].mxu0 %vm418_vm1, %v11401_v49 }
 0x245   : > { %7819 = vmatprep.mubr.msk.f32.mxu0 %vm418_vm1, %v11373_v39 }
 0x248   : > { %7820 = vmatmul.mubr.msk.f32.gmra.mrb[20].mxu0 %vm418_vm1, %v9555_v32  ;;  %v413_v32 = vld [vmem:[%s9099_s17 + $0x19a] sm:$0xff] }
 0x249   : > { %7822 = vmatprep.mubr.msk.f32.mxu0 %vm418_vm1, %v11402_v28 }
 0x24c   : > { %7823 = vmatmul.mubr.msk.f32.gmra.mrb[22].mxu0 %vm418_vm1, %v9565_v5 }
 0x24d   : > { %7825 = vmatprep.mubr.msk.f32.mxu0 %vm418_vm1, %v11375_v33 }
 0x250   : > { %7826 = vmatmul.mubr.msk.f32.gmra.mrb[24].mxu0 %vm418_vm1, %v9575_v38 }
 0x251   : > { %7828 = vmatprep.mubr.msk.f32.mxu0 %vm418_vm1, %v11403_v29 }
 0x254   : > { %7829 = vmatmul.mubr.msk.f32.gmra.mrb[26].mxu0 %vm418_vm1, %v9585_v36 }
 0x255   : > { %7831 = vmatprep.mubr.msk.f32.mxu0 %vm418_vm1, %v9804_v30  ;;  %v6470_v30 = vld [vmem:[%s11178_s3 + $0x18] sm:$0xff] }
 0x258   : > { %7832 = vmatmul.mubr.msk.f32.gmra.mrb[28].mxu0 %vm418_vm1, %v9811_v27  ;;  %v6469_v27 = vld [vmem:[%s11178_s3 + $0x10] sm:$0xff] }
 0x259   : > { %7834 = vmatprep.mubr.msk.f32.mxu0 %vm418_vm1, %v413_v32  ;;  %v8305_v52 = vpack.c.bf16 %v6470_v30, %v6469_v27 }
 0x25b   : > { %8306 = vmatprep.subr.bf16.mxu1 %v8305_v52 }
 0x25c   : > { %7835 = vmatmul.mubr.msk.f32.gmra.mrb[30].mxu0 %vm418_vm1, %v414_v50  ;;  %8308 = vmatpush3.bf16.msra.mxu1 %v8305_v52 }
 0x25d   : > { %8310 = vmatprep.subr.bf16.mxu1 %v8309_v57 }
 0x25f   : > { %7842 = vmatmul.mubr.msk.f32.vlgmr.msra.gmra.mrb[0].mxu1 %vm261_vm2, %v3175_v54 }
 0x260   : > { %8312 = vmatpush3.bf16.msra.mxu1 %v8309_v57 }
 0x261   : > { %8314 = vmatprep.subr.bf16.mxu1 %v10073_v60 }
 0x2f3   : > { %v7791_v62 = vpop.f32.mrb[0].mxu0 }
 0x2f4   : > { %v3042_v63 = vadd.f32 %v7791_v62, %v10079_v61  ;;  %v2843_v0 = vpop.f32.mrb[1].mxu0 }
 0x2f5   : > { %v3041_v1 = vadd.f32 %v10079_v61, %v2843_v0 }
 0x2f6   : > { %v3074_v2 = vmax.f32 %v3042_v63, 0.0 }
 0x2f7   : > { %v3073_v3 = vmax.f32 %v3041_v1, 0.0  ;;  %v7794_v36 = vpop.f32.mrb[2].mxu0 }
 0x2f8   : > { %3107 = vst.msk [vmem:[#allocation2 + $0x21] sm:$0xff] %vm261_vm2, %v3074_v2  ;;  %v3044_v5 = vadd.f32 %v7794_v36, %v10079_v61  ;;  %v2853_v38 = vpop.f32.mrb[3].mxu0 }
 0x2f9   : > { %3106 = vst.msk [vmem:[#allocation2 + $0x19] sm:$0xff] %vm261_vm2, %v3073_v3  ;;  %v3043_v35 = vadd.f32 %v10079_v61, %v2853_v38 }
 0x2fa   : > { %v3076_v34 = vmax.f32 %v3044_v5, 0.0 }
 0x2fb   : > { %v3075_v37 = vmax.f32 %v3043_v35, 0.0  ;;  %v7797_v6 = vpop.f32.mrb[4].mxu0 }
 0x2fc   : > { %3109 = vst.msk [vmem:[#allocation2 + $0x39] sm:$0xff] %vm261_vm2, %v3076_v34  ;;  %v3046_v33 = vadd.f32 %v7797_v6, %v10079_v61  ;;  %v2863_v31 = vpop.f32.mrb[5].mxu0 }
 0x2fd   : > { %3108 = vst.msk [vmem:[#allocation2 + $0x31] sm:$0xff] %vm261_vm2, %v3075_v37  ;;  %v3045_v4 = vadd.f32 %v10079_v61, %v2863_v31 }
 0x2fe   : > { %v3078_v39 = vmax.f32 %v3046_v33, 0.0 }
 0x2ff   : > { %v3077_v40 = vmax.f32 %v3045_v4, 0.0  ;;  %v7800_v41 = vpop.f32.mrb[6].mxu0  ;;  %v10099_v11 = vld [vmem:[#allocation2 + $0x21] sm:$0xff] }
 0x300   : > { %3111 = vst.msk [vmem:[#allocation2 + $0x51] sm:$0xff] %vm261_vm2, %v3078_v39  ;;  %v3048_v7 = vadd.f32 %v7800_v41, %v10079_v61  ;;  %v2873_v8 = vpop.f32.mrb[7].mxu0  ;;  %v10093_v9 = vld [vmem:[#allocation2 + $0x19] sm:$0xff] }
 0x301   : > { %3110 = vst.msk [vmem:[#allocation2 + $0x49] sm:$0xff] %vm261_vm2, %v3077_v40  ;;  %v3047_v10 = vadd.f32 %v10079_v61, %v2873_v8  ;;  %7844 = vmatprep.mubr.msk.f32.mxu1 %vm261_vm2, %v10093_v9 }
 0x302   : > { %v3080_v12 = vmax.f32 %v3048_v7, 0.0  ;;  %7845 = vmatmul.mubr.msk.f32.gmra.mrb[2].mxu1 %vm261_vm2, %v10099_v11 }
 0x303   : > { %v3079_v13 = vmax.f32 %v3047_v10, 0.0  ;;  %v7803_v14 = vpop.f32.mrb[8].mxu0  ;;  %v10111_v19 = vld [vmem:[#allocation2 + $0x39] sm:$0xff] }
 0x304   : > { %3113 = vst.msk [vmem:[#allocation2 + $0x69] sm:$0xff] %vm261_vm2, %v3080_v12  ;;  %v3050_v15 = vadd.f32 %v7803_v14, %v10079_v61  ;;  %v2883_v16 = vpop.f32.mrb[9].mxu0  ;;  %v10105_v17 = vld [vmem:[#allocation2 + $0x31] sm:$0xff] }
 0x305   : > { %3112 = vst.msk [vmem:[#allocation2 + $0x61] sm:$0xff] %vm261_vm2, %v3079_v13  ;;  %v3049_v18 = vadd.f32 %v10079_v61, %v2883_v16  ;;  %7847 = vmatprep.mubr.msk.f32.mxu1 %vm261_vm2, %v10105_v17 }
 0x306   : > { %v3082_v20 = vmax.f32 %v3050_v15, 0.0  ;;  %7848 = vmatmul.mubr.msk.f32.gmra.mrb[4].mxu1 %vm261_vm2, %v10111_v19 }
 0x307   : > { %v3081_v21 = vmax.f32 %v3049_v18, 0.0  ;;  %v7806_v22 = vpop.f32.mrb[10].mxu0  ;;  %v10123_v42 = vld [vmem:[#allocation2 + $0x51] sm:$0xff] }
 0x308   : > { %3115 = vst.msk [vmem:[#allocation2 + $0x81] sm:$0xff] %vm261_vm2, %v3082_v20  ;;  %v3052_v23 = vadd.f32 %v7806_v22, %v10079_v61  ;;  %v2893_v24 = vpop.f32.mrb[11].mxu0  ;;  %v10117_v25 = vld [vmem:[#allocation2 + $0x49] sm:$0xff] }
 0x309   : > { %3114 = vst.msk [vmem:[#allocation2 + $0x79] sm:$0xff] %vm261_vm2, %v3081_v21  ;;  %v3051_v26 = vadd.f32 %v10079_v61, %v2893_v24  ;;  %7850 = vmatprep.mubr.msk.f32.mxu1 %vm261_vm2, %v10117_v25 }
 0x30a   : > { %v3084_v43 = vmax.f32 %v3052_v23, 0.0  ;;  %7851 = vmatmul.mubr.msk.f32.gmra.mrb[6].mxu1 %vm261_vm2, %v10123_v42 }
 0x30b   : > { %v3083_v44 = vmax.f32 %v3051_v26, 0.0  ;;  %v7809_v45 = vpop.f32.mrb[12].mxu0  ;;  %v10135_v28 = vld [vmem:[#allocation2 + $0x69] sm:$0xff] }
 0x30c   : > { %3117 = vst.msk [vmem:[#allocation2 + $0x99] sm:$0xff] %vm261_vm2, %v3084_v43  ;;  %v3054_v46 = vadd.f32 %v7809_v45, %v10079_v61  ;;  %v2903_v47 = vpop.f32.mrb[13].mxu0  ;;  %v10129_v48 = vld [vmem:[#allocation2 + $0x61] sm:$0xff] }
 0x30d   : > { %3116 = vst.msk [vmem:[#allocation2 + $0x91] sm:$0xff] %vm261_vm2, %v3083_v44  ;;  %v3053_v49 = vadd.f32 %v10079_v61, %v2903_v47  ;;  %7853 = vmatprep.mubr.msk.f32.mxu1 %vm261_vm2, %v10129_v48 }
 0x30e   : > { %v3086_v29 = vmax.f32 %v3054_v46, 0.0  ;;  %7854 = vmatmul.mubr.msk.f32.gmra.mrb[8].mxu1 %vm261_vm2, %v10135_v28 }
 0x30f   : > { %v3085_v32 = vmax.f32 %v3053_v49, 0.0  ;;  %v7812_v50 = vpop.f32.mrb[14].mxu0  ;;  %v10147_v53 = vld [vmem:[#allocation2 + $0x81] sm:$0xff] }
 0x310   : > { %3119 = vst.msk [vmem:[#allocation2 + $0xb1] sm:$0xff] %vm261_vm2, %v3086_v29  ;;  %v3056_v51 = vadd.f32 %v7812_v50, %v10079_v61  ;;  %v2913_v27 = vpop.f32.mrb[15].mxu0  ;;  %v10141_v30 = vld [vmem:[#allocation2 + $0x79] sm:$0xff] }
 0x311   : > { %3118 = vst.msk [vmem:[#allocation2 + $0xa9] sm:$0xff] %vm261_vm2, %v3085_v32  ;;  %v3055_v52 = vadd.f32 %v10079_v61, %v2913_v27  ;;  %7856 = vmatprep.mubr.msk.f32.mxu1 %vm261_vm2, %v10141_v30 }
 0x312   : > { %v3088_v54 = vmax.f32 %v3056_v51, 0.0  ;;  %7857 = vmatmul.mubr.msk.f32.gmra.mrb[10].mxu1 %vm261_vm2, %v10147_v53 }
 0x313   : > { %v3087_v55 = vmax.f32 %v3055_v52, 0.0  ;;  %v7815_v56 = vpop.f32.mrb[16].mxu0  ;;  %v10159_v63 = vld [vmem:[#allocation2 + $0x99] sm:$0xff] }
 0x314   : > { %3121 = vst.msk [vmem:[#allocation2 + $0xc9] sm:$0xff] %vm261_vm2, %v3088_v54  ;;  %v3058_v57 = vadd.f32 %v7815_v56, %v10079_v61  ;;  %v2923_v58 = vpop.f32.mrb[17].mxu0  ;;  %v10153_v59 = vld [vmem:[#allocation2 + $0x91] sm:$0xff] }
 0x315   : > { %3120 = vst.msk [vmem:[#allocation2 + $0xc1] sm:$0xff] %vm261_vm2, %v3087_v55  ;;  %v3057_v62 = vadd.f32 %v10079_v61, %v2923_v58  ;;  %7859 = vmatprep.mubr.msk.f32.mxu1 %vm261_vm2, %v10153_v59 }
 0x316   : > { %v3090_v0 = vmax.f32 %v3058_v57, 0.0  ;;  %7860 = vmatmul.mubr.msk.f32.gmra.mrb[12].mxu1 %vm261_vm2, %v10159_v63 }
 0x317   : > { %v3089_v1 = vmax.f32 %v3057_v62, 0.0  ;;  %v7818_v2 = vpop.f32.mrb[18].mxu0  ;;  %v10171_v35 = vld [vmem:[#allocation2 + $0xb1] sm:$0xff] }
 0x318   : > { %3123 = vst.msk [vmem:[#allocation2 + $0xe1] sm:$0xff] %vm261_vm2, %v3090_v0  ;;  %v3060_v3 = vadd.f32 %v7818_v2, %v10079_v61  ;;  %v2933_v36 = vpop.f32.mrb[19].mxu0  ;;  %v10165_v5 = vld [vmem:[#allocation2 + $0xa9] sm:$0xff] }
 0x319   : > { %3122 = vst.msk [vmem:[#allocation2 + $0xd9] sm:$0xff] %vm261_vm2, %v3089_v1  ;;  %v3059_v38 = vadd.f32 %v10079_v61, %v2933_v36  ;;  %7862 = vmatprep.mubr.msk.f32.mxu1 %vm261_vm2, %v10165_v5 }
 0x31a   : > { %v3092_v34 = vmax.f32 %v3060_v3, 0.0  ;;  %7863 = vmatmul.mubr.msk.f32.gmra.mrb[14].mxu1 %vm261_vm2, %v10171_v35 }
 0x31b   : > { %v3091_v37 = vmax.f32 %v3059_v38, 0.0  ;;  %v7821_v6 = vpop.f32.mrb[20].mxu0  ;;  %v10183_v40 = vld [vmem:[#allocation2 + $0xc9] sm:$0xff] }
 0x31c   : > { %3125 = vst.msk [vmem:[#allocation2 + $0xf9] sm:$0xff] %vm261_vm2, %v3092_v34  ;;  %v3062_v33 = vadd.f32 %v7821_v6, %v10079_v61  ;;  %v2943_v31 = vpop.f32.mrb[21].mxu0  ;;  %v10177_v4 = vld [vmem:[#allocation2 + $0xc1] sm:$0xff] }
 0x31d   : > { %3124 = vst.msk [vmem:[#allocation2 + $0xf1] sm:$0xff] %vm261_vm2, %v3091_v37  ;;  %v3061_v39 = vadd.f32 %v10079_v61, %v2943_v31  ;;  %7865 = vmatprep.mubr.msk.f32.mxu1 %vm261_vm2, %v10177_v4  ;;  %v3138_v31 = vld [vmem:[#allocation2] sm:$0xff] }
 0x31e   : > { %v3094_v41 = vmax.f32 %v3062_v33, 0.0  ;;  %7866 = vmatmul.mubr.msk.f32.gmra.mrb[16].mxu1 %vm261_vm2, %v10183_v40 }
 0x31f   : > { %v3093_v7 = vmax.f32 %v3061_v39, 0.0  ;;  %v7824_v8 = vpop.f32.mrb[22].mxu0  ;;  %v10195_v15 = vld [vmem:[#allocation2 + $0xe1] sm:$0xff] }
 0x320   : > { %3127 = vst.msk [vmem:[#allocation2 + $0x111] sm:$0xff] %vm261_vm2, %v3094_v41  ;;  %v3064_v10 = vadd.f32 %v7824_v8, %v10079_v61  ;;  %v2953_v12 = vpop.f32.mrb[23].mxu0  ;;  %v10189_v13 = vld [vmem:[#allocation2 + $0xd9] sm:$0xff]  ;;  %v6569_v41 = vld [vmem:[%s11178_s3 + $0x30] sm:$0xff]  ;;  %v3139_v8 = vld [vmem:[#allocation2 + $0x8] sm:$0xff] }
 0x321   : > { %3126 = vst.msk [vmem:[#allocation2 + $0x109] sm:$0xff] %vm261_vm2, %v3093_v7  ;;  %v3063_v14 = vadd.f32 %v10079_v61, %v2953_v12  ;;  %7868 = vmatprep.mubr.msk.f32.mxu1 %vm261_vm2, %v10189_v13  ;;  %v6570_v7 = vld [vmem:[%s11178_s3 + $0x38] sm:$0xff] }
 0x322   : > { %v3096_v16 = vmax.f32 %v3064_v10, 0.0  ;;  %7869 = vmatmul.mubr.msk.f32.gmra.mrb[18].mxu1 %vm261_vm2, %v10195_v15  ;;  %v10272_v10 = vpack.c.bf16 %v6570_v7, %v6569_v41  ;;  %v10275_v12 = vld [vmem:[#allocation2 + $0x18] sm:$0xff]  ;;  %v6603_v7 = vld [vmem:[%s11178_s3 + $0x40] sm:$0xff] }
 0x323   : > { %v3095_v18 = vmax.f32 %v3063_v14, 0.0  ;;  %v7827_v20 = vpop.f32.mrb[24].mxu0  ;;  %v10207_v26 = vld [vmem:[#allocation2 + $0xf9] sm:$0xff] }
 0x324   : > { %3129 = vst.msk [vmem:[#allocation2 + $0x129] sm:$0xff] %vm261_vm2, %v3096_v16  ;;  %v3066_v21 = vadd.f32 %v7827_v20, %v10079_v61  ;;  %v2963_v22 = vpop.f32.mrb[25].mxu0  ;;  %v10201_v23 = vld [vmem:[#allocation2 + $0xf1] sm:$0xff]  ;;  %v10281_v14 = vld [vmem:[#allocation2 + $0x20] sm:$0xff] }
 0x325   : > { %3128 = vst.msk [vmem:[#allocation2 + $0x121] sm:$0xff] %vm261_vm2, %v3095_v18  ;;  %v3065_v24 = vadd.f32 %v10079_v61, %v2963_v22  ;;  %7871 = vmatprep.mubr.msk.f32.mxu1 %vm261_vm2, %v10201_v23  ;;  %v10285_v16 = vld [vmem:[#allocation2 + $0x30] sm:$0xff]  ;;  %v10289_v18 = vld [vmem:[#allocation2 + $0x38] sm:$0xff]  ;;  %v10305_v22 = vld [vmem:[#allocation2 + $0x68] sm:$0xff] }
 0x326   : > { %v3098_v43 = vmax.f32 %v3066_v21, 0.0  ;;  %7872 = vmatmul.mubr.msk.f32.gmra.mrb[20].mxu1 %vm261_vm2, %v10207_v26  ;;  %v10297_v20 = vld [vmem:[#allocation2 + $0x50] sm:$0xff]  ;;  %v10301_v21 = vld [vmem:[#allocation2 + $0x60] sm:$0xff] }
 0x327   : > { %v3097_v44 = vmax.f32 %v3065_v24, 0.0  ;;  %v7830_v45 = vpop.f32.mrb[26].mxu0  ;;  %v10219_v32 = vld [vmem:[#allocation2 + $0x111] sm:$0xff] }
 0x328   : > { %3131 = vst.msk [vmem:[#allocation2 + $0x141] sm:$0xff] %vm261_vm2, %v3098_v43  ;;  %v3068_v46 = vadd.f32 %v7830_v45, %v10079_v61  ;;  %v2973_v47 = vpop.f32.mrb[27].mxu0  ;;  %v10213_v49 = vld [vmem:[#allocation2 + $0x109] sm:$0xff]  ;;  %v10309_v24 = vld [vmem:[#allocation2 + $0x78] sm:$0xff]  ;;  %v10313_v43 = vld [vmem:[#allocation2 + $0x80] sm:$0xff] }
 0x329   : > { %3130 = vst.msk [vmem:[#allocation2 + $0x139] sm:$0xff] %vm261_vm2, %v3097_v44  ;;  %v3067_v29 = vadd.f32 %v10079_v61, %v2973_v47  ;;  %7874 = vmatprep.mubr.msk.f32.mxu1 %vm261_vm2, %v10213_v49  ;;  %v10317_v44 = vld [vmem:[#allocation2 + $0x90] sm:$0xff]  ;;  %v10321_v45 = vld [vmem:[#allocation2 + $0x98] sm:$0xff] }
 0x32a   : > { %v3100_v50 = vmax.f32 %v3068_v46, 0.0  ;;  %7875 = vmatmul.mubr.msk.f32.gmra.mrb[22].mxu1 %vm261_vm2, %v10219_v32  ;;  %v10325_v46 = vld [vmem:[#allocation2 + $0xa8] sm:$0xff]  ;;  %v10329_v47 = vld [vmem:[#allocation2 + $0xb0] sm:$0xff] }
 0x32b   : > { %v3099_v51 = vmax.f32 %v3067_v29, 0.0  ;;  %v7833_v27 = vpop.f32.mrb[28].mxu0  ;;  %v10231_v57 = vld [vmem:[#allocation2 + $0x129] sm:$0xff]  ;;  %v10333_v29 = vld [vmem:[#allocation2 + $0xc0] sm:$0xff] }
 0x32c   : > { %3133 = vst.msk [vmem:[#allocation2 + $0x159] sm:$0xff] %vm261_vm2, %v3100_v50  ;;  %v3070_v52 = vadd.f32 %v7833_v27, %v10079_v61  ;;  %v2983_v54 = vpop.f32.mrb[29].mxu0  ;;  %v10225_v55 = vld [vmem:[#allocation2 + $0x121] sm:$0xff]  ;;  %11404 = vst [vmem:[#allocation18_spill] sm:$0xff] %v10231_v57 }
 0x32d   : > { %3132 = vst.msk [vmem:[#allocation2 + $0x151] sm:$0xff] %vm261_vm2, %v3099_v51  ;;  %v3069_v56 = vadd.f32 %v10079_v61, %v2983_v54  ;;  %7877 = vmatprep.mubr.msk.f32.mxu1 %vm261_vm2, %v10225_v55  ;;  %v10337_v50 = vld [vmem:[#allocation2 + $0xc8] sm:$0xff]  ;;  %v10341_v51 = vld [vmem:[#allocation2 + $0xd8] sm:$0xff]  ;;  %v10345_v27 = vld [vmem:[#allocation2 + $0xe0] sm:$0xff] }
 0x32e   : > { %v3102_v58 = vmax.f32 %v3070_v52, 0.0  ;;  %7878 = vmatmul.mubr.msk.f32.gmra.mrb[24].mxu1 %vm261_vm2, %v10231_v57  ;;  %v10349_v52 = vld [vmem:[#allocation2 + $0xf0] sm:$0xff]  ;;  %v10353_v54 = vld [vmem:[#allocation2 + $0xf8] sm:$0xff] }
 0x32f   : > { %v3101_v62 = vmax.f32 %v3069_v56, 0.0  ;;  %v7836_v0 = vpop.f32.mrb[30].mxu0  ;;  %v10243_v38 = vld [vmem:[#allocation2 + $0x141] sm:$0xff] }
 0x330   : > { %3135 = vst.msk [vmem:[#allocation2 + $0x171] sm:$0xff] %vm261_vm2, %v3102_v58  ;;  %v3072_v1 = vadd.f32 %v7836_v0, %v10079_v61  ;;  %v2993_v2 = vpop.f32.mrb[31].mxu0  ;;  %v10237_v3 = vld [vmem:[#allocation2 + $0x139] sm:$0xff]  ;;  %11406 = vst [vmem:[#allocation25_spill] sm:$0xff] %v10243_v38  ;;  %v10357_v56 = vld [vmem:[#allocation2 + $0x108] sm:$0xff] }
 0x331   : > { %11405 = vst [vmem:[#allocation19_spill] sm:$0xff] %v10237_v3  ;;  %3134 = vst.msk [vmem:[#allocation2 + $0x169] sm:$0xff] %vm261_vm2, %v3101_v62  ;;  %v3071_v36 = vadd.f32 %v10079_v61, %v2993_v2  ;;  %7880 = vmatprep.mubr.msk.f32.mxu1 %vm261_vm2, %v10237_v3  ;;  %v10361_v58 = vld [vmem:[#allocation2 + $0x110] sm:$0xff]  ;;  %v10365_v62 = vld [vmem:[#allocation2 + $0x120] sm:$0xff] }
 0x332   : > { %v3104_v34 = vmax.f32 %v3072_v1, 0.0  ;;  %7881 = vmatmul.mubr.msk.f32.gmra.mrb[26].mxu1 %vm261_vm2, %v10243_v38  ;;  %v10369_v0 = vld [vmem:[#allocation2 + $0x128] sm:$0xff]  ;;  %v10373_v1 = vld [vmem:[#allocation2 + $0x138] sm:$0xff]  ;;  %v10377_v2 = vld [vmem:[#allocation2 + $0x140] sm:$0xff] }
 0x333   : > { %v3103_v37 = vmax.f32 %v3071_v36, 0.0  ;;  %v10253_v61 = vld [vmem:[#allocation2 + $0x159] sm:$0xff] }
 0x334   : > { %3137 = vst.msk [vmem:[#allocation2 + $0x189] sm:$0xff] %vm261_vm2, %v3104_v34  ;;  %v10248_v6 = vld [vmem:[#allocation2 + $0x151] sm:$0xff]  ;;  %11408 = vst [vmem:[#allocation37_spill] sm:$0xff] %v10253_v61 }
 0x335   : > { %11407 = vst [vmem:[#allocation35_spill] sm:$0xff] %v10248_v6  ;;  %3136 = vst.msk [vmem:[#allocation2 + $0x181] sm:$0xff] %vm261_vm2, %v3103_v37  ;;  %7883 = vmatprep.mubr.msk.f32.mxu1 %vm261_vm2, %v10248_v6  ;;  %v10381_v36 = vld [vmem:[#allocation2 + $0x150] sm:$0xff]  ;;  %v10385_v34 = vld [vmem:[#allocation2 + $0x158] sm:$0xff] }
 0x336   : > { %7884 = vmatmul.mubr.msk.f32.gmra.mrb[28].mxu1 %vm261_vm2, %v10253_v61  ;;  %v10407_v61 = vld [vmem:[#allocation2 + $0x1a] sm:$0xff]  ;;  %v10413_v6 = vld [vmem:[#allocation2 + $0x22] sm:$0xff] }
 0x337   : > { %v10261_v39 = vld [vmem:[#allocation2 + $0x171] sm:$0xff] }
 0x338   : > { %v10257_v33 = vld [vmem:[#allocation2 + $0x169] sm:$0xff]  ;;  %11410 = vst [vmem:[#allocation40_spill] sm:$0xff] %v10261_v39 }
 0x339   : > { %11409 = vst [vmem:[#allocation38_spill] sm:$0xff] %v10257_v33  ;;  %7886 = vmatprep.mubr.msk.f32.mxu1 %vm261_vm2, %v10257_v33  ;;  %v10389_v37 = vld [vmem:[#allocation2 + $0x168] sm:$0xff]  ;;  %v10393_v41 = vld [vmem:[#allocation2 + $0x170] sm:$0xff] }
 0x33a   : > { %7887 = vmatmul.mubr.msk.f32.gmra.mrb[30].mxu1 %vm261_vm2, %v10261_v39  ;;  %v3211_v39 = vld [vmem:[#allocation2 + $0xa] sm:$0xff] }
 0x33b   : > { %7893 = vmatprep.mubr.msk.f32.mxu1 %vm261_vm2, %v3138_v31  ;;  %v3210_v31 = vld [vmem:[#allocation2 + $0x2] sm:$0xff] }
 0x33e   : > { %7894 = vmatmul.mubr.msk.f32.vlgmr.msra.gmra.mrb[0].mxu1 %vm261_vm2, %v3139_v8  ;;  %v6604_v8 = vld [vmem:[%s11178_s3 + $0x48] sm:$0xff] }
 0x33f   : > { %8316 = vmatpush3.bf16.msra.mxu1 %v10073_v60  ;;  %7896 = vmatprep.mubr.msk.f32.mxu1 %vm261_vm2, %v10275_v12  ;;  %v10293_v60 = vld [vmem:[#allocation2 + $0x48] sm:$0xff]  ;;  %v10404_v33 = vpack.c.bf16 %v6604_v8, %v6603_v7  ;;  %v10429_v7 = vld [vmem:[#allocation2 + $0x52] sm:$0xff] }
 0x340   : > { %8318 = vmatprep.subr.bf16.mxu1 %v10272_v10  ;;  %11414 = vst [vmem:[#allocation12_spill] sm:$0xff] %v10429_v7  ;;  %v10433_v8 = vld [vmem:[#allocation2 + $0x62] sm:$0xff] }
 0x341   : > { %11415 = vst [vmem:[#allocation13_spill] sm:$0xff] %v10433_v8 }
 0x342   : > { %7897 = vmatmul.mubr.msk.f32.gmra.mrb[2].mxu1 %vm261_vm2, %v10281_v14 }
 0x343   : > { %7899 = vmatprep.mubr.msk.f32.mxu1 %vm261_vm2, %v10285_v16 }
 0x346   : > { %7900 = vmatmul.mubr.msk.f32.gmra.mrb[4].mxu1 %vm261_vm2, %v10289_v18 }
 0x347   : > { %7902 = vmatprep.mubr.msk.f32.mxu1 %vm261_vm2, %v10293_v60 }
 0x34a   : > { %7903 = vmatmul.mubr.msk.f32.gmra.mrb[6].mxu1 %vm261_vm2, %v10297_v20 }
 0x34b   : > { %7905 = vmatprep.mubr.msk.f32.mxu1 %vm261_vm2, %v10301_v21 }
 0x34e   : > { %7906 = vmatmul.mubr.msk.f32.gmra.mrb[8].mxu1 %vm261_vm2, %v10305_v22 }
 0x34f   : > { %7908 = vmatprep.mubr.msk.f32.mxu1 %vm261_vm2, %v10309_v24 }
 0x352   : > { %7909 = vmatmul.mubr.msk.f32.gmra.mrb[10].mxu1 %vm261_vm2, %v10313_v43 }
 0x353   : > { %7911 = vmatprep.mubr.msk.f32.mxu1 %vm261_vm2, %v10317_v44 }
 0x356   : > { %7912 = vmatmul.mubr.msk.f32.gmra.mrb[12].mxu1 %vm261_vm2, %v10321_v45 }
 0x357   : > { %7914 = vmatprep.mubr.msk.f32.mxu1 %vm261_vm2, %v10325_v46 }
 0x35a   : > { %7915 = vmatmul.mubr.msk.f32.gmra.mrb[14].mxu1 %vm261_vm2, %v10329_v47 }
 0x35b   : > { %7917 = vmatprep.mubr.msk.f32.mxu1 %vm261_vm2, %v10333_v29 }
 0x35e   : > { %7918 = vmatmul.mubr.msk.f32.gmra.mrb[16].mxu1 %vm261_vm2, %v10337_v50 }
 0x35f   : > { %7920 = vmatprep.mubr.msk.f32.mxu1 %vm261_vm2, %v10341_v51 }
 0x362   : > { %7921 = vmatmul.mubr.msk.f32.gmra.mrb[18].mxu1 %vm261_vm2, %v10345_v27 }
 0x363   : > { %7923 = vmatprep.mubr.msk.f32.mxu1 %vm261_vm2, %v10349_v52 }
 0x366   : > { %7924 = vmatmul.mubr.msk.f32.gmra.mrb[20].mxu1 %vm261_vm2, %v10353_v54 }
 0x367   : > { %7926 = vmatprep.mubr.msk.f32.mxu1 %vm261_vm2, %v10357_v56 }
 0x36a   : > { %7927 = vmatmul.mubr.msk.f32.gmra.mrb[22].mxu1 %vm261_vm2, %v10361_v58 }
 0x36b   : > { %7929 = vmatprep.mubr.msk.f32.mxu1 %vm261_vm2, %v10365_v62 }
 0x36e   : > { %7930 = vmatmul.mubr.msk.f32.gmra.mrb[24].mxu1 %vm261_vm2, %v10369_v0 }
 0x36f   : > { %7932 = vmatprep.mubr.msk.f32.mxu1 %vm261_vm2, %v10373_v1 }
 0x372   : > { %7933 = vmatmul.mubr.msk.f32.gmra.mrb[26].mxu1 %vm261_vm2, %v10377_v2 }
 0x373   : > { %7935 = vmatprep.mubr.msk.f32.mxu1 %vm261_vm2, %v10381_v36 }
 0x376   : > { %7936 = vmatmul.mubr.msk.f32.gmra.mrb[28].mxu1 %vm261_vm2, %v10385_v34 }
 0x377   : > { %7938 = vmatprep.mubr.msk.f32.mxu1 %vm261_vm2, %v10389_v37 }
 0x37a   : > { %7939 = vmatmul.mubr.msk.f32.gmra.mrb[30].mxu1 %vm261_vm2, %v10393_v41 }
 0x37b   : > { %7945 = vmatprep.mubr.msk.f32.mxu1 %vm261_vm2, %v3210_v31  ;;  %v10417_v31 = vld [vmem:[#allocation2 + $0x32] sm:$0xff] }
 0x37c   : > { %11411 = vst [vmem:[#allocation42_spill] sm:$0xff] %v10417_v31 }
 0x37e   : > { %7946 = vmatmul.mubr.msk.f32.vlgmr.msra.gmra.mrb[0].mxu1 %vm261_vm2, %v3211_v39  ;;  %v10421_v39 = vld [vmem:[#allocation2 + $0x3a] sm:$0xff] }
 0x37f   : > { %8320 = vmatpush3.bf16.msra.mxu1 %v10272_v10  ;;  %7948 = vmatprep.mubr.msk.f32.mxu1 %vm261_vm2, %v10407_v61  ;;  %11412 = vst [vmem:[#allocation10_spill] sm:$0xff] %v10421_v39  ;;  %v10425_v10 = vld [vmem:[#allocation2 + $0x4a] sm:$0xff] }
 0x380   : > { %8322 = vmatprep.subr.bf16.mxu1 %v10404_v33  ;;  %11413 = vst [vmem:[#allocation11_spill] sm:$0xff] %v10425_v10 }
 0x382   : > { %7949 = vmatmul.mubr.msk.f32.gmra.mrb[2].mxu1 %vm261_vm2, %v10413_v6 }
 0x383   : > { %7951 = vmatprep.mubr.msk.f32.mxu1 %vm261_vm2, %v10417_v31  ;;  %v10437_v31 = vld [vmem:[#allocation2 + $0x6a] sm:$0xff] }
 0x384   : > { %11416 = vst [vmem:[#allocation14_spill] sm:$0xff] %v10437_v31 }
 0x386   : > { %7952 = vmatmul.mubr.msk.f32.gmra.mrb[4].mxu1 %vm261_vm2, %v10421_v39  ;;  %v10441_v39 = vld [vmem:[#allocation2 + $0x7a] sm:$0xff] }
 0x387   : > { %7954 = vmatprep.mubr.msk.f32.mxu1 %vm261_vm2, %v10425_v10  ;;  %11417 = vst [vmem:[#allocation15_spill] sm:$0xff] %v10441_v39  ;;  %v10445_v10 = vld [vmem:[#allocation2 + $0x82] sm:$0xff] }
 0x388   : > { %11418 = vst [vmem:[#allocation16_spill] sm:$0xff] %v10445_v10 }
 0x38a   : > { %7955 = vmatmul.mubr.msk.f32.gmra.mrb[6].mxu1 %vm261_vm2, %v10429_v7  ;;  %v10449_v7 = vld [vmem:[#allocation2 + $0x92] sm:$0xff] }
 0x38b   : > { %7957 = vmatprep.mubr.msk.f32.mxu1 %vm261_vm2, %v10433_v8  ;;  %11419 = vst [vmem:[#allocation17_spill] sm:$0xff] %v10449_v7  ;;  %v10453_v8 = vld [vmem:[#allocation2 + $0x9a] sm:$0xff] }
 0x38c   : > { %11420 = vst [vmem:[#allocation44_spill] sm:$0xff] %v10453_v8 }
 0x38e   : > { %7958 = vmatmul.mubr.msk.f32.gmra.mrb[8].mxu1 %vm261_vm2, %v10437_v31  ;;  %v10457_v31 = vld [vmem:[#allocation2 + $0xaa] sm:$0xff] }
 0x38f   : > { %7960 = vmatprep.mubr.msk.f32.mxu1 %vm261_vm2, %v10441_v39  ;;  %11421 = vst [vmem:[#allocation45_spill] sm:$0xff] %v10457_v31  ;;  %v10461_v39 = vld [vmem:[#allocation2 + $0xb2] sm:$0xff] }
 0x390   : > { %11422 = vst [vmem:[#allocation20_spill] sm:$0xff] %v10461_v39 }
 0x392   : > { %7961 = vmatmul.mubr.msk.f32.gmra.mrb[10].mxu1 %vm261_vm2, %v10445_v10  ;;  %v10465_v10 = vld [vmem:[#allocation2 + $0xc2] sm:$0xff] }
 0x393   : > { %7963 = vmatprep.mubr.msk.f32.mxu1 %vm261_vm2, %v10449_v7  ;;  %11423 = vst [vmem:[#allocation21_spill] sm:$0xff] %v10465_v10  ;;  %v10469_v7 = vld [vmem:[#allocation2 + $0xca] sm:$0xff] }
 0x394   : > { %11424 = vst [vmem:[#allocation22_spill] sm:$0xff] %v10469_v7 }
 0x396   : > { %7964 = vmatmul.mubr.msk.f32.gmra.mrb[12].mxu1 %vm261_vm2, %v10453_v8  ;;  %v10473_v8 = vld [vmem:[#allocation2 + $0xda] sm:$0xff] }
 0x397   : > { %7966 = vmatprep.mubr.msk.f32.mxu1 %vm261_vm2, %v10457_v31  ;;  %11425 = vst [vmem:[#allocation23_spill] sm:$0xff] %v10473_v8  ;;  %v10477_v31 = vld [vmem:[#allocation2 + $0xe2] sm:$0xff] }
 0x398   : > { %11426 = vst [vmem:[#allocation24_spill] sm:$0xff] %v10477_v31 }
 0x39a   : > { %7967 = vmatmul.mubr.msk.f32.gmra.mrb[14].mxu1 %vm261_vm2, %v10461_v39  ;;  %v10481_v39 = vld [vmem:[#allocation2 + $0xf2] sm:$0xff] }
 0x39b   : > { %7969 = vmatprep.mubr.msk.f32.mxu1 %vm261_vm2, %v10465_v10  ;;  %11427 = vst [vmem:[#allocation26_spill] sm:$0xff] %v10481_v39  ;;  %v10485_v10 = vld [vmem:[#allocation2 + $0xfa] sm:$0xff] }
 0x39c   : > { %11428 = vst [vmem:[#allocation27_spill] sm:$0xff] %v10485_v10 }
 0x39e   : > { %7970 = vmatmul.mubr.msk.f32.gmra.mrb[16].mxu1 %vm261_vm2, %v10469_v7  ;;  %v10489_v7 = vld [vmem:[#allocation2 + $0x10a] sm:$0xff] }
 0x39f   : > { %7972 = vmatprep.mubr.msk.f32.mxu1 %vm261_vm2, %v10473_v8  ;;  %11429 = vst [vmem:[#allocation28_spill] sm:$0xff] %v10489_v7  ;;  %v10493_v8 = vld [vmem:[#allocation2 + $0x112] sm:$0xff] }
 0x3a0   : > { %11430 = vst [vmem:[#allocation29_spill] sm:$0xff] %v10493_v8 }
 0x3a2   : > { %7973 = vmatmul.mubr.msk.f32.gmra.mrb[18].mxu1 %vm261_vm2, %v10477_v31  ;;  %v10497_v31 = vld [vmem:[#allocation2 + $0x122] sm:$0xff] }
 0x3a3   : > { %7975 = vmatprep.mubr.msk.f32.mxu1 %vm261_vm2, %v10481_v39  ;;  %11431 = vst [vmem:[#allocation30_spill] sm:$0xff] %v10497_v31  ;;  %v10501_v39 = vld [vmem:[#allocation2 + $0x12a] sm:$0xff] }
 0x3a4   : > { %11432 = vst [vmem:[#allocation31_spill] sm:$0xff] %v10501_v39 }
 0x3a6   : > { %7976 = vmatmul.mubr.msk.f32.gmra.mrb[20].mxu1 %vm261_vm2, %v10485_v10  ;;  %v10505_v10 = vld [vmem:[#allocation2 + $0x13a] sm:$0xff] }
 0x3a7   : > { %7978 = vmatprep.mubr.msk.f32.mxu1 %vm261_vm2, %v10489_v7  ;;  %11433 = vst [vmem:[#allocation32_spill] sm:$0xff] %v10505_v10  ;;  %v10509_v7 = vld [vmem:[#allocation2 + $0x142] sm:$0xff] }
 0x3a8   : > { %11434 = vst [vmem:[#allocation33_spill] sm:$0xff] %v10509_v7 }
 0x3aa   : > { %7979 = vmatmul.mubr.msk.f32.gmra.mrb[22].mxu1 %vm261_vm2, %v10493_v8  ;;  %v10513_v8 = vld [vmem:[#allocation2 + $0x152] sm:$0xff] }
 0x3ab   : > { %7981 = vmatprep.mubr.msk.f32.mxu1 %vm261_vm2, %v10497_v31  ;;  %11435 = vst [vmem:[#allocation34_spill] sm:$0xff] %v10513_v8  ;;  %v10517_v31 = vld [vmem:[#allocation2 + $0x15a] sm:$0xff] }
 0x3ac   : > { %11436 = vst [vmem:[#allocation36_spill] sm:$0xff] %v10517_v31 }
 0x3ae   : > { %7982 = vmatmul.mubr.msk.f32.gmra.mrb[24].mxu1 %vm261_vm2, %v10501_v39  ;;  %v10521_v39 = vld [vmem:[#allocation2 + $0x16a] sm:$0xff] }
 0x3af   : > { %7984 = vmatprep.mubr.msk.f32.mxu1 %vm261_vm2, %v10505_v10  ;;  %v10525_v10 = vld [vmem:[#allocation2 + $0x172] sm:$0xff] }
 0x3b0   : > { %11437 = vst [vmem:[#allocation39_spill] sm:$0xff] %v10525_v10 }
 0x3b2   : > { %7985 = vmatmul.mubr.msk.f32.gmra.mrb[26].mxu1 %vm261_vm2, %v10509_v7  ;;  %v6637_v7 = vld [vmem:[%s11178_s3 + $0x50] sm:$0xff] }
 0x3b3   : > { %7987 = vmatprep.mubr.msk.f32.mxu1 %vm261_vm2, %v10513_v8  ;;  %v6638_v8 = vld [vmem:[%s11178_s3 + $0x58] sm:$0xff] }
 0x3b6   : > { %7988 = vmatmul.mubr.msk.f32.gmra.mrb[28].mxu1 %vm261_vm2, %v10517_v31  ;;  %v8325_v31 = vpack.c.bf16 %v6638_v8, %v6637_v7  ;;  %v6672_v7 = vld [vmem:[%s11178_s3 + $0x68] sm:$0xff] }
 0x3b7   : > { %7990 = vmatprep.mubr.msk.f32.mxu1 %vm261_vm2, %v10521_v39 }
 0x3ba   : > { %7991 = vmatmul.mubr.msk.f32.gmra.mrb[30].mxu1 %vm261_vm2, %v10525_v10 }
 0x3bb   : > { %7997 = vmatprep.mubr.msk.f32.mxu1 %vm261_vm2, %v10275_v12  ;;  %v10600_v12 = vld [vmem:[#allocation2 + $0x188] sm:$0xff] }
 0x3be   : > { %7998 = vmatmul.mubr.msk.f32.vlgmr.msra.gmra.mrb[0].mxu1 %vm261_vm2, %v10281_v14  ;;  %v6671_v14 = vld [vmem:[%s11178_s3 + $0x60] sm:$0xff] }
 0x3bf   : > { %8324 = vmatpush3.bf16.msra.mxu1 %v10404_v33  ;;  %8000 = vmatprep.mubr.msk.f32.mxu1 %vm261_vm2, %v10285_v16  ;;  %v10596_v33 = vld [vmem:[#allocation2 + $0x180] sm:$0xff]  ;;  %v8329_v8 = vpack.c.bf16 %v6672_v7, %v6671_v14 }
 0x3c0   : > { %8326 = vmatprep.subr.bf16.mxu1 %v8325_v31  ;;  %v11441_v14 = vld [vmem:[#allocation40_spill] sm:$0xff] }
 0x3c1   : > { %v10670_v7 = vld [vmem:[#allocation2 + $0x181] sm:$0xff] }
 0x3c2   : > { %8001 = vmatmul.mubr.msk.f32.gmra.mrb[2].mxu1 %vm261_vm2, %v10289_v18  ;;  %11442 = vst [vmem:[#allocation41_spill] sm:$0xff] %v10670_v7 }
 0x3c3   : > { %8003 = vmatprep.mubr.msk.f32.mxu1 %vm261_vm2, %v10293_v60 }
 0x3c6   : > { %8004 = vmatmul.mubr.msk.f32.gmra.mrb[4].mxu1 %vm261_vm2, %v10297_v20 }
 0x3c7   : > { %8006 = vmatprep.mubr.msk.f32.mxu1 %vm261_vm2, %v10301_v21 }
 0x3ca   : > { %8007 = vmatmul.mubr.msk.f32.gmra.mrb[6].mxu1 %vm261_vm2, %v10305_v22 }
 0x3cb   : > { %8009 = vmatprep.mubr.msk.f32.mxu1 %vm261_vm2, %v10309_v24 }
 0x3ce   : > { %8010 = vmatmul.mubr.msk.f32.gmra.mrb[8].mxu1 %vm261_vm2, %v10313_v43 }
 0x3cf   : > { %8012 = vmatprep.mubr.msk.f32.mxu1 %vm261_vm2, %v10317_v44 }
 0x3d2   : > { %8013 = vmatmul.mubr.msk.f32.gmra.mrb[10].mxu1 %vm261_vm2, %v10321_v45 }
 0x3d3   : > { %8015 = vmatprep.mubr.msk.f32.mxu1 %vm261_vm2, %v10325_v46 }
 0x3d6   : > { %8016 = vmatmul.mubr.msk.f32.gmra.mrb[12].mxu1 %vm261_vm2, %v10329_v47 }
 0x3d7   : > { %8018 = vmatprep.mubr.msk.f32.mxu1 %vm261_vm2, %v10333_v29 }
 0x3da   : > { %8019 = vmatmul.mubr.msk.f32.gmra.mrb[14].mxu1 %vm261_vm2, %v10337_v50 }
 0x3db   : > { %8021 = vmatprep.mubr.msk.f32.mxu1 %vm261_vm2, %v10341_v51 }
 0x3de   : > { %8022 = vmatmul.mubr.msk.f32.gmra.mrb[16].mxu1 %vm261_vm2, %v10345_v27 }
 0x3df   : > { %8024 = vmatprep.mubr.msk.f32.mxu1 %vm261_vm2, %v10349_v52 }
 0x3e2   : > { %8025 = vmatmul.mubr.msk.f32.gmra.mrb[18].mxu1 %vm261_vm2, %v10353_v54 }
 0x3e3   : > { %8027 = vmatprep.mubr.msk.f32.mxu1 %vm261_vm2, %v10357_v56 }
 0x3e6   : > { %8028 = vmatmul.mubr.msk.f32.gmra.mrb[20].mxu1 %vm261_vm2, %v10361_v58 }
 0x3e7   : > { %8030 = vmatprep.mubr.msk.f32.mxu1 %vm261_vm2, %v10365_v62 }
 0x3ea   : > { %8031 = vmatmul.mubr.msk.f32.gmra.mrb[22].mxu1 %vm261_vm2, %v10369_v0 }
 0x3eb   : > { %8033 = vmatprep.mubr.msk.f32.mxu1 %vm261_vm2, %v10373_v1 }
 0x3ee   : > { %8034 = vmatmul.mubr.msk.f32.gmra.mrb[24].mxu1 %vm261_vm2, %v10377_v2 }
 0x3ef   : > { %8036 = vmatprep.mubr.msk.f32.mxu1 %vm261_vm2, %v10381_v36 }
 0x3f2   : > { %8037 = vmatmul.mubr.msk.f32.gmra.mrb[26].mxu1 %vm261_vm2, %v10385_v34 }
 0x3f3   : > { %8039 = vmatprep.mubr.msk.f32.mxu1 %vm261_vm2, %v10389_v37 }
 0x3f6   : > { %8040 = vmatmul.mubr.msk.f32.gmra.mrb[28].mxu1 %vm261_vm2, %v10393_v41 }
 0x3f7   : > { %8042 = vmatprep.mubr.msk.f32.mxu1 %vm261_vm2, %v10596_v33 }
 0x3fa   : > { %8043 = vmatmul.mubr.msk.f32.gmra.mrb[30].mxu1 %vm261_vm2, %v10600_v12 }
 0x3fb   : > { %8049 = vmatprep.mubr.msk.f32.mxu1 %vm261_vm2, %v10093_v9  ;;  %v11438_v9 = vld [vmem:[#allocation35_spill] sm:$0xff] }
 0x3fe   : > { %8050 = vmatmul.mubr.msk.f32.vlgmr.msra.gmra.mrb[0].mxu1 %vm261_vm2, %v10099_v11  ;;  %v11439_v11 = vld [vmem:[#allocation37_spill] sm:$0xff] }
 0x3ff   : > { %8328 = vmatpush3.bf16.msra.mxu1 %v8325_v31  ;;  %8052 = vmatprep.mubr.msk.f32.mxu1 %vm261_vm2, %v10105_v17  ;;  %v11440_v31 = vld [vmem:[#allocation38_spill] sm:$0xff] }
 0x400   : > { %8330 = vmatprep.subr.bf16.mxu1 %v8329_v8 }
 0x402   : > { %8053 = vmatmul.mubr.msk.f32.gmra.mrb[2].mxu1 %vm261_vm2, %v10111_v19 }
 0x403   : > { %8055 = vmatprep.mubr.msk.f32.mxu1 %vm261_vm2, %v10117_v25 }
 0x406   : > { %8056 = vmatmul.mubr.msk.f32.gmra.mrb[4].mxu1 %vm261_vm2, %v10123_v42 }
 0x407   : > { %8058 = vmatprep.mubr.msk.f32.mxu1 %vm261_vm2, %v10129_v48 }
 0x40a   : > { %8059 = vmatmul.mubr.msk.f32.gmra.mrb[6].mxu1 %vm261_vm2, %v10135_v28 }
 0x40b   : > { %8061 = vmatprep.mubr.msk.f32.mxu1 %vm261_vm2, %v10141_v30 }
 0x40e   : > { %8062 = vmatmul.mubr.msk.f32.gmra.mrb[8].mxu1 %vm261_vm2, %v10147_v53 }
 0x40f   : > { %8064 = vmatprep.mubr.msk.f32.mxu1 %vm261_vm2, %v10153_v59 }
 0x412   : > { %8065 = vmatmul.mubr.msk.f32.gmra.mrb[10].mxu1 %vm261_vm2, %v10159_v63 }
 0x413   : > { %8067 = vmatprep.mubr.msk.f32.mxu1 %vm261_vm2, %v10165_v5 }
 0x416   : > { %8068 = vmatmul.mubr.msk.f32.gmra.mrb[12].mxu1 %vm261_vm2, %v10171_v35 }
 0x417   : > { %8070 = vmatprep.mubr.msk.f32.mxu1 %vm261_vm2, %v10177_v4 }
 0x41a   : > { %8071 = vmatmul.mubr.msk.f32.gmra.mrb[14].mxu1 %vm261_vm2, %v10183_v40 }
 0x41b   : > { %8073 = vmatprep.mubr.msk.f32.mxu1 %vm261_vm2, %v10189_v13 }
 0x41e   : > { %8074 = vmatmul.mubr.msk.f32.gmra.mrb[16].mxu1 %vm261_vm2, %v10195_v15 }
 0x41f   : > { %8076 = vmatprep.mubr.msk.f32.mxu1 %vm261_vm2, %v10201_v23 }
 0x422   : > { %8077 = vmatmul.mubr.msk.f32.gmra.mrb[18].mxu1 %vm261_vm2, %v10207_v26 }
 0x423   : > { %8079 = vmatprep.mubr.msk.f32.mxu1 %vm261_vm2, %v10213_v49 }
 0x426   : > { %8080 = vmatmul.mubr.msk.f32.gmra.mrb[20].mxu1 %vm261_vm2, %v10219_v32 }
 0x427   : > { %8082 = vmatprep.mubr.msk.f32.mxu1 %vm261_vm2, %v10225_v55 }
 0x42a   : > { %8083 = vmatmul.mubr.msk.f32.gmra.mrb[22].mxu1 %vm261_vm2, %v10231_v57  ;;  %v11447_v57 = vld [vmem:[#allocation12_spill] sm:$0xff] }
 0x42b   : > { %8085 = vmatprep.mubr.msk.f32.mxu1 %vm261_vm2, %v10237_v3  ;;  %v10674_v3 = vld [vmem:[#allocation2 + $0x189] sm:$0xff] }
 0x42c   : > { %11443 = vst [vmem:[#allocation43_spill] sm:$0xff] %v10674_v3 }
 0x42e   : > { %8086 = vmatmul.mubr.msk.f32.gmra.mrb[24].mxu1 %vm261_vm2, %v10243_v38  ;;  %v11446_v38 = vld [vmem:[#allocation11_spill] sm:$0xff] }
 0x42f   : > { %8088 = vmatprep.mubr.msk.f32.mxu1 %vm261_vm2, %v11438_v9  ;;  %v6705_v9 = vld [vmem:[%s11178_s3 + $0x70] sm:$0xff] }
 0x432   : > { %8089 = vmatmul.mubr.msk.f32.gmra.mrb[26].mxu1 %vm261_vm2, %v11439_v11  ;;  %v6706_v11 = vld [vmem:[%s11178_s3 + $0x78] sm:$0xff] }
 0x433   : > { %8091 = vmatprep.mubr.msk.f32.mxu1 %vm261_vm2, %v11440_v31  ;;  %v11445_v31 = vld [vmem:[#allocation10_spill] sm:$0xff] }
 0x436   : > { %8092 = vmatmul.mubr.msk.f32.gmra.mrb[28].mxu1 %vm261_vm2, %v11441_v14  ;;  %v8333_v14 = vpack.c.bf16 %v6706_v11, %v6705_v9  ;;  %v11452_v9 = vld [vmem:[#allocation17_spill] sm:$0xff]  ;;  %v11453_v11 = vld [vmem:[#allocation44_spill] sm:$0xff] }
 0x437   : > { %8094 = vmatprep.mubr.msk.f32.mxu1 %vm261_vm2, %v10670_v7  ;;  %v11444_v7 = vld [vmem:[#allocation42_spill] sm:$0xff] }
 0x43a   : > { %8095 = vmatmul.mubr.msk.f32.gmra.mrb[30].mxu1 %vm261_vm2, %v10674_v3  ;;  %v11448_v3 = vld [vmem:[#allocation13_spill] sm:$0xff] }
 0x43b   : > { %8101 = vmatprep.mubr.msk.f32.mxu1 %vm261_vm2, %v10407_v61  ;;  %v11449_v61 = vld [vmem:[#allocation14_spill] sm:$0xff] }
 0x43e   : > { %8102 = vmatmul.mubr.msk.f32.vlgmr.msra.gmra.mrb[0].mxu1 %vm261_vm2, %v10413_v6  ;;  %v11450_v6 = vld [vmem:[#allocation15_spill] sm:$0xff] }
 0x43f   : > { %8332 = vmatpush3.bf16.msra.mxu1 %v8329_v8  ;;  %8104 = vmatprep.mubr.msk.f32.mxu1 %vm261_vm2, %v11444_v7  ;;  %v11451_v8 = vld [vmem:[#allocation16_spill] sm:$0xff] }
 0x440   : > { %8334 = vmatprep.subr.bf16.mxu1 %v8333_v14 }
 0x442   : > { %8105 = vmatmul.mubr.msk.f32.gmra.mrb[2].mxu1 %vm261_vm2, %v11445_v31 }
 0x443   : > { %8107 = vmatprep.mubr.msk.f32.mxu1 %vm261_vm2, %v11446_v38  ;;  %v11454_v38 = vld [vmem:[#allocation45_spill] sm:$0xff] }
 0x446   : > { %8108 = vmatmul.mubr.msk.f32.gmra.mrb[4].mxu1 %vm261_vm2, %v11447_v57  ;;  %v11455_v57 = vld [vmem:[#allocation20_spill] sm:$0xff] }
 0x447   : > { %8110 = vmatprep.mubr.msk.f32.mxu1 %vm261_vm2, %v11448_v3  ;;  %v11456_v3 = vld [vmem:[#allocation21_spill] sm:$0xff] }
 0x44a   : > { %8111 = vmatmul.mubr.msk.f32.gmra.mrb[6].mxu1 %vm261_vm2, %v11449_v61  ;;  %v11457_v61 = vld [vmem:[#allocation22_spill] sm:$0xff] }
 0x44b   : > { %8113 = vmatprep.mubr.msk.f32.mxu1 %vm261_vm2, %v11450_v6  ;;  %v11458_v6 = vld [vmem:[#allocation23_spill] sm:$0xff] }
 0x44e   : > { %8114 = vmatmul.mubr.msk.f32.gmra.mrb[8].mxu1 %vm261_vm2, %v11451_v8  ;;  %v11459_v8 = vld [vmem:[#allocation24_spill] sm:$0xff] }
 0x44f   : > { %8116 = vmatprep.mubr.msk.f32.mxu1 %vm261_vm2, %v11452_v9  ;;  %v11460_v9 = vld [vmem:[#allocation26_spill] sm:$0xff] }
 0x452   : > { %8117 = vmatmul.mubr.msk.f32.gmra.mrb[10].mxu1 %vm261_vm2, %v11453_v11  ;;  %v11461_v11 = vld [vmem:[#allocation27_spill] sm:$0xff] }
 0x453   : > { %8119 = vmatprep.mubr.msk.f32.mxu1 %vm261_vm2, %v11454_v38  ;;  %v11462_v38 = vld [vmem:[#allocation28_spill] sm:$0xff] }
 0x456   : > { %8120 = vmatmul.mubr.msk.f32.gmra.mrb[12].mxu1 %vm261_vm2, %v11455_v57  ;;  %v11463_v57 = vld [vmem:[#allocation29_spill] sm:$0xff] }
 0x457   : > { %8122 = vmatprep.mubr.msk.f32.mxu1 %vm261_vm2, %v11456_v3  ;;  %v11464_v3 = vld [vmem:[#allocation30_spill] sm:$0xff] }
 0x45a   : > { %8123 = vmatmul.mubr.msk.f32.gmra.mrb[14].mxu1 %vm261_vm2, %v11457_v61  ;;  %v11465_v61 = vld [vmem:[#allocation31_spill] sm:$0xff] }
 0x45b   : > { %8125 = vmatprep.mubr.msk.f32.mxu1 %vm261_vm2, %v11458_v6  ;;  %v11466_v6 = vld [vmem:[#allocation32_spill] sm:$0xff] }
 0x45e   : > { %8126 = vmatmul.mubr.msk.f32.gmra.mrb[16].mxu1 %vm261_vm2, %v11459_v8  ;;  %v11467_v8 = vld [vmem:[#allocation33_spill] sm:$0xff] }
 0x45f   : > { %8128 = vmatprep.mubr.msk.f32.mxu1 %vm261_vm2, %v11460_v9  ;;  %v11468_v9 = vld [vmem:[#allocation34_spill] sm:$0xff] }
 0x462   : > { %8129 = vmatmul.mubr.msk.f32.gmra.mrb[18].mxu1 %vm261_vm2, %v11461_v11  ;;  %v11469_v11 = vld [vmem:[#allocation36_spill] sm:$0xff] }
 0x463   : > { %8131 = vmatprep.mubr.msk.f32.mxu1 %vm261_vm2, %v11462_v38 }
 0x466   : > { %8132 = vmatmul.mubr.msk.f32.gmra.mrb[20].mxu1 %vm261_vm2, %v11463_v57 }
 0x467   : > { %8134 = vmatprep.mubr.msk.f32.mxu1 %vm261_vm2, %v11464_v3  ;;  %v10744_v3 = vld [vmem:[#allocation2 + $0x182] sm:$0xff] }
 0x46a   : > { %8135 = vmatmul.mubr.msk.f32.gmra.mrb[22].mxu1 %vm261_vm2, %v11465_v61 }
 0x46b   : > { %8137 = vmatprep.mubr.msk.f32.mxu1 %vm261_vm2, %v11466_v6  ;;  %v10748_v6 = vld [vmem:[#allocation2 + $0x18a] sm:$0xff] }
 0x46e   : > { %8138 = vmatmul.mubr.msk.f32.gmra.mrb[24].mxu1 %vm261_vm2, %v11467_v8 }
 0x46f   : > { %8140 = vmatprep.mubr.msk.f32.mxu1 %vm261_vm2, %v11468_v9  ;;  %v6739_v9 = vld [vmem:[%s11178_s3 + $0x80] sm:$0xff] }
 0x472   : > { %8141 = vmatmul.mubr.msk.f32.gmra.mrb[26].mxu1 %vm261_vm2, %v11469_v11  ;;  %v6740_v11 = vld [vmem:[%s11178_s3 + $0x88] sm:$0xff] }
 0x473   : > { %8143 = vmatprep.mubr.msk.f32.mxu1 %vm261_vm2, %v10521_v39 }
 0x476   : > { %8144 = vmatmul.mubr.msk.f32.gmra.mrb[28].mxu1 %vm261_vm2, %v10525_v10  ;;  %v8337_v10 = vpack.c.bf16 %v6740_v11, %v6739_v9 }
 0x477   : > { %8146 = vmatprep.mubr.msk.f32.mxu1 %vm261_vm2, %v10744_v3 }
 0x47a   : > { %8147 = vmatmul.mubr.msk.f32.gmra.mrb[30].mxu1 %vm261_vm2, %v10748_v6 }
 0x47b   : > { %8153 = vmatprep.mubr.msk.f32.mxu1 %vm261_vm2, %v10285_v16  ;;  %v3172_v16 = vld [vmem:[#allocation2 + $0x198] sm:$0xff] }
 0x47e   : > { %8154 = vmatmul.mubr.msk.f32.vlgmr.msra.gmra.mrb[0].mxu1 %vm261_vm2, %v10289_v18  ;;  %v3173_v18 = vld [vmem:[#allocation2 + $0x1a0] sm:$0xff] }
 0x47f   : > { %8336 = vmatpush3.bf16.msra.mxu1 %v8333_v14  ;;  %8156 = vmatprep.mubr.msk.f32.mxu1 %vm261_vm2, %v10293_v60  ;;  %v11489_v60 = vld [vmem:[#allocation21_spill] sm:$0xff] }
 0x480   : > { %8338 = vmatprep.subr.bf16.mxu1 %v8337_v10 }
 0x482   : > { %8157 = vmatmul.mubr.msk.f32.gmra.mrb[2].mxu1 %vm261_vm2, %v10297_v20  ;;  %v11490_v20 = vld [vmem:[#allocation22_spill] sm:$0xff] }
 0x483   : > { %8159 = vmatprep.mubr.msk.f32.mxu1 %vm261_vm2, %v10301_v21  ;;  %v11491_v21 = vld [vmem:[#allocation23_spill] sm:$0xff] }
 0x486   : > { %8160 = vmatmul.mubr.msk.f32.gmra.mrb[4].mxu1 %vm261_vm2, %v10305_v22  ;;  %v11492_v22 = vld [vmem:[#allocation24_spill] sm:$0xff] }
 0x487   : > { %8162 = vmatprep.mubr.msk.f32.mxu1 %vm261_vm2, %v10309_v24  ;;  %v11493_v24 = vld [vmem:[#allocation26_spill] sm:$0xff] }
 0x48a   : > { %8163 = vmatmul.mubr.msk.f32.gmra.mrb[6].mxu1 %vm261_vm2, %v10313_v43  ;;  %v11494_v43 = vld [vmem:[#allocation27_spill] sm:$0xff] }
 0x48b   : > { %8165 = vmatprep.mubr.msk.f32.mxu1 %vm261_vm2, %v10317_v44  ;;  %v11495_v44 = vld [vmem:[#allocation30_spill] sm:$0xff] }
 0x48e   : > { %8166 = vmatmul.mubr.msk.f32.gmra.mrb[8].mxu1 %vm261_vm2, %v10321_v45  ;;  %v11496_v45 = vld [vmem:[#allocation32_spill] sm:$0xff] }
 0x48f   : > { %8168 = vmatprep.mubr.msk.f32.mxu1 %vm261_vm2, %v10325_v46  ;;  %v11497_v46 = vld [vmem:[#allocation34_spill] sm:$0xff] }
 0x492   : > { %8169 = vmatmul.mubr.msk.f32.gmra.mrb[10].mxu1 %vm261_vm2, %v10329_v47  ;;  %v3244_v47 = vld [vmem:[#allocation2 + $0x19a] sm:$0xff] }
 0x493   : > { %8171 = vmatprep.mubr.msk.f32.mxu1 %vm261_vm2, %v10333_v29  ;;  %v3245_v29 = vld [vmem:[#allocation2 + $0x1a2] sm:$0xff] }
 0x496   : > { %8172 = vmatmul.mubr.msk.f32.gmra.mrb[12].mxu1 %vm261_vm2, %v10337_v50  ;;  %v10950_v50 = vld [vmem:[%s11179_s4] ss:$0 sm:$0xff] }
 0x497   : > { %8174 = vmatprep.mubr.msk.f32.mxu1 %vm261_vm2, %v10341_v51 }
 0x49a   : > { %8175 = vmatmul.mubr.msk.f32.gmra.mrb[14].mxu1 %vm261_vm2, %v10345_v27 }
 0x49b   : > { %8177 = vmatprep.mubr.msk.f32.mxu1 %vm261_vm2, %v10349_v52 }
 0x49e   : > { %8178 = vmatmul.mubr.msk.f32.gmra.mrb[16].mxu1 %vm261_vm2, %v10353_v54 }
 0x49f   : > { %8180 = vmatprep.mubr.msk.f32.mxu1 %vm261_vm2, %v10357_v56 }
 0x4a2   : > { %8181 = vmatmul.mubr.msk.f32.gmra.mrb[18].mxu1 %vm261_vm2, %v10361_v58 }
 0x4a3   : > { %8183 = vmatprep.mubr.msk.f32.mxu1 %vm261_vm2, %v10365_v62 }
 0x4a6   : > { %8184 = vmatmul.mubr.msk.f32.gmra.mrb[20].mxu1 %vm261_vm2, %v10369_v0 }
 0x4a7   : > { %8186 = vmatprep.mubr.msk.f32.mxu1 %vm261_vm2, %v10373_v1 }
 0x4aa   : > { %8187 = vmatmul.mubr.msk.f32.gmra.mrb[22].mxu1 %vm261_vm2, %v10377_v2 }
 0x4ab   : > { %8189 = vmatprep.mubr.msk.f32.mxu1 %vm261_vm2, %v10381_v36 }
 0x4ae   : > { %8190 = vmatmul.mubr.msk.f32.gmra.mrb[24].mxu1 %vm261_vm2, %v10385_v34 }
 0x4af   : > { %8192 = vmatprep.mubr.msk.f32.mxu1 %vm261_vm2, %v10389_v37 }
 0x4b2   : > { %8193 = vmatmul.mubr.msk.f32.gmra.mrb[26].mxu1 %vm261_vm2, %v10393_v41 }
 0x4b3   : > { %8195 = vmatprep.mubr.msk.f32.mxu1 %vm261_vm2, %v10596_v33 }
 0x4b6   : > { %8196 = vmatmul.mubr.msk.f32.gmra.mrb[28].mxu1 %vm261_vm2, %v10600_v12 }
 0x4b7   : > { %8198 = vmatprep.mubr.msk.f32.mxu1 %vm261_vm2, %v3172_v16 }
 0x4ba   : > { %8199 = vmatmul.mubr.msk.f32.gmra.mrb[30].mxu1 %vm261_vm2, %v3173_v18 }
 0x4bb   : > { %8205 = vmatprep.mubr.msk.f32.mxu1 %vm261_vm2, %v10105_v17  ;;  %v11470_v17 = vld [vmem:[#allocation18_spill] sm:$0xff] }
 0x4be   : > { %8206 = vmatmul.mubr.msk.f32.vlgmr.msra.gmra.mrb[0].mxu1 %vm261_vm2, %v10111_v19  ;;  %v11471_v19 = vld [vmem:[#allocation19_spill] sm:$0xff] }
 0x4bf   : > { %8340 = vmatpush3.bf16.msra.mxu1 %v8337_v10  ;;  %8208 = vmatprep.mubr.msk.f32.mxu1 %vm261_vm2, %v10117_v25  ;;  %v11472_v25 = vld [vmem:[#allocation25_spill] sm:$0xff] }
 0x4c2   : > { %8209 = vmatmul.mubr.msk.f32.gmra.mrb[2].mxu1 %vm261_vm2, %v10123_v42  ;;  %v11473_v42 = vld [vmem:[#allocation35_spill] sm:$0xff] }
 0x4c3   : > { %8211 = vmatprep.mubr.msk.f32.mxu1 %vm261_vm2, %v10129_v48  ;;  %v11474_v48 = vld [vmem:[#allocation37_spill] sm:$0xff] }
 0x4c6   : > { %8212 = vmatmul.mubr.msk.f32.gmra.mrb[4].mxu1 %vm261_vm2, %v10135_v28  ;;  %v11475_v28 = vld [vmem:[#allocation38_spill] sm:$0xff] }
 0x4c7   : > { %8214 = vmatprep.mubr.msk.f32.mxu1 %vm261_vm2, %v10141_v30  ;;  %v11476_v30 = vld [vmem:[#allocation40_spill] sm:$0xff] }
 0x4ca   : > { %8215 = vmatmul.mubr.msk.f32.gmra.mrb[6].mxu1 %vm261_vm2, %v10147_v53  ;;  %v11477_v53 = vld [vmem:[#allocation41_spill] sm:$0xff] }
 0x4cb   : > { %8217 = vmatprep.mubr.msk.f32.mxu1 %vm261_vm2, %v10153_v59  ;;  %v3208_v59 = vld [vmem:[#allocation2 + $0x199] sm:$0xff] }
 0x4ce   : > { %8218 = vmatmul.mubr.msk.f32.gmra.mrb[8].mxu1 %vm261_vm2, %v10159_v63  ;;  %v11478_v63 = vld [vmem:[#allocation43_spill] sm:$0xff] }
 0x4cf   : > { %8220 = vmatprep.mubr.msk.f32.mxu1 %vm261_vm2, %v10165_v5  ;;  %v3209_v5 = vld [vmem:[#allocation2 + $0x1a1] sm:$0xff] }
 0x4d2   : > { %8221 = vmatmul.mubr.msk.f32.gmra.mrb[10].mxu1 %vm261_vm2, %v10171_v35  ;;  %v11479_v35 = vld [vmem:[#allocation11_spill] sm:$0xff] }
 0x4d3   : > { %8223 = vmatprep.mubr.msk.f32.mxu1 %vm261_vm2, %v10177_v4  ;;  %v11480_v4 = vld [vmem:[#allocation12_spill] sm:$0xff] }
 0x4d6   : > { %8224 = vmatmul.mubr.msk.f32.gmra.mrb[12].mxu1 %vm261_vm2, %v10183_v40  ;;  %v11481_v40 = vld [vmem:[#allocation13_spill] sm:$0xff] }
 0x4d7   : > { %8226 = vmatprep.mubr.msk.f32.mxu1 %vm261_vm2, %v10189_v13  ;;  %v11482_v13 = vld [vmem:[#allocation14_spill] sm:$0xff] }
 0x4da   : > { %8227 = vmatmul.mubr.msk.f32.gmra.mrb[14].mxu1 %vm261_vm2, %v10195_v15  ;;  %v11483_v15 = vld [vmem:[#allocation15_spill] sm:$0xff] }
 0x4db   : > { %8229 = vmatprep.mubr.msk.f32.mxu1 %vm261_vm2, %v10201_v23  ;;  %v11484_v23 = vld [vmem:[#allocation16_spill] sm:$0xff] }
 0x4de   : > { %8230 = vmatmul.mubr.msk.f32.gmra.mrb[16].mxu1 %vm261_vm2, %v10207_v26  ;;  %v11485_v26 = vld [vmem:[#allocation17_spill] sm:$0xff] }
 0x4df   : > { %8232 = vmatprep.mubr.msk.f32.mxu1 %vm261_vm2, %v10213_v49  ;;  %v11486_v49 = vld [vmem:[#allocation44_spill] sm:$0xff] }
 0x4e2   : > { %8233 = vmatmul.mubr.msk.f32.gmra.mrb[18].mxu1 %vm261_vm2, %v10219_v32  ;;  %v11487_v32 = vld [vmem:[#allocation45_spill] sm:$0xff] }
 0x4e3   : > { %8235 = vmatprep.mubr.msk.f32.mxu1 %vm261_vm2, %v10225_v55  ;;  %v11488_v55 = vld [vmem:[#allocation20_spill] sm:$0xff] }
 0x4e6   : > { %8236 = vmatmul.mubr.msk.f32.gmra.mrb[20].mxu1 %vm261_vm2, %v11470_v17 }
 0x4e7   : > { %8238 = vmatprep.mubr.msk.f32.mxu1 %vm261_vm2, %v11471_v19 }
 0x4ea   : > { %8239 = vmatmul.mubr.msk.f32.gmra.mrb[22].mxu1 %vm261_vm2, %v11472_v25 }
 0x4eb   : > { %8241 = vmatprep.mubr.msk.f32.mxu1 %vm261_vm2, %v11473_v42 }
 0x4ee   : > { %8242 = vmatmul.mubr.msk.f32.gmra.mrb[24].mxu1 %vm261_vm2, %v11474_v48 }
 0x4ef   : > { %8244 = vmatprep.mubr.msk.f32.mxu1 %vm261_vm2, %v11475_v28 }
 0x4f2   : > { %8245 = vmatmul.mubr.msk.f32.gmra.mrb[26].mxu1 %vm261_vm2, %v11476_v30 }
 0x4f3   : > { %8247 = vmatprep.mubr.msk.f32.mxu1 %vm261_vm2, %v11477_v53 }
 0x4f6   : > { %8248 = vmatmul.mubr.msk.f32.gmra.mrb[28].mxu1 %vm261_vm2, %v11478_v63 }
 0x4f7   : > { %8250 = vmatprep.mubr.msk.f32.mxu1 %vm261_vm2, %v3208_v59 }
 0x4fa   : > { %8251 = vmatmul.mubr.msk.f32.gmra.mrb[30].mxu1 %vm261_vm2, %v3209_v5 }
 0x4fb   : > { %8257 = vmatprep.mubr.msk.f32.mxu1 %vm261_vm2, %v11444_v7 }
 0x4fe   : > { %8258 = vmatmul.mubr.msk.f32.vlgmr.msra.gmra.mrb[0].mxu1 %vm261_vm2, %v11445_v31 }
 0x4ff   : > { %8260 = vmatprep.mubr.msk.f32.mxu1 %vm261_vm2, %v11479_v35 }
 0x502   : > { %8261 = vmatmul.mubr.msk.f32.gmra.mrb[2].mxu1 %vm261_vm2, %v11480_v4 }
 0x503   : > { %8263 = vmatprep.mubr.msk.f32.mxu1 %vm261_vm2, %v11481_v40 }
 0x506   : > { %8264 = vmatmul.mubr.msk.f32.gmra.mrb[4].mxu1 %vm261_vm2, %v11482_v13 }
 0x507   : > { %8266 = vmatprep.mubr.msk.f32.mxu1 %vm261_vm2, %v11483_v15 }
 0x50a   : > { %8267 = vmatmul.mubr.msk.f32.gmra.mrb[6].mxu1 %vm261_vm2, %v11484_v23 }
 0x50b   : > { %8269 = vmatprep.mubr.msk.f32.mxu1 %vm261_vm2, %v11485_v26 }
 0x50e   : > { %8270 = vmatmul.mubr.msk.f32.gmra.mrb[8].mxu1 %vm261_vm2, %v11486_v49 }
 0x50f   : > { %8272 = vmatprep.mubr.msk.f32.mxu1 %vm261_vm2, %v11487_v32 }
 0x512   : > { %8273 = vmatmul.mubr.msk.f32.gmra.mrb[10].mxu1 %vm261_vm2, %v11488_v55 }
 0x513   : > { %8275 = vmatprep.mubr.msk.f32.mxu1 %vm261_vm2, %v11489_v60 }
 0x516   : > { %8276 = vmatmul.mubr.msk.f32.gmra.mrb[12].mxu1 %vm261_vm2, %v11490_v20 }
 0x517   : > { %8278 = vmatprep.mubr.msk.f32.mxu1 %vm261_vm2, %v11491_v21 }
 0x51a   : > { %8279 = vmatmul.mubr.msk.f32.gmra.mrb[14].mxu1 %vm261_vm2, %v11492_v22 }
 0x51b   : > { %8281 = vmatprep.mubr.msk.f32.mxu1 %vm261_vm2, %v11493_v24 }
 0x51e   : > { %8282 = vmatmul.mubr.msk.f32.gmra.mrb[16].mxu1 %vm261_vm2, %v11494_v43 }
 0x51f   : > { %8284 = vmatprep.mubr.msk.f32.mxu1 %vm261_vm2, %v11462_v38  ;;  %v11498_v38 = vld [vmem:[#allocation36_spill] sm:$0xff] }
 0x522   : > { %8285 = vmatmul.mubr.msk.f32.gmra.mrb[18].mxu1 %vm261_vm2, %v11463_v57  ;;  %v11499_v57 = vld [vmem:[#allocation39_spill] sm:$0xff] }
 0x523   : > { %8287 = vmatprep.mubr.msk.f32.mxu1 %vm261_vm2, %v11495_v44 }
 0x526   : > { %8288 = vmatmul.mubr.msk.f32.gmra.mrb[20].mxu1 %vm261_vm2, %v11465_v61 }
 0x527   : > { %8290 = vmatprep.mubr.msk.f32.mxu1 %vm261_vm2, %v11496_v45 }
 0x52a   : > { %8291 = vmatmul.mubr.msk.f32.gmra.mrb[22].mxu1 %vm261_vm2, %v11467_v8 }
 0x52b   : > { %8293 = vmatprep.mubr.msk.f32.mxu1 %vm261_vm2, %v11497_v46 }
 0x52e   : > { %8294 = vmatmul.mubr.msk.f32.gmra.mrb[24].mxu1 %vm261_vm2, %v11498_v38 }
 0x52f   : > { %8296 = vmatprep.mubr.msk.f32.mxu1 %vm261_vm2, %v10521_v39 }
 0x532   : > { %8297 = vmatmul.mubr.msk.f32.gmra.mrb[26].mxu1 %vm261_vm2, %v11499_v57 }
 0x533   : > { %8299 = vmatprep.mubr.msk.f32.mxu1 %vm261_vm2, %v10744_v3 }
 0x536   : > { %8300 = vmatmul.mubr.msk.f32.gmra.mrb[28].mxu1 %vm261_vm2, %v10748_v6 }
 0x537   : > { %8302 = vmatprep.mubr.msk.f32.mxu1 %vm261_vm2, %v3244_v47 }
 0x53a   : > { %8303 = vmatmul.mubr.msk.f32.gmra.mrb[30].mxu1 %vm261_vm2, %v3245_v29 }
 0x5d1   : > { %v8259_v51 = vpop.f32.mrb[0].mxu1 }
 0x5d2   : > { %v5853_v3 = vadd.f32 %v8259_v51, %v10950_v50  ;;  %v5654_v27 = vpop.f32.mrb[1].mxu1 }
 0x5d3   : > { %v5852_v52 = vadd.f32 %v10950_v50, %v5654_v27 }
 0x5d4   : > { %v5885_v54 = vmax.f32 %v5853_v3, 0.0 }
 0x5d5   : > { %v5884_v56 = vmax.f32 %v5852_v52, 0.0  ;;  %v8262_v58 = vpop.f32.mrb[2].mxu1 }
 0x5d6   : > { %5917 = vst.msk [vmem:[%s10955_s14 + $0x8] sm:$0xff] %vm261_vm2, %v5885_v54  ;;  %v5855_v62 = vadd.f32 %v8262_v58, %v10950_v50  ;;  %v5664_v0 = vpop.f32.mrb[3].mxu1 }
 0x5d7   : > { %5916 = vst.msk [vmem:[%s10955_s14] sm:$0xff] %vm261_vm2, %v5884_v56  ;;  %v5854_v1 = vadd.f32 %v10950_v50, %v5664_v0 }
 0x5d8   : > { %v5887_v2 = vmax.f32 %v5855_v62, 0.0 }
 0x5d9   : > { %v5886_v36 = vmax.f32 %v5854_v1, 0.0  ;;  %v8265_v34 = vpop.f32.mrb[4].mxu1 }
 0x5da   : > { %5919 = vst.msk [vmem:[%s10955_s14 + $0x18] sm:$0xff] %vm261_vm2, %v5887_v2  ;;  %v5949_v37 = vmax.f32 %v5885_v54, %v5887_v2  ;;  %v5857_v41 = vadd.f32 %v8265_v34, %v10950_v50  ;;  %v5674_v39 = vpop.f32.mrb[5].mxu1 }
 0x5db   : > { %5918 = vst.msk [vmem:[%s10955_s14 + $0x10] sm:$0xff] %vm261_vm2, %v5886_v36  ;;  %v5948_v10 = vmax.f32 %v5884_v56, %v5886_v36  ;;  %v5856_v33 = vadd.f32 %v10950_v50, %v5674_v39 }
 0x5dc   : > { %5965 = vst.msk [vmem:[#allocation3 + $0x8] sm:$0xff] %vm261_vm2, %v5949_v37  ;;  %v5889_v12 = vmax.f32 %v5857_v41, 0.0 }
 0x5dd   : > { %5964 = vst.msk [vmem:[#allocation3] sm:$0xff] %vm261_vm2, %v5948_v10  ;;  %v5888_v31 = vmax.f32 %v5856_v33, 0.0  ;;  %v8268_v14 = vpop.f32.mrb[6].mxu1 }
 0x5de   : > { %5921 = vst.msk [vmem:[%s10955_s14 + $0x28] sm:$0xff] %vm261_vm2, %v5889_v12  ;;  %v5859_v7 = vadd.f32 %v8268_v14, %v10950_v50  ;;  %v5684_v61 = vpop.f32.mrb[7].mxu1 }
 0x5df   : > { %5920 = vst.msk [vmem:[%s10955_s14 + $0x20] sm:$0xff] %vm261_vm2, %v5888_v31  ;;  %v5858_v6 = vadd.f32 %v10950_v50, %v5684_v61 }
 0x5e0   : > { %v5891_v8 = vmax.f32 %v5859_v7, 0.0 }
 0x5e1   : > { %v5890_v9 = vmax.f32 %v5858_v6, 0.0  ;;  %v8271_v11 = vpop.f32.mrb[8].mxu1 }
 0x5e2   : > { %5923 = vst.msk [vmem:[%s10955_s14 + $0x38] sm:$0xff] %vm261_vm2, %v5891_v8  ;;  %v5951_v16 = vmax.f32 %v5889_v12, %v5891_v8  ;;  %v5861_v18 = vadd.f32 %v8271_v11, %v10950_v50  ;;  %v5694_v17 = vpop.f32.mrb[9].mxu1 }
 0x5e3   : > { %5922 = vst.msk [vmem:[%s10955_s14 + $0x30] sm:$0xff] %vm261_vm2, %v5890_v9  ;;  %v5950_v19 = vmax.f32 %v5888_v31, %v5890_v9  ;;  %v5860_v25 = vadd.f32 %v10950_v50, %v5694_v17 }
 0x5e4   : > { %v5980_v42 = vld [vmem:[#allocation3] ss:$2 sm:$0xff]  ;;  %v5996_v48 = vld [vmem:[#allocation3 + $0x1] ss:$2 sm:$0xff]  ;;  %5967 = vst.msk [vmem:[#allocation3 + $0x18] sm:$0xff] %vm261_vm2, %v5951_v16  ;;  %v5893_v28 = vmax.f32 %v5861_v18, 0.0 }
 0x5e5   : > { %v6011_v30 = vmax.f32 %v5980_v42, %v5996_v48  ;;  %5966 = vst.msk [vmem:[#allocation3 + $0x10] sm:$0xff] %vm261_vm2, %v5950_v19  ;;  %v5892_v53 = vmax.f32 %v5860_v25, 0.0  ;;  %v8274_v59 = vpop.f32.mrb[10].mxu1 }
 0x5e6   : > { %5925 = vst.msk [vmem:[%s10955_s14 + $0x48] sm:$0xff] %vm261_vm2, %v5893_v28  ;;  %v5863_v63 = vadd.f32 %v8274_v59, %v10950_v50  ;;  %v5704_v5 = vpop.f32.mrb[11].mxu1 }
 0x5e7   : > { %5924 = vst.msk [vmem:[%s10955_s14 + $0x40] sm:$0xff] %vm261_vm2, %v5892_v53  ;;  %v5862_v35 = vadd.f32 %v10950_v50, %v5704_v5  ;;  %6019 = vst.msk [vmem:[%s10992_s16] sm:$0xff] %vm261_vm2, %v6011_v30 }
 0x5e8   : > { %v5895_v4 = vmax.f32 %v5863_v63, 0.0 }
 0x5e9   : > { %v5894_v40 = vmax.f32 %v5862_v35, 0.0  ;;  %v8277_v13 = vpop.f32.mrb[12].mxu1 }
 0x5ea   : > { %5927 = vst.msk [vmem:[%s10955_s14 + $0x58] sm:$0xff] %vm261_vm2, %v5895_v4  ;;  %v5953_v15 = vmax.f32 %v5893_v28, %v5895_v4  ;;  %v5865_v23 = vadd.f32 %v8277_v13, %v10950_v50  ;;  %v5714_v26 = vpop.f32.mrb[13].mxu1 }
 0x5eb   : > { %5926 = vst.msk [vmem:[%s10955_s14 + $0x50] sm:$0xff] %vm261_vm2, %v5894_v40  ;;  %v5952_v49 = vmax.f32 %v5892_v53, %v5894_v40  ;;  %v5864_v32 = vadd.f32 %v10950_v50, %v5714_v26 }
 0x5ec   : > { %v5982_v55 = vld [vmem:[#allocation3 + $0x10] ss:$2 sm:$0xff]  ;;  %v5998_v60 = vld [vmem:[#allocation3 + $0x11] ss:$2 sm:$0xff]  ;;  %5969 = vst.msk [vmem:[#allocation3 + $0x28] sm:$0xff] %vm261_vm2, %v5953_v15  ;;  %v5897_v20 = vmax.f32 %v5865_v23, 0.0 }
 0x5ed   : > { %v6012_v21 = vmax.f32 %v5982_v55, %v5998_v60  ;;  %5968 = vst.msk [vmem:[#allocation3 + $0x20] sm:$0xff] %vm261_vm2, %v5952_v49  ;;  %v5896_v22 = vmax.f32 %v5864_v32, 0.0  ;;  %v8280_v24 = vpop.f32.mrb[14].mxu1 }
 0x5ee   : > { %5929 = vst.msk [vmem:[%s10955_s14 + $0x68] sm:$0xff] %vm261_vm2, %v5897_v20  ;;  %v5867_v43 = vadd.f32 %v8280_v24, %v10950_v50  ;;  %v5724_v44 = vpop.f32.mrb[15].mxu1 }
 0x5ef   : > { %5928 = vst.msk [vmem:[%s10955_s14 + $0x60] sm:$0xff] %vm261_vm2, %v5896_v22  ;;  %v5866_v45 = vadd.f32 %v10950_v50, %v5724_v44  ;;  %6020 = vst.msk [vmem:[%s10992_s16 + $0x8] sm:$0xff] %vm261_vm2, %v6012_v21 }
 0x5f0   : > { %v5899_v46 = vmax.f32 %v5867_v43, 0.0 }
 0x5f1   : > { %v5898_v38 = vmax.f32 %v5866_v45, 0.0  ;;  %v8283_v57 = vpop.f32.mrb[16].mxu1 }
 0x5f2   : > { %5931 = vst.msk [vmem:[%s10955_s14 + $0x78] sm:$0xff] %vm261_vm2, %v5899_v46  ;;  %v5955_v47 = vmax.f32 %v5897_v20, %v5899_v46  ;;  %v5869_v29 = vadd.f32 %v8283_v57, %v10950_v50  ;;  %v5734_v51 = vpop.f32.mrb[17].mxu1 }
 0x5f3   : > { %5930 = vst.msk [vmem:[%s10955_s14 + $0x70] sm:$0xff] %vm261_vm2, %v5898_v38  ;;  %v5954_v3 = vmax.f32 %v5896_v22, %v5898_v38  ;;  %v5868_v27 = vadd.f32 %v10950_v50, %v5734_v51 }
 0x5f4   : > { %v5984_v52 = vld [vmem:[#allocation3 + $0x20] ss:$2 sm:$0xff]  ;;  %v6000_v54 = vld [vmem:[#allocation3 + $0x21] ss:$2 sm:$0xff]  ;;  %5971 = vst.msk [vmem:[#allocation3 + $0x38] sm:$0xff] %vm261_vm2, %v5955_v47  ;;  %v5901_v56 = vmax.f32 %v5869_v29, 0.0 }
 0x5f5   : > { %v6013_v58 = vmax.f32 %v5984_v52, %v6000_v54  ;;  %5970 = vst.msk [vmem:[#allocation3 + $0x30] sm:$0xff] %vm261_vm2, %v5954_v3  ;;  %v5900_v62 = vmax.f32 %v5868_v27, 0.0  ;;  %v8286_v0 = vpop.f32.mrb[18].mxu1 }
 0x5f6   : > { %5933 = vst.msk [vmem:[%s10955_s14 + $0x88] sm:$0xff] %vm261_vm2, %v5901_v56  ;;  %v5871_v1 = vadd.f32 %v8286_v0, %v10950_v50  ;;  %v5744_v2 = vpop.f32.mrb[19].mxu1 }
 0x5f7   : > { %5932 = vst.msk [vmem:[%s10955_s14 + $0x80] sm:$0xff] %vm261_vm2, %v5900_v62  ;;  %v5870_v36 = vadd.f32 %v10950_v50, %v5744_v2  ;;  %6021 = vst.msk [vmem:[%s10992_s16 + $0x10] sm:$0xff] %vm261_vm2, %v6013_v58 }
 0x5f8   : > { %v5903_v34 = vmax.f32 %v5871_v1, 0.0 }
 0x5f9   : > { %v5902_v37 = vmax.f32 %v5870_v36, 0.0  ;;  %v8289_v41 = vpop.f32.mrb[20].mxu1 }
 0x5fa   : > { %5935 = vst.msk [vmem:[%s10955_s14 + $0x98] sm:$0xff] %vm261_vm2, %v5903_v34  ;;  %v5957_v39 = vmax.f32 %v5901_v56, %v5903_v34  ;;  %v5873_v10 = vadd.f32 %v8289_v41, %v10950_v50  ;;  %v5754_v33 = vpop.f32.mrb[21].mxu1 }
 0x5fb   : > { %5934 = vst.msk [vmem:[%s10955_s14 + $0x90] sm:$0xff] %vm261_vm2, %v5902_v37  ;;  %v5956_v12 = vmax.f32 %v5900_v62, %v5902_v37  ;;  %v5872_v31 = vadd.f32 %v10950_v50, %v5754_v33 }
 0x5fc   : > { %v5986_v14 = vld [vmem:[#allocation3 + $0x30] ss:$2 sm:$0xff]  ;;  %v6002_v7 = vld [vmem:[#allocation3 + $0x31] ss:$2 sm:$0xff]  ;;  %5973 = vst.msk [vmem:[#allocation3 + $0x48] sm:$0xff] %vm261_vm2, %v5957_v39  ;;  %v5905_v61 = vmax.f32 %v5873_v10, 0.0 }
 0x5fd   : > { %v6014_v6 = vmax.f32 %v5986_v14, %v6002_v7  ;;  %5972 = vst.msk [vmem:[#allocation3 + $0x40] sm:$0xff] %vm261_vm2, %v5956_v12  ;;  %v5904_v8 = vmax.f32 %v5872_v31, 0.0  ;;  %v8292_v9 = vpop.f32.mrb[22].mxu1 }
 0x5fe   : > { %5937 = vst.msk [vmem:[%s10955_s14 + $0xa8] sm:$0xff] %vm261_vm2, %v5905_v61  ;;  %v5875_v11 = vadd.f32 %v8292_v9, %v10950_v50  ;;  %v5764_v16 = vpop.f32.mrb[23].mxu1 }
 0x5ff   : > { %5936 = vst.msk [vmem:[%s10955_s14 + $0xa0] sm:$0xff] %vm261_vm2, %v5904_v8  ;;  %v5874_v18 = vadd.f32 %v10950_v50, %v5764_v16  ;;  %6022 = vst.msk [vmem:[%s10992_s16 + $0x18] sm:$0xff] %vm261_vm2, %v6014_v6 }
 0x600   : > { %v5907_v17 = vmax.f32 %v5875_v11, 0.0 }
 0x601   : > { %v5906_v19 = vmax.f32 %v5874_v18, 0.0  ;;  %v8295_v25 = vpop.f32.mrb[24].mxu1 }
 0x602   : > { %5939 = vst.msk [vmem:[%s10955_s14 + $0xb8] sm:$0xff] %vm261_vm2, %v5907_v17  ;;  %v5959_v42 = vmax.f32 %v5905_v61, %v5907_v17  ;;  %v5877_v48 = vadd.f32 %v8295_v25, %v10950_v50  ;;  %v5774_v28 = vpop.f32.mrb[25].mxu1 }
 0x603   : > { %5938 = vst.msk [vmem:[%s10955_s14 + $0xb0] sm:$0xff] %vm261_vm2, %v5906_v19  ;;  %v5958_v30 = vmax.f32 %v5904_v8, %v5906_v19  ;;  %v5876_v53 = vadd.f32 %v10950_v50, %v5774_v28 }
 0x604   : > { %v5988_v59 = vld [vmem:[#allocation3 + $0x40] ss:$2 sm:$0xff]  ;;  %v6004_v63 = vld [vmem:[#allocation3 + $0x41] ss:$2 sm:$0xff]  ;;  %5975 = vst.msk [vmem:[#allocation3 + $0x58] sm:$0xff] %vm261_vm2, %v5959_v42  ;;  %v5909_v5 = vmax.f32 %v5877_v48, 0.0 }
 0x605   : > { %v6015_v35 = vmax.f32 %v5988_v59, %v6004_v63  ;;  %5974 = vst.msk [vmem:[#allocation3 + $0x50] sm:$0xff] %vm261_vm2, %v5958_v30  ;;  %v5908_v4 = vmax.f32 %v5876_v53, 0.0  ;;  %v8298_v40 = vpop.f32.mrb[26].mxu1 }
 0x606   : > { %5941 = vst.msk [vmem:[%s10955_s14 + $0xc8] sm:$0xff] %vm261_vm2, %v5909_v5  ;;  %v5879_v13 = vadd.f32 %v8298_v40, %v10950_v50  ;;  %v5784_v15 = vpop.f32.mrb[27].mxu1 }
 0x607   : > { %5940 = vst.msk [vmem:[%s10955_s14 + $0xc0] sm:$0xff] %vm261_vm2, %v5908_v4  ;;  %v5878_v23 = vadd.f32 %v10950_v50, %v5784_v15  ;;  %6023 = vst.msk [vmem:[%s10992_s16 + $0x20] sm:$0xff] %vm261_vm2, %v6015_v35 }
 0x608   : > { %v5911_v26 = vmax.f32 %v5879_v13, 0.0 }
 0x609   : > { %v5910_v49 = vmax.f32 %v5878_v23, 0.0  ;;  %v8301_v32 = vpop.f32.mrb[28].mxu1 }
 0x60a   : > { %5943 = vst.msk [vmem:[%s10955_s14 + $0xd8] sm:$0xff] %vm261_vm2, %v5911_v26  ;;  %v5961_v55 = vmax.f32 %v5909_v5, %v5911_v26  ;;  %v5881_v60 = vadd.f32 %v8301_v32, %v10950_v50  ;;  %v5794_v20 = vpop.f32.mrb[29].mxu1 }
 0x60b   : > { %5942 = vst.msk [vmem:[%s10955_s14 + $0xd0] sm:$0xff] %vm261_vm2, %v5910_v49  ;;  %v5960_v21 = vmax.f32 %v5908_v4, %v5910_v49  ;;  %v5880_v22 = vadd.f32 %v10950_v50, %v5794_v20 }
 0x60c   : > { %v5990_v24 = vld [vmem:[#allocation3 + $0x50] ss:$2 sm:$0xff]  ;;  %v6006_v43 = vld [vmem:[#allocation3 + $0x51] ss:$2 sm:$0xff]  ;;  %5977 = vst.msk [vmem:[#allocation3 + $0x68] sm:$0xff] %vm261_vm2, %v5961_v55  ;;  %v5913_v44 = vmax.f32 %v5881_v60, 0.0 }
 0x60d   : > { %v6016_v45 = vmax.f32 %v5990_v24, %v6006_v43  ;;  %5976 = vst.msk [vmem:[#allocation3 + $0x60] sm:$0xff] %vm261_vm2, %v5960_v21  ;;  %v5912_v46 = vmax.f32 %v5880_v22, 0.0  ;;  %v8304_v38 = vpop.f32.mrb[30].mxu1 }
 0x60e   : > { %5945 = vst.msk [vmem:[%s10955_s14 + $0xe8] sm:$0xff] %vm261_vm2, %v5913_v44  ;;  %v5883_v57 = vadd.f32 %v8304_v38, %v10950_v50  ;;  %v5804_v47 = vpop.f32.mrb[31].mxu1 }
 0x60f   : > { %5944 = vst.msk [vmem:[%s10955_s14 + $0xe0] sm:$0xff] %vm261_vm2, %v5912_v46  ;;  %v5882_v29 = vadd.f32 %v10950_v50, %v5804_v47  ;;  %6024 = vst.msk [vmem:[%s10992_s16 + $0x28] sm:$0xff] %vm261_vm2, %v6016_v45 }
 0x610   : > { %v5915_v51 = vmax.f32 %v5883_v57, 0.0 }
 0x611   : > { %v5914_v3 = vmax.f32 %v5882_v29, 0.0 }
 0x612   : > { %5947 = vst.msk [vmem:[%s10955_s14 + $0xf8] sm:$0xff] %vm261_vm2, %v5915_v51  ;;  %v5963_v27 = vmax.f32 %v5913_v44, %v5915_v51 }
 0x613   : > { %5946 = vst.msk [vmem:[%s10955_s14 + $0xf0] sm:$0xff] %vm261_vm2, %v5914_v3  ;;  %v5962_v50 = vmax.f32 %v5912_v46, %v5914_v3 }
 0x614   : > { %v5992_v52 = vld [vmem:[#allocation3 + $0x60] ss:$2 sm:$0xff]  ;;  %v6008_v54 = vld [vmem:[#allocation3 + $0x61] ss:$2 sm:$0xff]  ;;  %5979 = vst.msk [vmem:[#allocation3 + $0x78] sm:$0xff] %vm261_vm2, %v5963_v27 }
 0x615   : > { %8914 = shalt.err (!%p8911_p3)
}
 0x616   : > { %s8915_s13 = scalar_lea.hbm %s11081_s26, 4096  ;;  %s8919_s18 = scalar_lea.hbm %s11181_s6, 8192 }
 0x617   : > { %p8916_p4 = scmp.ne.s32.totalorder %s11081_s26, %s8915_s13  ;;  %p8920_p9 = scmp.lt.u32.totalorder %s11081_s26, %s11181_s6 }
 0x618   : > { %p8921_p10 = scmp.lt.u32.totalorder %s8919_s18, %s8915_s13  ;;  %p8923_p12 = scmp.lt.u32.totalorder %s8915_s13, %s11081_s26 }
 0x619   : > { %p8917_p7 = pnand %p8916_p4, %p9075_p5 }
 0x61a   : > { %p8922_p11 = por %p8921_p10, %p8920_p9 }
 0x61b   : > { %p8918_p8 = pneg %p8917_p7 }
 0x61c   : > { %p8924_p13 = por %p8923_p12, %p8922_p11 }
 0x61e   : > { %p8925_p0 = pnand %p8924_p13, %p8918_p8 }
 0x620   : > { %8928 = shalt.err (!%p8925_p0)
}
 0x621   : > { %s8999_s29 = smov 128   ;;  %s9000_s9 = smov 8   ;;  %v6017_v56 = vmax.f32 %v5992_v52, %v6008_v54  ;;  %5978 = vst.msk [vmem:[#allocation3 + $0x70] sm:$0xff] %vm261_vm2, %v5962_v50 }
 0x622   : > { %8855 = dma.vmem_to_hbm [thread:$0]  (%p9075_p5), %s11083_s19, 4096, %s11081_s26, %s6033_s28, %s8999_s29, %s8999_s29, %s9000_s9  }
 0x623   : > { %6025 = vst.msk [vmem:[%s10992_s16 + $0x30] sm:$0xff] %vm261_vm2, %v6017_v56  ;;  %s6782_s11 = sshll.u32 %s9058_s25, 10  ;;  %s6046_s12 = sshll.u32 %s10992_s16, 4  ;;  %s11127_s12 = int_to_ptr.vmem [resolvable:$true] %s6046_s12 }
 0x624   : > { %s11125_s15 = scalar_lea.hbm %s11180_s5, %s6782_s11  ;;  %s6028_s19 = scalar_lea.sflag [#allocation5], %s10945_s10 }
 0x625   : > { %s8929_s26 = scalar_lea.vmem %s11127_s12, 1024  ;;  %s9001_s25 = smov [#allocation4]  }
 0x626   : > { %p8930_p1 = scmp.ne.s32.totalorder %s11127_s12, %s8929_s26  ;;  %s8933_s28 = sshll.u32 %s9001_s25, 4  ;;  %s8934_s28 = int_to_ptr.vmem [resolvable:$false] %s8933_s28 }
 0x627   : > { %s8935_s18 = scalar_lea.vmem %s8934_s28, 2048  ;;  %p8936_p4 = scmp.lt.s32.totalorder %s11127_s12, %s8934_s28 }
 0x628   : > { %v5994_v58 = vld [vmem:[#allocation3 + $0x70] ss:$2 sm:$0xff]  ;;  %v6010_v62 = vld [vmem:[#allocation3 + $0x71] ss:$2 sm:$0xff]  ;;  %p8931_p2 = pnand %p8930_p1, %p9075_p5  ;;  %p8937_p7 = scmp.lt.s32.totalorder %s8935_s18, %s8929_s26 }
 0x629   : > { %v6018_v0 = vmax.f32 %v5994_v58, %v6010_v62 }
 0x62a   : > { %p8932_p3 = pneg %p8931_p2  ;;  %p8938_p8 = por %p8937_p7, %p8936_p4 }
 0x62b   : > { %6026 = vst.msk [vmem:[%s10992_s16 + $0x38] sm:$0xff] %vm261_vm2, %v6018_v0 }
 0x62c   : > { %p8939_p9 = pnand %p8938_p8, %p8932_p3 }
 0x62e   : > { %8942 = shalt.err (!%p8939_p9)
}
 0x62f   : > { %s8943_s16 = scalar_lea.hbm %s11125_s15, 1024  ;;  %s8947_s11 = scalar_lea.hbm %s11180_s5, 2048 }
 0x630   : > { %p8944_p10 = scmp.ne.s32.totalorder %s11125_s15, %s8943_s16  ;;  %p8948_p13 = scmp.lt.u32.totalorder %s11125_s15, %s11180_s5 }
 0x631   : > { %p8949_p0 = scmp.lt.u32.totalorder %s8947_s11, %s8943_s16  ;;  %p8951_p2 = scmp.lt.u32.totalorder %s8943_s16, %s11125_s15 }
 0x632   : > { %p8945_p11 = pnand %p8944_p10, %p9075_p5 }
 0x633   : > { %p8950_p1 = por %p8949_p0, %p8948_p13 }
 0x634   : > { %p8946_p12 = pneg %p8945_p11 }
 0x635   : > { %p8952_p3 = por %p8951_p2, %p8950_p1 }
 0x637   : > { %p8953_p4 = pnand %p8952_p3, %p8946_p12 }
 0x639   : > { %8956 = shalt.err (!%p8953_p4)
}
 0x63a   : > { %8854 = dma.vmem_to_hbm [thread:$0]  (%p9075_p5), %s11127_s12, 1024, %s11125_s15, %s6028_s19, %s8999_s29, %s8999_s29, %s9000_s9  }
 0x63b PF: > { %p8865_p7 = scmp.ge.s32.totalorder %s8995_s24, 2  ;;  %s6077_s26 = sand.u32 1, %s8983_s21  }
 0x63c   : > { %s6078_s25 = scalar_lea.sflag [#allocation5], %s6077_s26 }
 0x63d   : > { %p8859_p8 = pnand %p8865_p7, %p9079_p6 }
 0x63f   : > { %8974 = dma.done.wait (!%p8859_p8), %s6078_s25, 1024  }
 0x640   : > { %8976 = vsyncadd (!%p8859_p8), %s6078_s25, 4294966272  ;;  %s6087_s7 = scalar_lea.sflag [#allocation7], %s6077_s26 }
 0x641   : > { %8978 = dma.done.wait (!%p8859_p8), %s6087_s7, 4096  }
 0x642   : > { %8980 = vsyncadd (!%p8859_p8), %s6087_s7, 4294963200  ;;  %p20_p5 = scmp.ge.s32.totalorder %s9062_s27, 4   ;;  %s11500_s21 = smov %s8987_s22 }
 0x643   : > { %s11501_s22 = smov %s8991_s23  ;;  %s11502_s23 = smov %s9073_s30 }
 0x644   : > { %s11503_s24 = smov %s9062_s27  ;;  %22 = sbr.rel (!%p20_p5) target bundleno = 5 (0x5), region = 125 }
 0x64b   :  { %6092 = vsyncpa [#allocation5], 1 }
 0x64c   :  { %6094 = vsyncpa [#allocation5 + $0x1], 1 }
 0x64d   :  { %6095 = vsyncpa [#allocation7], 1 }
 0x64e   :  { %6097 = vsyncpa [#allocation7 + $0x1], 1 }

</bundles_post_ra>
